<compile_context>
chip_gen: v7x
topology: tpu7x:2x2x1
jax: 0.10.0
libtpu: 0.0.40
codegen_flags: <defaults>
</compile_context>

<pallas_src>
import math

import jax
import jax.numpy as jnp
from jax.experimental import pallas as pl
from jax.experimental.pallas import tpu as pltpu

# ----------------------------- model hyper-params -----------------------------
LEN_TOKENIZER = 50      # synthetic vocab size (len_tokenizer)
HIDDEN = 32             # config.hidden_size
NUM_HEADS = 2
HEAD_DIM = HIDDEN // NUM_HEADS
FFN = 64                # intermediate size
NUM_LAYERS = 2
PROJ = 128              # self.proj
SEQ = 8
BATCH = 2
LN_EPS = 1e-5           # roberta-base layer_norm_eps


# ----------------------------- in-kernel helpers ------------------------------
def _layernorm(x, gamma, beta, eps=LN_EPS):
    mu = jnp.mean(x, axis=-1, keepdims=True)
    xc = x - mu
    var = jnp.mean(xc * xc, axis=-1, keepdims=True)
    return xc * jax.lax.rsqrt(var + eps) * gamma + beta


def _gelu_tanh(x):
    # TODO(synk): PyTorch nn.GELU defaults to the exact erf form; the tanh
    # approximation keeps everything on VPU/EUP (tiny systematic deviation).
    c = math.sqrt(2.0 / math.pi)
    return 0.5 * x * (1.0 + jnp.tanh(c * (x + 0.044715 * x * x * x)))


# --------------------- fused forward kernel (one grid step = one sequence) -----
def fused_forward_kernel(ids_ref, mask_ref,
                         word_emb_ref, pos_emb_ref, emb_g_ref, emb_b_ref,
                         wq_ref, bq_ref, wk_ref, bk_ref, wv_ref, bv_ref,
                         wo_ref, bo_ref, ln1_g_ref, ln1_b_ref,
                         w1_ref, b1_ref, w2_ref, b2_ref,
                         ln2_g_ref, ln2_b_ref,
                         proj_w_ref, proj_b_ref,
                         out_ref):
    ids = ids_ref[0]                      # (S, 1) int32
    mask = mask_ref[0]                    # (1, S) float32

    # ---- embeddings: one-hot matmul "gather" + positional add + LayerNorm ----
    # TODO(synk): real RoBERTa offsets position ids by padding_idx+1 and adds
    # token_type embeddings; synthetic encoder here uses plain 0..S-1 positions.
    vocab_iota = jax.lax.broadcasted_iota(jnp.int32, (SEQ, LEN_TOKENIZER), 1)
    onehot = (vocab_iota == ids).astype(jnp.bfloat16)              # (S, V)
    x = jnp.dot(onehot, word_emb_ref[...],
                preferred_element_type=jnp.float32)                # (S, H) f32
    x = x + pos_emb_ref[...]
    x = _layernorm(x, emb_g_ref[...], emb_b_ref[...])

    # hoisted additive key mask, reused by every layer
    add_mask = (1.0 - mask) * (-1e9)                               # (1, S)

    for l in range(NUM_LAYERS):                                    # static unroll
        xb = x.astype(jnp.bfloat16)
        # NOTE: 1/sqrt(head_dim) is pre-folded into wq/bq at init time.
        q = jnp.dot(xb, wq_ref[l], preferred_element_type=jnp.float32) + bq_ref[l]
        k = jnp.dot(xb, wk_ref[l], preferred_element_type=jnp.float32) + bk_ref[l]
        v = jnp.dot(xb, wv_ref[l], preferred_element_type=jnp.float32) + bv_ref[l]

        q4 = q.reshape(SEQ, NUM_HEADS, HEAD_DIM).astype(jnp.bfloat16)
        k4 = k.reshape(SEQ, NUM_HEADS, HEAD_DIM).astype(jnp.bfloat16)
        v4 = v.reshape(SEQ, NUM_HEADS, HEAD_DIM).astype(jnp.bfloat16)

        # head-batched attention (no per-head loop / slices / concat)
        scores = jnp.einsum('qnd,knd->nqk', q4, k4,
                            preferred_element_type=jnp.float32)     # (NH, S, S)
        scores = scores + add_mask                                   # key mask
        m = jnp.max(scores, axis=-1, keepdims=True)
        e = jnp.exp(scores - m)
        p = e * pl.reciprocal(jnp.sum(e, axis=-1, keepdims=True), approx=True)
        ctx = jnp.einsum('nqk,knd->qnd', p.astype(jnp.bfloat16), v4,
                         preferred_element_type=jnp.float32)         # (S, NH, HD)
        ctx = ctx.reshape(SEQ, HIDDEN)

        attn = jnp.dot(ctx.astype(jnp.bfloat16), wo_ref[l],
                       preferred_element_type=jnp.float32) + bo_ref[l]
        x = _layernorm(x + attn, ln1_g_ref[l], ln1_b_ref[l])

        h1 = _gelu_tanh(jnp.dot(x.astype(jnp.bfloat16), w1_ref[l],
                                preferred_element_type=jnp.float32) + b1_ref[l])
        h2 = jnp.dot(h1.astype(jnp.bfloat16), w2_ref[l],
                     preferred_element_type=jnp.float32) + b2_ref[l]
        x = _layernorm(x + h2, ln2_g_ref[l], ln2_b_ref[l])

    # ---- masked mean pooling (as a (1,S)@(S,H) matmul) ----
    summed = jnp.dot(mask, x, preferred_element_type=jnp.float32)    # (1, H)
    denom = jnp.maximum(jnp.sum(mask, axis=-1, keepdims=True), 1e-9)
    pooled = summed * pl.reciprocal(denom, approx=True)

    # ---- projection + tanh + L2-normalize (lane-dense: PROJ = 128) ----
    proj = jnp.tanh(jnp.dot(pooled.astype(jnp.bfloat16), proj_w_ref[...],
                            preferred_element_type=jnp.float32) + proj_b_ref[...])
    nrm2 = jnp.sum(proj * proj, axis=-1, keepdims=True)
    out = proj * jax.lax.rsqrt(jnp.maximum(nrm2, 1e-24))             # == x/max(||x||,1e-12)
    out_ref[...] = out.reshape(1, 1, PROJ)


# ------------------------------ Pallas wrapper ---------------------------------
def contrastive_forward_pallas(params, input_ids, attention_mask):
    B, S = input_ids.shape
    ids3 = input_ids.astype(jnp.int32).reshape(B, S, 1)
    mask3 = attention_mask.astype(jnp.float32).reshape(B, 1, S)

    def full(a):                      # whole array resident in VMEM, same block every step
        return pl.BlockSpec(a.shape, lambda b, nd=a.ndim: (0,) * nd)

    def per_batch(a):                 # one batch element per grid step
        return pl.BlockSpec((1,) + a.shape[1:],
                            lambda b, nd=a.ndim: (b,) + (0,) * (nd - 1))

    inputs = [ids3, mask3,
              params['word_emb'], params['pos_emb'],
              params['emb_ln_g'], params['emb_ln_b'],
              params['wq'], params['bq'], params['wk'], params['bk'],
              params['wv'], params['bv'], params['wo'], params['bo'],
              params['ln1_g'], params['ln1_b'],
              params['w1'], params['b1'], params['w2'], params['b2'],
              params['ln2_g'], params['ln2_b'],
              params['proj_w'], params['proj_b']]
    in_specs = [per_batch(ids3), per_batch(mask3)] + [full(a) for a in inputs[2:]]

    out = pl.pallas_call(
        fused_forward_kernel,
        grid=(B,),
        in_specs=in_specs,
        out_specs=pl.BlockSpec((1, 1, PROJ), lambda b: (b, 0, 0)),
        out_shape=jax.ShapeDtypeStruct((B, 1, PROJ), jnp.float32),
        compiler_params=pltpu.CompilerParams(
            dimension_semantics=("parallel",)),   # v7x: one sequence per TensorCore
    )(*inputs)
    return out.reshape(B, PROJ)


# ------------------------------ parameter init --------------------------------
def init_params(key):
    keys = iter(jax.random.split(key, 64))

    def nrm(shape, dtype=jnp.bfloat16, scale=0.02):
        return (scale * jax.random.normal(next(keys), shape, jnp.float32)).astype(dtype)

    inv_sqrt_d = 1.0 / math.sqrt(HEAD_DIM)
    params = {
        # embeddings
        'word_emb': nrm((LEN_TOKENIZER, HIDDEN)),
        'pos_emb': nrm((SEQ, HIDDEN), dtype=jnp.float32),
        'emb_ln_g': jnp.ones((1, HIDDEN), jnp.float32),
        'emb_ln_b': jnp.zeros((1, HIDDEN), jnp.float32),
        # stacked encoder layers; 1/sqrt(head_dim) folded into Wq/bq
        'wq': (nrm((NUM_LAYERS, HIDDEN, HIDDEN), dtype=jnp.float32)
               * inv_sqrt_d).astype(jnp.bfloat16),
        'bq': jnp.zeros((NUM_LAYERS, 1, HIDDEN), jnp.float32),
        'wk': nrm((NUM_LAYERS, HIDDEN, HIDDEN)),
        'bk': jnp.zeros((NUM_LAYERS, 1, HIDDEN), jnp.float32),
        'wv': nrm((NUM_LAYERS, HIDDEN, HIDDEN)),
        'bv': jnp.zeros((NUM_LAYERS, 1, HIDDEN), jnp.float32),
        'wo': nrm((NUM_LAYERS, HIDDEN, HIDDEN)),
        'bo': jnp.zeros((NUM_LAYERS, 1, HIDDEN), jnp.float32),
        'ln1_g': jnp.ones((NUM_LAYERS, 1, HIDDEN), jnp.float32),
        'ln1_b': jnp.zeros((NUM_LAYERS, 1, HIDDEN), jnp.float32),
        'w1': nrm((NUM_LAYERS, HIDDEN, FFN)),
        'b1': jnp.zeros((NUM_LAYERS, 1, FFN), jnp.float32),
        'w2': nrm((NUM_LAYERS, FFN, HIDDEN)),
        'b2': jnp.zeros((NUM_LAYERS, 1, HIDDEN), jnp.float32),
        'ln2_g': jnp.ones((NUM_LAYERS, 1, HIDDEN), jnp.float32),
        'ln2_b': jnp.zeros((NUM_LAYERS, 1, HIDDEN), jnp.float32),
        # projection head (nn.Linear(hidden_size, proj))
        'proj_w': nrm((HIDDEN, PROJ)),
        'proj_b': jnp.zeros((1, PROJ), jnp.float32),
    }
    return params


# ------------------------------ full forward pass ------------------------------
@jax.jit
def contrastive_model_forward(params, input_ids, attention_mask):
    """Mirrors ContrastiveModel.forward (pool=True, with_proj=True)."""
    emb = contrastive_forward_pallas(params, input_ids, attention_mask)
    loss = jnp.float32(0.0)   # forward returns (loss=0, output)
    return loss, emb


# ----------------------------------- main --------------------------------------
if __name__ == "__main__":
    key = jax.random.PRNGKey(0)
    k_param, k_ids = jax.random.split(key)

    params = init_params(k_param)

    input_ids = jax.random.randint(k_ids, (BATCH, SEQ), 0, LEN_TOKENIZER,
                                   dtype=jnp.int32)
    # first example fully valid, second example has 3 padding positions
    attention_mask = jnp.array(
        [[1, 1, 1, 1, 1, 1, 1, 1],
         [1, 1, 1, 1, 1, 0, 0, 0]], dtype=jnp.int32)

    loss, emb = contrastive_model_forward(params, input_ids, attention_mask)
    jax.block_until_ready(emb)

    assert emb.shape == (BATCH, PROJ)
    assert bool(jnp.all(jnp.isfinite(emb)))
    # embeddings are L2-normalized
    assert jnp.allclose(jnp.linalg.norm(emb, axis=-1), 1.0, atol=1e-3)

    print("KERNEL_OK")
</pallas_src>

<mosaic_0001>
module attributes {stable_mosaic.version = 11 : i64} {
  func.func @fused_forward_kernel(%arg0: i32, %arg1: memref<1x8x1xi32, #tpu.memory_space<vmem>>, %arg2: memref<1x1x8xf32, #tpu.memory_space<vmem>>, %arg3: memref<50x32xbf16, #tpu.memory_space<vmem>>, %arg4: memref<8x32xf32, #tpu.memory_space<vmem>>, %arg5: memref<1x32xf32, #tpu.memory_space<vmem>>, %arg6: memref<1x32xf32, #tpu.memory_space<vmem>>, %arg7: memref<2x32x32xbf16, #tpu.memory_space<vmem>>, %arg8: memref<2x1x32xf32, #tpu.memory_space<vmem>>, %arg9: memref<2x32x32xbf16, #tpu.memory_space<vmem>>, %arg10: memref<2x1x32xf32, #tpu.memory_space<vmem>>, %arg11: memref<2x32x32xbf16, #tpu.memory_space<vmem>>, %arg12: memref<2x1x32xf32, #tpu.memory_space<vmem>>, %arg13: memref<2x32x32xbf16, #tpu.memory_space<vmem>>, %arg14: memref<2x1x32xf32, #tpu.memory_space<vmem>>, %arg15: memref<2x1x32xf32, #tpu.memory_space<vmem>>, %arg16: memref<2x1x32xf32, #tpu.memory_space<vmem>>, %arg17: memref<2x32x64xbf16, #tpu.memory_space<vmem>>, %arg18: memref<2x1x64xf32, #tpu.memory_space<vmem>>, %arg19: memref<2x64x32xbf16, #tpu.memory_space<vmem>>, %arg20: memref<2x1x32xf32, #tpu.memory_space<vmem>>, %arg21: memref<2x1x32xf32, #tpu.memory_space<vmem>>, %arg22: memref<2x1x32xf32, #tpu.memory_space<vmem>>, %arg23: memref<32x128xbf16, #tpu.memory_space<vmem>>, %arg24: memref<1x128xf32, #tpu.memory_space<vmem>>, %arg25: memref<1x1x128xf32, #tpu.memory_space<vmem>>) attributes {dimension_semantics = [#tpu.dimension_semantics<parallel>], iteration_bounds = array<i64: 2>, scalar_prefetch = 0 : i64, scratch_operands = 0 : i64, tpu.core_type = #tpu.core_type<tc>, window_params = [{transform_indices = @transform_0, window_bounds = array<i64: 1, 8, 1>}, {transform_indices = @transform_1, window_bounds = array<i64: 1, 1, 8>}, {pipeline_mode = #tpu.pipeline_mode<synchronous>, transform_indices = @transform_2, window_bounds = array<i64: 50, 32>}, {pipeline_mode = #tpu.pipeline_mode<synchronous>, transform_indices = @transform_3, window_bounds = array<i64: 8, 32>}, {pipeline_mode = #tpu.pipeline_mode<synchronous>, transform_indices = @transform_4, window_bounds = array<i64: 1, 32>}, {pipeline_mode = #tpu.pipeline_mode<synchronous>, transform_indices = @transform_5, window_bounds = array<i64: 1, 32>}, {pipeline_mode = #tpu.pipeline_mode<synchronous>, transform_indices = @transform_6, window_bounds = array<i64: 2, 32, 32>}, {pipeline_mode = #tpu.pipeline_mode<synchronous>, transform_indices = @transform_7, window_bounds = array<i64: 2, 1, 32>}, {pipeline_mode = #tpu.pipeline_mode<synchronous>, transform_indices = @transform_8, window_bounds = array<i64: 2, 32, 32>}, {pipeline_mode = #tpu.pipeline_mode<synchronous>, transform_indices = @transform_9, window_bounds = array<i64: 2, 1, 32>}, {pipeline_mode = #tpu.pipeline_mode<synchronous>, transform_indices = @transform_10, window_bounds = array<i64: 2, 32, 32>}, {pipeline_mode = #tpu.pipeline_mode<synchronous>, transform_indices = @transform_11, window_bounds = array<i64: 2, 1, 32>}, {pipeline_mode = #tpu.pipeline_mode<synchronous>, transform_indices = @transform_12, window_bounds = array<i64: 2, 32, 32>}, {pipeline_mode = #tpu.pipeline_mode<synchronous>, transform_indices = @transform_13, window_bounds = array<i64: 2, 1, 32>}, {pipeline_mode = #tpu.pipeline_mode<synchronous>, transform_indices = @transform_14, window_bounds = array<i64: 2, 1, 32>}, {pipeline_mode = #tpu.pipeline_mode<synchronous>, transform_indices = @transform_15, window_bounds = array<i64: 2, 1, 32>}, {pipeline_mode = #tpu.pipeline_mode<synchronous>, transform_indices = @transform_16, window_bounds = array<i64: 2, 32, 64>}, {pipeline_mode = #tpu.pipeline_mode<synchronous>, transform_indices = @transform_17, window_bounds = array<i64: 2, 1, 64>}, {pipeline_mode = #tpu.pipeline_mode<synchronous>, transform_indices = @transform_18, window_bounds = array<i64: 2, 64, 32>}, {pipeline_mode = #tpu.pipeline_mode<synchronous>, transform_indices = @transform_19, window_bounds = array<i64: 2, 1, 32>}, {pipeline_mode = #tpu.pipeline_mode<synchronous>, transform_indices = @transform_20, window_bounds = array<i64: 2, 1, 32>}, {pipeline_mode = #tpu.pipeline_mode<synchronous>, transform_indices = @transform_21, window_bounds = array<i64: 2, 1, 32>}, {pipeline_mode = #tpu.pipeline_mode<synchronous>, transform_indices = @transform_22, window_bounds = array<i64: 32, 128>}, {pipeline_mode = #tpu.pipeline_mode<synchronous>, transform_indices = @transform_23, window_bounds = array<i64: 1, 128>}, {transform_indices = @transform_24, window_bounds = array<i64: 1, 1, 128>}]} {
    %c0 = arith.constant 0 : index
    %c0_0 = arith.constant 0 : index
    %c0_1 = arith.constant 0 : index
    %0 = vector.load %arg1[%c0, %c0_0, %c0_1] : memref<1x8x1xi32, #tpu.memory_space<vmem>>, vector<1x8x1xi32>
    %1 = vector.shape_cast %0 : vector<1x8x1xi32> to vector<8x1xi32>
    %c0_2 = arith.constant 0 : index
    %c0_3 = arith.constant 0 : index
    %c0_4 = arith.constant 0 : index
    %2 = vector.load %arg2[%c0_2, %c0_3, %c0_4] : memref<1x1x8xf32, #tpu.memory_space<vmem>>, vector<1x1x8xf32>
    %3 = vector.shape_cast %2 : vector<1x1x8xf32> to vector<1x8xf32>
    %4 = tpu.iota {dimensions = array<i32: 1>} : vector<8x50xi32>
    %5 = vector.broadcast %1 : vector<8x1xi32> to vector<8x50xi32>
    %6 = arith.cmpi eq, %4, %5 : vector<8x50xi32>
    %7 = arith.extui %6 : vector<8x50xi1> to vector<8x50xi32>
    %8 = arith.sitofp %7 : vector<8x50xi32> to vector<8x50xf32>
    %9 = arith.truncf %8 : vector<8x50xf32> to vector<8x50xbf16>
    %c0_5 = arith.constant 0 : index
    %c0_6 = arith.constant 0 : index
    %10 = vector.load %arg3[%c0_5, %c0_6] : memref<50x32xbf16, #tpu.memory_space<vmem>>, vector<50x32xbf16>
    %cst = arith.constant dense<0.000000e+00> : vector<8x32xf32>
    %11 = tpu.matmul %9, %10, %cst {dimension_numbers = #tpu.dot_dimension_numbers<[1], [0], [0], [1], [0, 0, 1, 1], [], []>} : vector<8x50xbf16>, vector<50x32xbf16>, vector<8x32xf32> -> vector<8x32xf32>
    %c0_7 = arith.constant 0 : index
    %c0_8 = arith.constant 0 : index
    %12 = vector.load %arg4[%c0_7, %c0_8] : memref<8x32xf32, #tpu.memory_space<vmem>>, vector<8x32xf32>
    %13 = arith.addf %11, %12 : vector<8x32xf32>
    %c0_9 = arith.constant 0 : index
    %c0_10 = arith.constant 0 : index
    %14 = vector.load %arg5[%c0_9, %c0_10] : memref<1x32xf32, #tpu.memory_space<vmem>>, vector<1x32xf32>
    %c0_11 = arith.constant 0 : index
    %c0_12 = arith.constant 0 : index
    %15 = vector.load %arg6[%c0_11, %c0_12] : memref<1x32xf32, #tpu.memory_space<vmem>>, vector<1x32xf32>
    %cst_13 = arith.constant dense<0.000000e+00> : vector<8xf32>
    %16 = vector.multi_reduction <add>, %13, %cst_13 [1] : vector<8x32xf32> to vector<8xf32>
    %17 = vector.shape_cast %16 : vector<8xf32> to vector<8x1xf32>
    %cst_14 = arith.constant 3.200000e+01 : f32
    %18 = vector.broadcast %cst_14 : f32 to vector<8x1xf32>
    %19 = arith.divf %17, %18 : vector<8x1xf32>
    %20 = vector.broadcast %19 : vector<8x1xf32> to vector<8x32xf32>
    %21 = arith.subf %13, %20 : vector<8x32xf32>
    %22 = arith.mulf %21, %21 : vector<8x32xf32>
    %cst_15 = arith.constant dense<0.000000e+00> : vector<8xf32>
    %23 = vector.multi_reduction <add>, %22, %cst_15 [1] : vector<8x32xf32> to vector<8xf32>
    %24 = vector.shape_cast %23 : vector<8xf32> to vector<8x1xf32>
    %cst_16 = arith.constant 3.200000e+01 : f32
    %25 = vector.broadcast %cst_16 : f32 to vector<8x1xf32>
    %26 = arith.divf %24, %25 : vector<8x1xf32>
    %cst_17 = arith.constant 9.99999974E-6 : f32
    %27 = vector.broadcast %cst_17 : f32 to vector<8x1xf32>
    %28 = arith.addf %26, %27 : vector<8x1xf32>
    %29 = math.rsqrt %28 : vector<8x1xf32>
    %30 = vector.broadcast %29 : vector<8x1xf32> to vector<8x32xf32>
    %31 = arith.mulf %21, %30 : vector<8x32xf32>
    %32 = vector.broadcast %14 : vector<1x32xf32> to vector<8x32xf32>
    %33 = arith.mulf %31, %32 : vector<8x32xf32>
    %34 = vector.broadcast %15 : vector<1x32xf32> to vector<8x32xf32>
    %35 = arith.addf %33, %34 : vector<8x32xf32>
    %cst_18 = arith.constant 1.000000e+00 : f32
    %36 = vector.broadcast %cst_18 : f32 to vector<1x8xf32>
    %37 = arith.subf %36, %3 : vector<1x8xf32>
    %cst_19 = arith.constant -1.000000e+09 : f32
    %38 = vector.broadcast %cst_19 : f32 to vector<1x8xf32>
    %39 = arith.mulf %37, %38 : vector<1x8xf32>
    %40 = arith.truncf %35 : vector<8x32xf32> to vector<8x32xbf16>
    %c0_20 = arith.constant 0 : index
    %c0_21 = arith.constant 0 : index
    %c0_22 = arith.constant 0 : index
    %41 = vector.load %arg7[%c0_20, %c0_21, %c0_22] : memref<2x32x32xbf16, #tpu.memory_space<vmem>>, vector<1x32x32xbf16>
    %42 = vector.shape_cast %41 : vector<1x32x32xbf16> to vector<32x32xbf16>
    %cst_23 = arith.constant dense<0.000000e+00> : vector<8x32xf32>
    %43 = tpu.matmul %40, %42, %cst_23 {dimension_numbers = #tpu.dot_dimension_numbers<[1], [0], [0], [1], [0, 0, 1, 1], [], []>} : vector<8x32xbf16>, vector<32x32xbf16>, vector<8x32xf32> -> vector<8x32xf32>
    %c0_24 = arith.constant 0 : index
    %c0_25 = arith.constant 0 : index
    %c0_26 = arith.constant 0 : index
    %44 = vector.load %arg8[%c0_24, %c0_25, %c0_26] : memref<2x1x32xf32, #tpu.memory_space<vmem>>, vector<1x1x32xf32>
    %45 = vector.shape_cast %44 : vector<1x1x32xf32> to vector<1x32xf32>
    %46 = vector.broadcast %45 : vector<1x32xf32> to vector<8x32xf32>
    %47 = arith.addf %43, %46 : vector<8x32xf32>
    %c0_27 = arith.constant 0 : index
    %c0_28 = arith.constant 0 : index
    %c0_29 = arith.constant 0 : index
    %48 = vector.load %arg9[%c0_27, %c0_28, %c0_29] : memref<2x32x32xbf16, #tpu.memory_space<vmem>>, vector<1x32x32xbf16>
    %49 = vector.shape_cast %48 : vector<1x32x32xbf16> to vector<32x32xbf16>
    %cst_30 = arith.constant dense<0.000000e+00> : vector<8x32xf32>
    %50 = tpu.matmul %40, %49, %cst_30 {dimension_numbers = #tpu.dot_dimension_numbers<[1], [0], [0], [1], [0, 0, 1, 1], [], []>} : vector<8x32xbf16>, vector<32x32xbf16>, vector<8x32xf32> -> vector<8x32xf32>
    %c0_31 = arith.constant 0 : index
    %c0_32 = arith.constant 0 : index
    %c0_33 = arith.constant 0 : index
    %51 = vector.load %arg10[%c0_31, %c0_32, %c0_33] : memref<2x1x32xf32, #tpu.memory_space<vmem>>, vector<1x1x32xf32>
    %52 = vector.shape_cast %51 : vector<1x1x32xf32> to vector<1x32xf32>
    %53 = vector.broadcast %52 : vector<1x32xf32> to vector<8x32xf32>
    %54 = arith.addf %50, %53 : vector<8x32xf32>
    %c0_34 = arith.constant 0 : index
    %c0_35 = arith.constant 0 : index
    %c0_36 = arith.constant 0 : index
    %55 = vector.load %arg11[%c0_34, %c0_35, %c0_36] : memref<2x32x32xbf16, #tpu.memory_space<vmem>>, vector<1x32x32xbf16>
    %56 = vector.shape_cast %55 : vector<1x32x32xbf16> to vector<32x32xbf16>
    %cst_37 = arith.constant dense<0.000000e+00> : vector<8x32xf32>
    %57 = tpu.matmul %40, %56, %cst_37 {dimension_numbers = #tpu.dot_dimension_numbers<[1], [0], [0], [1], [0, 0, 1, 1], [], []>} : vector<8x32xbf16>, vector<32x32xbf16>, vector<8x32xf32> -> vector<8x32xf32>
    %c0_38 = arith.constant 0 : index
    %c0_39 = arith.constant 0 : index
    %c0_40 = arith.constant 0 : index
    %58 = vector.load %arg12[%c0_38, %c0_39, %c0_40] : memref<2x1x32xf32, #tpu.memory_space<vmem>>, vector<1x1x32xf32>
    %59 = vector.shape_cast %58 : vector<1x1x32xf32> to vector<1x32xf32>
    %60 = vector.broadcast %59 : vector<1x32xf32> to vector<8x32xf32>
    %61 = arith.addf %57, %60 : vector<8x32xf32>
    %62 = vector.shape_cast %47 : vector<8x32xf32> to vector<8x2x16xf32>
    %63 = arith.truncf %62 : vector<8x2x16xf32> to vector<8x2x16xbf16>
    %64 = vector.shape_cast %54 : vector<8x32xf32> to vector<8x2x16xf32>
    %65 = arith.truncf %64 : vector<8x2x16xf32> to vector<8x2x16xbf16>
    %66 = vector.shape_cast %61 : vector<8x32xf32> to vector<8x2x16xf32>
    %67 = arith.truncf %66 : vector<8x2x16xf32> to vector<8x2x16xbf16>
    "tpu.trace_start"() <{level = 10 : i32, message = "qnd,knd->nqk"}> : () -> ()
    %cst_41 = arith.constant dense<0.000000e+00> : vector<2x8x8xf32>
    %68 = tpu.matmul %63, %65, %cst_41 {dimension_numbers = #tpu.dot_dimension_numbers<[2], [2], [0], [0], [0, 1, 0, 0, 1, 0], [1], [1]>} : vector<8x2x16xbf16>, vector<8x2x16xbf16>, vector<2x8x8xf32> -> vector<2x8x8xf32>
    "tpu.trace_stop"() : () -> ()
    %69 = vector.shape_cast %39 : vector<1x8xf32> to vector<1x1x8xf32>
    %70 = vector.broadcast %69 : vector<1x1x8xf32> to vector<2x8x8xf32>
    %71 = arith.addf %68, %70 : vector<2x8x8xf32>
    %cst_42 = arith.constant dense<0xFF800000> : vector<2x8xf32>
    %72 = vector.multi_reduction <maximumf>, %71, %cst_42 [2] : vector<2x8x8xf32> to vector<2x8xf32>
    %73 = vector.shape_cast %72 : vector<2x8xf32> to vector<2x8x1xf32>
    %74 = vector.broadcast %73 : vector<2x8x1xf32> to vector<2x8x8xf32>
    %75 = arith.subf %71, %74 : vector<2x8x8xf32>
    %76 = math.exp %75 : vector<2x8x8xf32>
    %cst_43 = arith.constant dense<0.000000e+00> : vector<2x8xf32>
    %77 = vector.multi_reduction <add>, %76, %cst_43 [2] : vector<2x8x8xf32> to vector<2x8xf32>
    %78 = vector.shape_cast %77 : vector<2x8xf32> to vector<2x8x1xf32>
    %79 = tpu.reciprocal %78 {approx = true} : vector<2x8x1xf32> -> vector<2x8x1xf32>
    %80 = vector.broadcast %79 : vector<2x8x1xf32> to vector<2x8x8xf32>
    %81 = arith.mulf %76, %80 : vector<2x8x8xf32>
    %82 = arith.truncf %81 : vector<2x8x8xf32> to vector<2x8x8xbf16>
    "tpu.trace_start"() <{level = 10 : i32, message = "nqk,knd->qnd"}> : () -> ()
    %cst_44 = arith.constant dense<0.000000e+00> : vector<2x16x8xf32>
    %83 = tpu.matmul %67, %82, %cst_44 {dimension_numbers = #tpu.dot_dimension_numbers<[0], [2], [2], [1], [0, 1, 0, 2, 1, 1], [1], [0]>} : vector<8x2x16xbf16>, vector<2x8x8xbf16>, vector<2x16x8xf32> -> vector<2x16x8xf32>
    %84 = tpu.transpose %83, [2, 0, 1] : vector<2x16x8xf32> -> vector<8x2x16xf32>
    "tpu.trace_stop"() : () -> ()
    %85 = vector.shape_cast %84 : vector<8x2x16xf32> to vector<8x32xf32>
    %86 = arith.truncf %85 : vector<8x32xf32> to vector<8x32xbf16>
    %c0_45 = arith.constant 0 : index
    %c0_46 = arith.constant 0 : index
    %c0_47 = arith.constant 0 : index
    %87 = vector.load %arg13[%c0_45, %c0_46, %c0_47] : memref<2x32x32xbf16, #tpu.memory_space<vmem>>, vector<1x32x32xbf16>
    %88 = vector.shape_cast %87 : vector<1x32x32xbf16> to vector<32x32xbf16>
    %cst_48 = arith.constant dense<0.000000e+00> : vector<8x32xf32>
    %89 = tpu.matmul %86, %88, %cst_48 {dimension_numbers = #tpu.dot_dimension_numbers<[1], [0], [0], [1], [0, 0, 1, 1], [], []>} : vector<8x32xbf16>, vector<32x32xbf16>, vector<8x32xf32> -> vector<8x32xf32>
    %c0_49 = arith.constant 0 : index
    %c0_50 = arith.constant 0 : index
    %c0_51 = arith.constant 0 : index
    %90 = vector.load %arg14[%c0_49, %c0_50, %c0_51] : memref<2x1x32xf32, #tpu.memory_space<vmem>>, vector<1x1x32xf32>
    %91 = vector.shape_cast %90 : vector<1x1x32xf32> to vector<1x32xf32>
    %92 = vector.broadcast %91 : vector<1x32xf32> to vector<8x32xf32>
    %93 = arith.addf %89, %92 : vector<8x32xf32>
    %94 = arith.addf %35, %93 : vector<8x32xf32>
    %c0_52 = arith.constant 0 : index
    %c0_53 = arith.constant 0 : index
    %c0_54 = arith.constant 0 : index
    %95 = vector.load %arg15[%c0_52, %c0_53, %c0_54] : memref<2x1x32xf32, #tpu.memory_space<vmem>>, vector<1x1x32xf32>
    %96 = vector.shape_cast %95 : vector<1x1x32xf32> to vector<1x32xf32>
    %c0_55 = arith.constant 0 : index
    %c0_56 = arith.constant 0 : index
    %c0_57 = arith.constant 0 : index
    %97 = vector.load %arg16[%c0_55, %c0_56, %c0_57] : memref<2x1x32xf32, #tpu.memory_space<vmem>>, vector<1x1x32xf32>
    %98 = vector.shape_cast %97 : vector<1x1x32xf32> to vector<1x32xf32>
    %cst_58 = arith.constant dense<0.000000e+00> : vector<8xf32>
    %99 = vector.multi_reduction <add>, %94, %cst_58 [1] : vector<8x32xf32> to vector<8xf32>
    %100 = vector.shape_cast %99 : vector<8xf32> to vector<8x1xf32>
    %cst_59 = arith.constant 3.200000e+01 : f32
    %101 = vector.broadcast %cst_59 : f32 to vector<8x1xf32>
    %102 = arith.divf %100, %101 : vector<8x1xf32>
    %103 = vector.broadcast %102 : vector<8x1xf32> to vector<8x32xf32>
    %104 = arith.subf %94, %103 : vector<8x32xf32>
    %105 = arith.mulf %104, %104 : vector<8x32xf32>
    %cst_60 = arith.constant dense<0.000000e+00> : vector<8xf32>
    %106 = vector.multi_reduction <add>, %105, %cst_60 [1] : vector<8x32xf32> to vector<8xf32>
    %107 = vector.shape_cast %106 : vector<8xf32> to vector<8x1xf32>
    %cst_61 = arith.constant 3.200000e+01 : f32
    %108 = vector.broadcast %cst_61 : f32 to vector<8x1xf32>
    %109 = arith.divf %107, %108 : vector<8x1xf32>
    %cst_62 = arith.constant 9.99999974E-6 : f32
    %110 = vector.broadcast %cst_62 : f32 to vector<8x1xf32>
    %111 = arith.addf %109, %110 : vector<8x1xf32>
    %112 = math.rsqrt %111 : vector<8x1xf32>
    %113 = vector.broadcast %112 : vector<8x1xf32> to vector<8x32xf32>
    %114 = arith.mulf %104, %113 : vector<8x32xf32>
    %115 = vector.broadcast %96 : vector<1x32xf32> to vector<8x32xf32>
    %116 = arith.mulf %114, %115 : vector<8x32xf32>
    %117 = vector.broadcast %98 : vector<1x32xf32> to vector<8x32xf32>
    %118 = arith.addf %116, %117 : vector<8x32xf32>
    %119 = arith.truncf %118 : vector<8x32xf32> to vector<8x32xbf16>
    %c0_63 = arith.constant 0 : index
    %c0_64 = arith.constant 0 : index
    %c0_65 = arith.constant 0 : index
    %120 = vector.load %arg17[%c0_63, %c0_64, %c0_65] : memref<2x32x64xbf16, #tpu.memory_space<vmem>>, vector<1x32x64xbf16>
    %121 = vector.shape_cast %120 : vector<1x32x64xbf16> to vector<32x64xbf16>
    %cst_66 = arith.constant dense<0.000000e+00> : vector<8x64xf32>
    %122 = tpu.matmul %119, %121, %cst_66 {dimension_numbers = #tpu.dot_dimension_numbers<[1], [0], [0], [1], [0, 0, 1, 1], [], []>} : vector<8x32xbf16>, vector<32x64xbf16>, vector<8x64xf32> -> vector<8x64xf32>
    %c0_67 = arith.constant 0 : index
    %c0_68 = arith.constant 0 : index
    %c0_69 = arith.constant 0 : index
    %123 = vector.load %arg18[%c0_67, %c0_68, %c0_69] : memref<2x1x64xf32, #tpu.memory_space<vmem>>, vector<1x1x64xf32>
    %124 = vector.shape_cast %123 : vector<1x1x64xf32> to vector<1x64xf32>
    %125 = vector.broadcast %124 : vector<1x64xf32> to vector<8x64xf32>
    %126 = arith.addf %122, %125 : vector<8x64xf32>
    %cst_70 = arith.constant 5.000000e-01 : f32
    %127 = vector.broadcast %cst_70 : f32 to vector<8x64xf32>
    %128 = arith.mulf %127, %126 : vector<8x64xf32>
    %cst_71 = arith.constant 4.471500e-02 : f32
    %129 = vector.broadcast %cst_71 : f32 to vector<8x64xf32>
    %130 = arith.mulf %129, %126 : vector<8x64xf32>
    %131 = arith.mulf %130, %126 : vector<8x64xf32>
    %132 = arith.mulf %131, %126 : vector<8x64xf32>
    %133 = arith.addf %126, %132 : vector<8x64xf32>
    %cst_72 = arith.constant 0.797884583 : f32
    %134 = vector.broadcast %cst_72 : f32 to vector<8x64xf32>
    %135 = arith.mulf %134, %133 : vector<8x64xf32>
    %136 = math.tanh %135 : vector<8x64xf32>
    %cst_73 = arith.constant 1.000000e+00 : f32
    %137 = vector.broadcast %cst_73 : f32 to vector<8x64xf32>
    %138 = arith.addf %137, %136 : vector<8x64xf32>
    %139 = arith.mulf %128, %138 : vector<8x64xf32>
    %140 = arith.truncf %139 : vector<8x64xf32> to vector<8x64xbf16>
    %c0_74 = arith.constant 0 : index
    %c0_75 = arith.constant 0 : index
    %c0_76 = arith.constant 0 : index
    %141 = vector.load %arg19[%c0_74, %c0_75, %c0_76] : memref<2x64x32xbf16, #tpu.memory_space<vmem>>, vector<1x64x32xbf16>
    %142 = vector.shape_cast %141 : vector<1x64x32xbf16> to vector<64x32xbf16>
    %cst_77 = arith.constant dense<0.000000e+00> : vector<8x32xf32>
    %143 = tpu.matmul %140, %142, %cst_77 {dimension_numbers = #tpu.dot_dimension_numbers<[1], [0], [0], [1], [0, 0, 1, 1], [], []>} : vector<8x64xbf16>, vector<64x32xbf16>, vector<8x32xf32> -> vector<8x32xf32>
    %c0_78 = arith.constant 0 : index
    %c0_79 = arith.constant 0 : index
    %c0_80 = arith.constant 0 : index
    %144 = vector.load %arg20[%c0_78, %c0_79, %c0_80] : memref<2x1x32xf32, #tpu.memory_space<vmem>>, vector<1x1x32xf32>
    %145 = vector.shape_cast %144 : vector<1x1x32xf32> to vector<1x32xf32>
    %146 = vector.broadcast %145 : vector<1x32xf32> to vector<8x32xf32>
    %147 = arith.addf %143, %146 : vector<8x32xf32>
    %148 = arith.addf %118, %147 : vector<8x32xf32>
    %c0_81 = arith.constant 0 : index
    %c0_82 = arith.constant 0 : index
    %c0_83 = arith.constant 0 : index
    %149 = vector.load %arg21[%c0_81, %c0_82, %c0_83] : memref<2x1x32xf32, #tpu.memory_space<vmem>>, vector<1x1x32xf32>
    %150 = vector.shape_cast %149 : vector<1x1x32xf32> to vector<1x32xf32>
    %c0_84 = arith.constant 0 : index
    %c0_85 = arith.constant 0 : index
    %c0_86 = arith.constant 0 : index
    %151 = vector.load %arg22[%c0_84, %c0_85, %c0_86] : memref<2x1x32xf32, #tpu.memory_space<vmem>>, vector<1x1x32xf32>
    %152 = vector.shape_cast %151 : vector<1x1x32xf32> to vector<1x32xf32>
    %cst_87 = arith.constant dense<0.000000e+00> : vector<8xf32>
    %153 = vector.multi_reduction <add>, %148, %cst_87 [1] : vector<8x32xf32> to vector<8xf32>
    %154 = vector.shape_cast %153 : vector<8xf32> to vector<8x1xf32>
    %cst_88 = arith.constant 3.200000e+01 : f32
    %155 = vector.broadcast %cst_88 : f32 to vector<8x1xf32>
    %156 = arith.divf %154, %155 : vector<8x1xf32>
    %157 = vector.broadcast %156 : vector<8x1xf32> to vector<8x32xf32>
    %158 = arith.subf %148, %157 : vector<8x32xf32>
    %159 = arith.mulf %158, %158 : vector<8x32xf32>
    %cst_89 = arith.constant dense<0.000000e+00> : vector<8xf32>
    %160 = vector.multi_reduction <add>, %159, %cst_89 [1] : vector<8x32xf32> to vector<8xf32>
    %161 = vector.shape_cast %160 : vector<8xf32> to vector<8x1xf32>
    %cst_90 = arith.constant 3.200000e+01 : f32
    %162 = vector.broadcast %cst_90 : f32 to vector<8x1xf32>
    %163 = arith.divf %161, %162 : vector<8x1xf32>
    %cst_91 = arith.constant 9.99999974E-6 : f32
    %164 = vector.broadcast %cst_91 : f32 to vector<8x1xf32>
    %165 = arith.addf %163, %164 : vector<8x1xf32>
    %166 = math.rsqrt %165 : vector<8x1xf32>
    %167 = vector.broadcast %166 : vector<8x1xf32> to vector<8x32xf32>
    %168 = arith.mulf %158, %167 : vector<8x32xf32>
    %169 = vector.broadcast %150 : vector<1x32xf32> to vector<8x32xf32>
    %170 = arith.mulf %168, %169 : vector<8x32xf32>
    %171 = vector.broadcast %152 : vector<1x32xf32> to vector<8x32xf32>
    %172 = arith.addf %170, %171 : vector<8x32xf32>
    %173 = arith.truncf %172 : vector<8x32xf32> to vector<8x32xbf16>
    %c1 = arith.constant 1 : index
    %c0_92 = arith.constant 0 : index
    %c0_93 = arith.constant 0 : index
    %174 = vector.load %arg7[%c1, %c0_92, %c0_93] : memref<2x32x32xbf16, #tpu.memory_space<vmem>>, vector<1x32x32xbf16>
    %175 = vector.shape_cast %174 : vector<1x32x32xbf16> to vector<32x32xbf16>
    %cst_94 = arith.constant dense<0.000000e+00> : vector<8x32xf32>
    %176 = tpu.matmul %173, %175, %cst_94 {dimension_numbers = #tpu.dot_dimension_numbers<[1], [0], [0], [1], [0, 0, 1, 1], [], []>} : vector<8x32xbf16>, vector<32x32xbf16>, vector<8x32xf32> -> vector<8x32xf32>
    %c1_95 = arith.constant 1 : index
    %c0_96 = arith.constant 0 : index
    %c0_97 = arith.constant 0 : index
    %177 = vector.load %arg8[%c1_95, %c0_96, %c0_97] : memref<2x1x32xf32, #tpu.memory_space<vmem>>, vector<1x1x32xf32>
    %178 = vector.shape_cast %177 : vector<1x1x32xf32> to vector<1x32xf32>
    %179 = vector.broadcast %178 : vector<1x32xf32> to vector<8x32xf32>
    %180 = arith.addf %176, %179 : vector<8x32xf32>
    %c1_98 = arith.constant 1 : index
    %c0_99 = arith.constant 0 : index
    %c0_100 = arith.constant 0 : index
    %181 = vector.load %arg9[%c1_98, %c0_99, %c0_100] : memref<2x32x32xbf16, #tpu.memory_space<vmem>>, vector<1x32x32xbf16>
    %182 = vector.shape_cast %181 : vector<1x32x32xbf16> to vector<32x32xbf16>
    %cst_101 = arith.constant dense<0.000000e+00> : vector<8x32xf32>
    %183 = tpu.matmul %173, %182, %cst_101 {dimension_numbers = #tpu.dot_dimension_numbers<[1], [0], [0], [1], [0, 0, 1, 1], [], []>} : vector<8x32xbf16>, vector<32x32xbf16>, vector<8x32xf32> -> vector<8x32xf32>
    %c1_102 = arith.constant 1 : index
    %c0_103 = arith.constant 0 : index
    %c0_104 = arith.constant 0 : index
    %184 = vector.load %arg10[%c1_102, %c0_103, %c0_104] : memref<2x1x32xf32, #tpu.memory_space<vmem>>, vector<1x1x32xf32>
    %185 = vector.shape_cast %184 : vector<1x1x32xf32> to vector<1x32xf32>
    %186 = vector.broadcast %185 : vector<1x32xf32> to vector<8x32xf32>
    %187 = arith.addf %183, %186 : vector<8x32xf32>
    %c1_105 = arith.constant 1 : index
    %c0_106 = arith.constant 0 : index
    %c0_107 = arith.constant 0 : index
    %188 = vector.load %arg11[%c1_105, %c0_106, %c0_107] : memref<2x32x32xbf16, #tpu.memory_space<vmem>>, vector<1x32x32xbf16>
    %189 = vector.shape_cast %188 : vector<1x32x32xbf16> to vector<32x32xbf16>
    %cst_108 = arith.constant dense<0.000000e+00> : vector<8x32xf32>
    %190 = tpu.matmul %173, %189, %cst_108 {dimension_numbers = #tpu.dot_dimension_numbers<[1], [0], [0], [1], [0, 0, 1, 1], [], []>} : vector<8x32xbf16>, vector<32x32xbf16>, vector<8x32xf32> -> vector<8x32xf32>
    %c1_109 = arith.constant 1 : index
    %c0_110 = arith.constant 0 : index
    %c0_111 = arith.constant 0 : index
    %191 = vector.load %arg12[%c1_109, %c0_110, %c0_111] : memref<2x1x32xf32, #tpu.memory_space<vmem>>, vector<1x1x32xf32>
    %192 = vector.shape_cast %191 : vector<1x1x32xf32> to vector<1x32xf32>
    %193 = vector.broadcast %192 : vector<1x32xf32> to vector<8x32xf32>
    %194 = arith.addf %190, %193 : vector<8x32xf32>
    %195 = vector.shape_cast %180 : vector<8x32xf32> to vector<8x2x16xf32>
    %196 = arith.truncf %195 : vector<8x2x16xf32> to vector<8x2x16xbf16>
    %197 = vector.shape_cast %187 : vector<8x32xf32> to vector<8x2x16xf32>
    %198 = arith.truncf %197 : vector<8x2x16xf32> to vector<8x2x16xbf16>
    %199 = vector.shape_cast %194 : vector<8x32xf32> to vector<8x2x16xf32>
    %200 = arith.truncf %199 : vector<8x2x16xf32> to vector<8x2x16xbf16>
    "tpu.trace_start"() <{level = 10 : i32, message = "qnd,knd->nqk"}> : () -> ()
    %cst_112 = arith.constant dense<0.000000e+00> : vector<2x8x8xf32>
    %201 = tpu.matmul %196, %198, %cst_112 {dimension_numbers = #tpu.dot_dimension_numbers<[2], [2], [0], [0], [0, 1, 0, 0, 1, 0], [1], [1]>} : vector<8x2x16xbf16>, vector<8x2x16xbf16>, vector<2x8x8xf32> -> vector<2x8x8xf32>
    "tpu.trace_stop"() : () -> ()
    %202 = vector.shape_cast %39 : vector<1x8xf32> to vector<1x1x8xf32>
    %203 = vector.broadcast %202 : vector<1x1x8xf32> to vector<2x8x8xf32>
    %204 = arith.addf %201, %203 : vector<2x8x8xf32>
    %cst_113 = arith.constant dense<0xFF800000> : vector<2x8xf32>
    %205 = vector.multi_reduction <maximumf>, %204, %cst_113 [2] : vector<2x8x8xf32> to vector<2x8xf32>
    %206 = vector.shape_cast %205 : vector<2x8xf32> to vector<2x8x1xf32>
    %207 = vector.broadcast %206 : vector<2x8x1xf32> to vector<2x8x8xf32>
    %208 = arith.subf %204, %207 : vector<2x8x8xf32>
    %209 = math.exp %208 : vector<2x8x8xf32>
    %cst_114 = arith.constant dense<0.000000e+00> : vector<2x8xf32>
    %210 = vector.multi_reduction <add>, %209, %cst_114 [2] : vector<2x8x8xf32> to vector<2x8xf32>
    %211 = vector.shape_cast %210 : vector<2x8xf32> to vector<2x8x1xf32>
    %212 = tpu.reciprocal %211 {approx = true} : vector<2x8x1xf32> -> vector<2x8x1xf32>
    %213 = vector.broadcast %212 : vector<2x8x1xf32> to vector<2x8x8xf32>
    %214 = arith.mulf %209, %213 : vector<2x8x8xf32>
    %215 = arith.truncf %214 : vector<2x8x8xf32> to vector<2x8x8xbf16>
    "tpu.trace_start"() <{level = 10 : i32, message = "nqk,knd->qnd"}> : () -> ()
    %cst_115 = arith.constant dense<0.000000e+00> : vector<2x16x8xf32>
    %216 = tpu.matmul %200, %215, %cst_115 {dimension_numbers = #tpu.dot_dimension_numbers<[0], [2], [2], [1], [0, 1, 0, 2, 1, 1], [1], [0]>} : vector<8x2x16xbf16>, vector<2x8x8xbf16>, vector<2x16x8xf32> -> vector<2x16x8xf32>
    %217 = tpu.transpose %216, [2, 0, 1] : vector<2x16x8xf32> -> vector<8x2x16xf32>
    "tpu.trace_stop"() : () -> ()
    %218 = vector.shape_cast %217 : vector<8x2x16xf32> to vector<8x32xf32>
    %219 = arith.truncf %218 : vector<8x32xf32> to vector<8x32xbf16>
    %c1_116 = arith.constant 1 : index
    %c0_117 = arith.constant 0 : index
    %c0_118 = arith.constant 0 : index
    %220 = vector.load %arg13[%c1_116, %c0_117, %c0_118] : memref<2x32x32xbf16, #tpu.memory_space<vmem>>, vector<1x32x32xbf16>
    %221 = vector.shape_cast %220 : vector<1x32x32xbf16> to vector<32x32xbf16>
    %cst_119 = arith.constant dense<0.000000e+00> : vector<8x32xf32>
    %222 = tpu.matmul %219, %221, %cst_119 {dimension_numbers = #tpu.dot_dimension_numbers<[1], [0], [0], [1], [0, 0, 1, 1], [], []>} : vector<8x32xbf16>, vector<32x32xbf16>, vector<8x32xf32> -> vector<8x32xf32>
    %c1_120 = arith.constant 1 : index
    %c0_121 = arith.constant 0 : index
    %c0_122 = arith.constant 0 : index
    %223 = vector.load %arg14[%c1_120, %c0_121, %c0_122] : memref<2x1x32xf32, #tpu.memory_space<vmem>>, vector<1x1x32xf32>
    %224 = vector.shape_cast %223 : vector<1x1x32xf32> to vector<1x32xf32>
    %225 = vector.broadcast %224 : vector<1x32xf32> to vector<8x32xf32>
    %226 = arith.addf %222, %225 : vector<8x32xf32>
    %227 = arith.addf %172, %226 : vector<8x32xf32>
    %c1_123 = arith.constant 1 : index
    %c0_124 = arith.constant 0 : index
    %c0_125 = arith.constant 0 : index
    %228 = vector.load %arg15[%c1_123, %c0_124, %c0_125] : memref<2x1x32xf32, #tpu.memory_space<vmem>>, vector<1x1x32xf32>
    %229 = vector.shape_cast %228 : vector<1x1x32xf32> to vector<1x32xf32>
    %c1_126 = arith.constant 1 : index
    %c0_127 = arith.constant 0 : index
    %c0_128 = arith.constant 0 : index
    %230 = vector.load %arg16[%c1_126, %c0_127, %c0_128] : memref<2x1x32xf32, #tpu.memory_space<vmem>>, vector<1x1x32xf32>
    %231 = vector.shape_cast %230 : vector<1x1x32xf32> to vector<1x32xf32>
    %cst_129 = arith.constant dense<0.000000e+00> : vector<8xf32>
    %232 = vector.multi_reduction <add>, %227, %cst_129 [1] : vector<8x32xf32> to vector<8xf32>
    %233 = vector.shape_cast %232 : vector<8xf32> to vector<8x1xf32>
    %cst_130 = arith.constant 3.200000e+01 : f32
    %234 = vector.broadcast %cst_130 : f32 to vector<8x1xf32>
    %235 = arith.divf %233, %234 : vector<8x1xf32>
    %236 = vector.broadcast %235 : vector<8x1xf32> to vector<8x32xf32>
    %237 = arith.subf %227, %236 : vector<8x32xf32>
    %238 = arith.mulf %237, %237 : vector<8x32xf32>
    %cst_131 = arith.constant dense<0.000000e+00> : vector<8xf32>
    %239 = vector.multi_reduction <add>, %238, %cst_131 [1] : vector<8x32xf32> to vector<8xf32>
    %240 = vector.shape_cast %239 : vector<8xf32> to vector<8x1xf32>
    %cst_132 = arith.constant 3.200000e+01 : f32
    %241 = vector.broadcast %cst_132 : f32 to vector<8x1xf32>
    %242 = arith.divf %240, %241 : vector<8x1xf32>
    %cst_133 = arith.constant 9.99999974E-6 : f32
    %243 = vector.broadcast %cst_133 : f32 to vector<8x1xf32>
    %244 = arith.addf %242, %243 : vector<8x1xf32>
    %245 = math.rsqrt %244 : vector<8x1xf32>
    %246 = vector.broadcast %245 : vector<8x1xf32> to vector<8x32xf32>
    %247 = arith.mulf %237, %246 : vector<8x32xf32>
    %248 = vector.broadcast %229 : vector<1x32xf32> to vector<8x32xf32>
    %249 = arith.mulf %247, %248 : vector<8x32xf32>
    %250 = vector.broadcast %231 : vector<1x32xf32> to vector<8x32xf32>
    %251 = arith.addf %249, %250 : vector<8x32xf32>
    %252 = arith.truncf %251 : vector<8x32xf32> to vector<8x32xbf16>
    %c1_134 = arith.constant 1 : index
    %c0_135 = arith.constant 0 : index
    %c0_136 = arith.constant 0 : index
    %253 = vector.load %arg17[%c1_134, %c0_135, %c0_136] : memref<2x32x64xbf16, #tpu.memory_space<vmem>>, vector<1x32x64xbf16>
    %254 = vector.shape_cast %253 : vector<1x32x64xbf16> to vector<32x64xbf16>
    %cst_137 = arith.constant dense<0.000000e+00> : vector<8x64xf32>
    %255 = tpu.matmul %252, %254, %cst_137 {dimension_numbers = #tpu.dot_dimension_numbers<[1], [0], [0], [1], [0, 0, 1, 1], [], []>} : vector<8x32xbf16>, vector<32x64xbf16>, vector<8x64xf32> -> vector<8x64xf32>
    %c1_138 = arith.constant 1 : index
    %c0_139 = arith.constant 0 : index
    %c0_140 = arith.constant 0 : index
    %256 = vector.load %arg18[%c1_138, %c0_139, %c0_140] : memref<2x1x64xf32, #tpu.memory_space<vmem>>, vector<1x1x64xf32>
    %257 = vector.shape_cast %256 : vector<1x1x64xf32> to vector<1x64xf32>
    %258 = vector.broadcast %257 : vector<1x64xf32> to vector<8x64xf32>
    %259 = arith.addf %255, %258 : vector<8x64xf32>
    %cst_141 = arith.constant 5.000000e-01 : f32
    %260 = vector.broadcast %cst_141 : f32 to vector<8x64xf32>
    %261 = arith.mulf %260, %259 : vector<8x64xf32>
    %cst_142 = arith.constant 4.471500e-02 : f32
    %262 = vector.broadcast %cst_142 : f32 to vector<8x64xf32>
    %263 = arith.mulf %262, %259 : vector<8x64xf32>
    %264 = arith.mulf %263, %259 : vector<8x64xf32>
    %265 = arith.mulf %264, %259 : vector<8x64xf32>
    %266 = arith.addf %259, %265 : vector<8x64xf32>
    %cst_143 = arith.constant 0.797884583 : f32
    %267 = vector.broadcast %cst_143 : f32 to vector<8x64xf32>
    %268 = arith.mulf %267, %266 : vector<8x64xf32>
    %269 = math.tanh %268 : vector<8x64xf32>
    %cst_144 = arith.constant 1.000000e+00 : f32
    %270 = vector.broadcast %cst_144 : f32 to vector<8x64xf32>
    %271 = arith.addf %270, %269 : vector<8x64xf32>
    %272 = arith.mulf %261, %271 : vector<8x64xf32>
    %273 = arith.truncf %272 : vector<8x64xf32> to vector<8x64xbf16>
    %c1_145 = arith.constant 1 : index
    %c0_146 = arith.constant 0 : index
    %c0_147 = arith.constant 0 : index
    %274 = vector.load %arg19[%c1_145, %c0_146, %c0_147] : memref<2x64x32xbf16, #tpu.memory_space<vmem>>, vector<1x64x32xbf16>
    %275 = vector.shape_cast %274 : vector<1x64x32xbf16> to vector<64x32xbf16>
    %cst_148 = arith.constant dense<0.000000e+00> : vector<8x32xf32>
    %276 = tpu.matmul %273, %275, %cst_148 {dimension_numbers = #tpu.dot_dimension_numbers<[1], [0], [0], [1], [0, 0, 1, 1], [], []>} : vector<8x64xbf16>, vector<64x32xbf16>, vector<8x32xf32> -> vector<8x32xf32>
    %c1_149 = arith.constant 1 : index
    %c0_150 = arith.constant 0 : index
    %c0_151 = arith.constant 0 : index
    %277 = vector.load %arg20[%c1_149, %c0_150, %c0_151] : memref<2x1x32xf32, #tpu.memory_space<vmem>>, vector<1x1x32xf32>
    %278 = vector.shape_cast %277 : vector<1x1x32xf32> to vector<1x32xf32>
    %279 = vector.broadcast %278 : vector<1x32xf32> to vector<8x32xf32>
    %280 = arith.addf %276, %279 : vector<8x32xf32>
    %281 = arith.addf %251, %280 : vector<8x32xf32>
    %c1_152 = arith.constant 1 : index
    %c0_153 = arith.constant 0 : index
    %c0_154 = arith.constant 0 : index
    %282 = vector.load %arg21[%c1_152, %c0_153, %c0_154] : memref<2x1x32xf32, #tpu.memory_space<vmem>>, vector<1x1x32xf32>
    %283 = vector.shape_cast %282 : vector<1x1x32xf32> to vector<1x32xf32>
    %c1_155 = arith.constant 1 : index
    %c0_156 = arith.constant 0 : index
    %c0_157 = arith.constant 0 : index
    %284 = vector.load %arg22[%c1_155, %c0_156, %c0_157] : memref<2x1x32xf32, #tpu.memory_space<vmem>>, vector<1x1x32xf32>
    %285 = vector.shape_cast %284 : vector<1x1x32xf32> to vector<1x32xf32>
    %cst_158 = arith.constant dense<0.000000e+00> : vector<8xf32>
    %286 = vector.multi_reduction <add>, %281, %cst_158 [1] : vector<8x32xf32> to vector<8xf32>
    %287 = vector.shape_cast %286 : vector<8xf32> to vector<8x1xf32>
    %cst_159 = arith.constant 3.200000e+01 : f32
    %288 = vector.broadcast %cst_159 : f32 to vector<8x1xf32>
    %289 = arith.divf %287, %288 : vector<8x1xf32>
    %290 = vector.broadcast %289 : vector<8x1xf32> to vector<8x32xf32>
    %291 = arith.subf %281, %290 : vector<8x32xf32>
    %292 = arith.mulf %291, %291 : vector<8x32xf32>
    %cst_160 = arith.constant dense<0.000000e+00> : vector<8xf32>
    %293 = vector.multi_reduction <add>, %292, %cst_160 [1] : vector<8x32xf32> to vector<8xf32>
    %294 = vector.shape_cast %293 : vector<8xf32> to vector<8x1xf32>
    %cst_161 = arith.constant 3.200000e+01 : f32
    %295 = vector.broadcast %cst_161 : f32 to vector<8x1xf32>
    %296 = arith.divf %294, %295 : vector<8x1xf32>
    %cst_162 = arith.constant 9.99999974E-6 : f32
    %297 = vector.broadcast %cst_162 : f32 to vector<8x1xf32>
    %298 = arith.addf %296, %297 : vector<8x1xf32>
    %299 = math.rsqrt %298 : vector<8x1xf32>
    %300 = vector.broadcast %299 : vector<8x1xf32> to vector<8x32xf32>
    %301 = arith.mulf %291, %300 : vector<8x32xf32>
    %302 = vector.broadcast %283 : vector<1x32xf32> to vector<8x32xf32>
    %303 = arith.mulf %301, %302 : vector<8x32xf32>
    %304 = vector.broadcast %285 : vector<1x32xf32> to vector<8x32xf32>
    %305 = arith.addf %303, %304 : vector<8x32xf32>
    %cst_163 = arith.constant dense<0.000000e+00> : vector<1x32xf32>
    %306 = tpu.matmul %3, %305, %cst_163 {dimension_numbers = #tpu.dot_dimension_numbers<[1], [0], [0], [1], [0, 0, 1, 1], [], []>} : vector<1x8xf32>, vector<8x32xf32>, vector<1x32xf32> -> vector<1x32xf32>
    %cst_164 = arith.constant dense<0.000000e+00> : vector<1xf32>
    %307 = vector.multi_reduction <add>, %3, %cst_164 [1] : vector<1x8xf32> to vector<1xf32>
    %308 = vector.shape_cast %307 : vector<1xf32> to vector<1x1xf32>
    %cst_165 = arith.constant 9.99999971E-10 : f32
    %309 = vector.broadcast %cst_165 : f32 to vector<1x1xf32>
    %310 = arith.maximumf %308, %309 : vector<1x1xf32>
    %311 = tpu.reciprocal %310 {approx = true} : vector<1x1xf32> -> vector<1x1xf32>
    %312 = vector.broadcast %311 : vector<1x1xf32> to vector<1x32xf32>
    %313 = arith.mulf %306, %312 : vector<1x32xf32>
    %314 = arith.truncf %313 : vector<1x32xf32> to vector<1x32xbf16>
    %c0_166 = arith.constant 0 : index
    %c0_167 = arith.constant 0 : index
    %315 = vector.load %arg23[%c0_166, %c0_167] : memref<32x128xbf16, #tpu.memory_space<vmem>>, vector<32x128xbf16>
    %cst_168 = arith.constant dense<0.000000e+00> : vector<1x128xf32>
    %316 = tpu.matmul %314, %315, %cst_168 {dimension_numbers = #tpu.dot_dimension_numbers<[1], [0], [0], [1], [0, 0, 1, 1], [], []>} : vector<1x32xbf16>, vector<32x128xbf16>, vector<1x128xf32> -> vector<1x128xf32>
    %c0_169 = arith.constant 0 : index
    %c0_170 = arith.constant 0 : index
    %317 = vector.load %arg24[%c0_169, %c0_170] : memref<1x128xf32, #tpu.memory_space<vmem>>, vector<1x128xf32>
    %318 = arith.addf %316, %317 : vector<1x128xf32>
    %319 = math.tanh %318 : vector<1x128xf32>
    %320 = arith.mulf %319, %319 : vector<1x128xf32>
    %cst_171 = arith.constant dense<0.000000e+00> : vector<1xf32>
    %321 = vector.multi_reduction <add>, %320, %cst_171 [1] : vector<1x128xf32> to vector<1xf32>
    %322 = vector.shape_cast %321 : vector<1xf32> to vector<1x1xf32>
    %cst_172 = arith.constant 1.000000e-24 : f32
    %323 = vector.broadcast %cst_172 : f32 to vector<1x1xf32>
    %324 = arith.maximumf %322, %323 : vector<1x1xf32>
    %325 = math.rsqrt %324 : vector<1x1xf32>
    %326 = vector.broadcast %325 : vector<1x1xf32> to vector<1x128xf32>
    %327 = arith.mulf %319, %326 : vector<1x128xf32>
    %328 = vector.shape_cast %327 : vector<1x128xf32> to vector<1x1x128xf32>
    %c0_173 = arith.constant 0 : index
    %c0_174 = arith.constant 0 : index
    %c0_175 = arith.constant 0 : index
    %329 = vector.load %arg25[%c0_173, %c0_174, %c0_175] : memref<1x1x128xf32, #tpu.memory_space<vmem>>, vector<1x1x128xf32>
    tpu.vector_store %arg25[%c0_173, %c0_174, %c0_175], %328 {strides = array<i32>} : memref<1x1x128xf32, #tpu.memory_space<vmem>>, vector<1x1x128xf32>,
    return
  }
  func.func @transform_0(%arg0: i32) -> (i32, i32, i32) {
    %c0_i32 = arith.constant 0 : i32
    %c0_i32_0 = arith.constant 0 : i32
    %c0_i32_1 = arith.constant 0 : i32
    return %arg0, %c0_i32, %c0_i32_0 : i32, i32, i32
  }
  func.func @transform_1(%arg0: i32) -> (i32, i32, i32) {
    %c0_i32 = arith.constant 0 : i32
    %c0_i32_0 = arith.constant 0 : i32
    %c0_i32_1 = arith.constant 0 : i32
    return %arg0, %c0_i32, %c0_i32_0 : i32, i32, i32
  }
  func.func @transform_2(%arg0: i32) -> (i32, i32) {
    %c0_i32 = arith.constant 0 : i32
    %c0_i32_0 = arith.constant 0 : i32
    %c0_i32_1 = arith.constant 0 : i32
    return %c0_i32, %c0_i32_0 : i32, i32
  }
  func.func @transform_3(%arg0: i32) -> (i32, i32) {
    %c0_i32 = arith.constant 0 : i32
    %c0_i32_0 = arith.constant 0 : i32
    %c0_i32_1 = arith.constant 0 : i32
    return %c0_i32, %c0_i32_0 : i32, i32
  }
  func.func @transform_4(%arg0: i32) -> (i32, i32) {
    %c0_i32 = arith.constant 0 : i32
    %c0_i32_0 = arith.constant 0 : i32
    %c0_i32_1 = arith.constant 0 : i32
    return %c0_i32, %c0_i32_0 : i32, i32
  }
  func.func @transform_5(%arg0: i32) -> (i32, i32) {
    %c0_i32 = arith.constant 0 : i32
    %c0_i32_0 = arith.constant 0 : i32
    %c0_i32_1 = arith.constant 0 : i32
    return %c0_i32, %c0_i32_0 : i32, i32
  }
  func.func @transform_6(%arg0: i32) -> (i32, i32, i32) {
    %c0_i32 = arith.constant 0 : i32
    %c0_i32_0 = arith.constant 0 : i32
    %c0_i32_1 = arith.constant 0 : i32
    %c0_i32_2 = arith.constant 0 : i32
    return %c0_i32, %c0_i32_0, %c0_i32_1 : i32, i32, i32
  }
  func.func @transform_7(%arg0: i32) -> (i32, i32, i32) {
    %c0_i32 = arith.constant 0 : i32
    %c0_i32_0 = arith.constant 0 : i32
    %c0_i32_1 = arith.constant 0 : i32
    %c0_i32_2 = arith.constant 0 : i32
    return %c0_i32, %c0_i32_0, %c0_i32_1 : i32, i32, i32
  }
  func.func @transform_8(%arg0: i32) -> (i32, i32, i32) {
    %c0_i32 = arith.constant 0 : i32
    %c0_i32_0 = arith.constant 0 : i32
    %c0_i32_1 = arith.constant 0 : i32
    %c0_i32_2 = arith.constant 0 : i32
    return %c0_i32, %c0_i32_0, %c0_i32_1 : i32, i32, i32
  }
  func.func @transform_9(%arg0: i32) -> (i32, i32, i32) {
    %c0_i32 = arith.constant 0 : i32
    %c0_i32_0 = arith.constant 0 : i32
    %c0_i32_1 = arith.constant 0 : i32
    %c0_i32_2 = arith.constant 0 : i32
    return %c0_i32, %c0_i32_0, %c0_i32_1 : i32, i32, i32
  }
  func.func @transform_10(%arg0: i32) -> (i32, i32, i32) {
    %c0_i32 = arith.constant 0 : i32
    %c0_i32_0 = arith.constant 0 : i32
    %c0_i32_1 = arith.constant 0 : i32
    %c0_i32_2 = arith.constant 0 : i32
    return %c0_i32, %c0_i32_0, %c0_i32_1 : i32, i32, i32
  }
  func.func @transform_11(%arg0: i32) -> (i32, i32, i32) {
    %c0_i32 = arith.constant 0 : i32
    %c0_i32_0 = arith.constant 0 : i32
    %c0_i32_1 = arith.constant 0 : i32
    %c0_i32_2 = arith.constant 0 : i32
    return %c0_i32, %c0_i32_0, %c0_i32_1 : i32, i32, i32
  }
  func.func @transform_12(%arg0: i32) -> (i32, i32, i32) {
    %c0_i32 = arith.constant 0 : i32
    %c0_i32_0 = arith.constant 0 : i32
    %c0_i32_1 = arith.constant 0 : i32
    %c0_i32_2 = arith.constant 0 : i32
    return %c0_i32, %c0_i32_0, %c0_i32_1 : i32, i32, i32
  }
  func.func @transform_13(%arg0: i32) -> (i32, i32, i32) {
    %c0_i32 = arith.constant 0 : i32
    %c0_i32_0 = arith.constant 0 : i32
    %c0_i32_1 = arith.constant 0 : i32
    %c0_i32_2 = arith.constant 0 : i32
    return %c0_i32, %c0_i32_0, %c0_i32_1 : i32, i32, i32
  }
  func.func @transform_14(%arg0: i32) -> (i32, i32, i32) {
    %c0_i32 = arith.constant 0 : i32
    %c0_i32_0 = arith.constant 0 : i32
    %c0_i32_1 = arith.constant 0 : i32
    %c0_i32_2 = arith.constant 0 : i32
    return %c0_i32, %c0_i32_0, %c0_i32_1 : i32, i32, i32
  }
  func.func @transform_15(%arg0: i32) -> (i32, i32, i32) {
    %c0_i32 = arith.constant 0 : i32
    %c0_i32_0 = arith.constant 0 : i32
    %c0_i32_1 = arith.constant 0 : i32
    %c0_i32_2 = arith.constant 0 : i32
    return %c0_i32, %c0_i32_0, %c0_i32_1 : i32, i32, i32
  }
  func.func @transform_16(%arg0: i32) -> (i32, i32, i32) {
    %c0_i32 = arith.constant 0 : i32
    %c0_i32_0 = arith.constant 0 : i32
    %c0_i32_1 = arith.constant 0 : i32
    %c0_i32_2 = arith.constant 0 : i32
    return %c0_i32, %c0_i32_0, %c0_i32_1 : i32, i32, i32
  }
  func.func @transform_17(%arg0: i32) -> (i32, i32, i32) {
    %c0_i32 = arith.constant 0 : i32
    %c0_i32_0 = arith.constant 0 : i32
    %c0_i32_1 = arith.constant 0 : i32
    %c0_i32_2 = arith.constant 0 : i32
    return %c0_i32, %c0_i32_0, %c0_i32_1 : i32, i32, i32
  }
  func.func @transform_18(%arg0: i32) -> (i32, i32, i32) {
    %c0_i32 = arith.constant 0 : i32
    %c0_i32_0 = arith.constant 0 : i32
    %c0_i32_1 = arith.constant 0 : i32
    %c0_i32_2 = arith.constant 0 : i32
    return %c0_i32, %c0_i32_0, %c0_i32_1 : i32, i32, i32
  }
  func.func @transform_19(%arg0: i32) -> (i32, i32, i32) {
    %c0_i32 = arith.constant 0 : i32
    %c0_i32_0 = arith.constant 0 : i32
    %c0_i32_1 = arith.constant 0 : i32
    %c0_i32_2 = arith.constant 0 : i32
    return %c0_i32, %c0_i32_0, %c0_i32_1 : i32, i32, i32
  }
  func.func @transform_20(%arg0: i32) -> (i32, i32, i32) {
    %c0_i32 = arith.constant 0 : i32
    %c0_i32_0 = arith.constant 0 : i32
    %c0_i32_1 = arith.constant 0 : i32
    %c0_i32_2 = arith.constant 0 : i32
    return %c0_i32, %c0_i32_0, %c0_i32_1 : i32, i32, i32
  }
  func.func @transform_21(%arg0: i32) -> (i32, i32, i32) {
    %c0_i32 = arith.constant 0 : i32
    %c0_i32_0 = arith.constant 0 : i32
    %c0_i32_1 = arith.constant 0 : i32
    %c0_i32_2 = arith.constant 0 : i32
    return %c0_i32, %c0_i32_0, %c0_i32_1 : i32, i32, i32
  }
  func.func @transform_22(%arg0: i32) -> (i32, i32) {
    %c0_i32 = arith.constant 0 : i32
    %c0_i32_0 = arith.constant 0 : i32
    %c0_i32_1 = arith.constant 0 : i32
    return %c0_i32, %c0_i32_0 : i32, i32
  }
  func.func @transform_23(%arg0: i32) -> (i32, i32) {
    %c0_i32 = arith.constant 0 : i32
    %c0_i32_0 = arith.constant 0 : i32
    %c0_i32_1 = arith.constant 0 : i32
    return %c0_i32, %c0_i32_0 : i32, i32
  }
  func.func @transform_24(%arg0: i32) -> (i32, i32, i32) {
    %c0_i32 = arith.constant 0 : i32
    %c0_i32_0 = arith.constant 0 : i32
    %c0_i32_1 = arith.constant 0 : i32
    return %arg0, %c0_i32, %c0_i32_0 : i32, i32, i32
  }
}

</mosaic_0001>

<bundles_post_ra>
// kernel: contrastive_model_forward.1
= control target key start
LH: loop header
LB: loop body
LE: loop exit
PB: predicated region body
PF: predicated region fallthrough
CT: control target
= control target key end

     0   :  { %s8162_s0 = inlined_call_operand.vmem [shape: s32[2,8,1], index: 0, kind: input, shape index: {}]   ;;  %s8163_s1 = inlined_call_operand.vmem [shape: f32[2,1,8], index: 1, kind: input, shape index: {}]   ;;  %s8164_s2 = inlined_call_operand.vmem [shape: bf16[50,32], index: 2, kind: input, shape index: {}]   ;;  %s8165_s3 = inlined_call_operand.hbm [shape: f32[8,32], index: 3, kind: input, shape index: {}]   ;;  %s8166_s4 = inlined_call_operand.vmem [shape: f32[1,32], index: 4, kind: input, shape index: {}]   ;;  %s8167_s5 = inlined_call_operand.hbm [shape: f32[1,32], index: 5, kind: input, shape index: {}]   ;;  %s8168_s6 = inlined_call_operand.vmem [shape: bf16[2,32,32], index: 6, kind: input, shape index: {}]   ;;  %s8169_s7 = inlined_call_operand.vmem [shape: f32[2,1,32], index: 7, kind: input, shape index: {}]   ;;  %s8170_s8 = inlined_call_operand.vmem [shape: bf16[2,32,32], index: 8, kind: input, shape index: {}]   ;;  %s8171_s9 = inlined_call_operand.vmem [shape: f32[2,1,32], index: 9, kind: input, shape index: {}]   ;;  %s8172_s10 = inlined_call_operand.vmem [shape: bf16[2,32,32], index: 10, kind: input, shape index: {}]   ;;  %s8173_s11 = inlined_call_operand.vmem [shape: f32[2,1,32], index: 11, kind: input, shape index: {}]   ;;  %s8174_s12 = inlined_call_operand.vmem [shape: bf16[2,32,32], index: 12, kind: input, shape index: {}]   ;;  %s8175_s13 = inlined_call_operand.vmem [shape: f32[2,1,32], index: 13, kind: input, shape index: {}]   ;;  %s8176_s14 = inlined_call_operand.hbm [shape: f32[2,1,32], index: 14, kind: input, shape index: {}]   ;;  %s8177_s15 = inlined_call_operand.hbm [shape: f32[2,1,32], index: 15, kind: input, shape index: {}]   ;;  %s8178_s16 = inlined_call_operand.vmem [shape: bf16[2,32,64], index: 16, kind: input, shape index: {}]   ;;  %s8179_s17 = inlined_call_operand.vmem [shape: f32[2,1,64], index: 17, kind: input, shape index: {}]   ;;  %s8180_s18 = inlined_call_operand.vmem [shape: bf16[2,64,32], index: 18, kind: input, shape index: {}]   ;;  %s8181_s19 = inlined_call_operand.vmem [shape: f32[2,1,32], index: 19, kind: input, shape index: {}]   ;;  %s8182_s20 = inlined_call_operand.hbm [shape: f32[2,1,32], index: 20, kind: input, shape index: {}]   ;;  %s8183_s21 = inlined_call_operand.hbm [shape: f32[2,1,32], index: 21, kind: input, shape index: {}]   ;;  %s8184_s22 = inlined_call_operand.vmem [shape: bf16[32,128], index: 22, kind: input, shape index: {}]   ;;  %s8185_s23 = inlined_call_operand.hbm [shape: f32[1,128], index: 23, kind: input, shape index: {}]   ;;  %s8186_s24 = inlined_call_operand.hbm [shape: f32[2,1,128], index: 24, kind: output, shape index: {}]  }
   0x1   :  { %8212 = sst [smem:[#allocation28_spill]] %s8162_s0 }
   0x2   :  { %8213 = sst [smem:[#allocation29_spill]] %s8163_s1 }
   0x3   :  { %8214 = sst [smem:[#allocation30_spill]] %s8164_s2 }
   0x4   :  { %8215 = sst [smem:[#allocation31_spill]] %s8165_s3 }
   0x5   :  { %8216 = sst [smem:[#allocation32_spill]] %s8166_s4 }
   0x6   :  { %8217 = sst [smem:[#allocation33_spill]] %s8167_s5 }
   0x7   :  { %8218 = sst [smem:[#allocation34_spill]] %s8168_s6 }
   0x8   :  { %8219 = sst [smem:[#allocation35_spill]] %s8169_s7 }
   0x9   :  { %8220 = sst [smem:[#allocation36_spill]] %s8170_s8 }
   0xa   :  { %8221 = sst [smem:[#allocation37_spill]] %s8177_s15 }
   0xb   :  { %8222 = sst [smem:[#allocation38_spill]] %s8179_s17 }
   0xc   :  { %8223 = sst [smem:[#allocation39_spill]] %s8181_s19 }
   0xd   :  { %8224 = sst [smem:[#allocation40_spill]] %s8184_s22 }
   0xe   :  { %8225 = sst [smem:[#allocation41_spill]] %s8186_s24 }
   0xf   :  { %29 = vsyncpa [#allocation3], 0 }
  0x10   :  { %30 = vsyncpa [#allocation6], 0 }
  0x11   :  { %31 = vsyncpa [#allocation9], 0 }
  0x12   :  { %32 = vsyncpa [#allocation12], 0 }
  0x13   :  { %33 = vsyncpa [#allocation4], 0 }
  0x14   :  { %35 = vsyncpa [#allocation4 + $0x1], 0  ;;  %s7225_s5 = smov 0   ;;  %s7227_s26 = smov 0  }
  0x15   :  { %s7229_s27 = smov 0   ;;  %s7231_s28 = smov 0  }
  0x16 LB: > { %8226 = sst [smem:[#allocation20_spill]] %s7069_s5  ;;  %s7246_s6 = sadd.s32 4294967295, %s7081_s28   ;;  %s7081_s28 = sphi %s7231_s28, %s8272_s28   ;;  %s7077_s27 = sphi %s7229_s27, %s8275_s27   ;;  %s7073_s26 = sphi %s7227_s26, %s8274_s26   ;;  %s7069_s5 = sphi %s7225_s5, %s8273_s5  }
  0x17   : > { %8227 = sst [smem:[#allocation21_spill]] %s7073_s26  ;;  %s6225_s2 = sadd.s32 4294967294, %s7081_s28  }
  0x18   : > { %8228 = sst [smem:[#allocation22_spill]] %s7077_s27  ;;  %s7250_s29 = sadd.s32 1, %s7081_s28  }
  0x19   : > { %8229 = sst [smem:[#allocation23_spill]] %s7081_s28  ;;  %s562_s0 = sadd.s32 1, %s7077_s27 }
  0x1a   : > { %8230 = sst [smem:[#allocation24_spill]] %s7250_s29  ;;  %s559_s7 = ssub.s32 %s7081_s28, %s7250_s29 }
  0x1b   : > { %p572_p0 = scmp.ne.s32.totalorder %s7077_s27, %s7073_s26  ;;  %p560_p1 = scmp.eq.s32.totalorder %s559_s7, 0 }
  0x1c   : > { %p573_p2 = scmp.eq.s32.totalorder %s7246_s6, 1  ;;  %p578_p3 = scmp.ne.s32.totalorder %s7073_s26, %s7069_s5 }
  0x1d   : > { %p579_p4 = scmp.eq.s32.totalorder %s6225_s2, 1  ;;  %p6226_p7 = scmp.ge.s32.totalorder %s7081_s28, 1 }
  0x1e   : > { %s7261_s30 = scalar_select %p560_p1, %s7077_s27, %s562_s0  }
  0x1f   : > { %p7263_p5 = por %p573_p2, %p572_p0  ;;  %p7267_p6 = por %p579_p4, %p578_p3 }
  0x20   : > { %8231 = sst [smem:[#allocation25_spill]] %s7261_s30  ;;  %p586_p8 = scmp.lt.s32.totalorder %s7081_s28, 3 }
  0x21   : > { %s8232_s3 = scalar_select %p7263_p5, 1, 0 }
  0x22   : > { %s8234_s25 = scalar_select %p7267_p6, 1, 0 }
  0x23   : > { %8233 = sst [smem:[#allocation26_spill]] %s8232_s3  ;;  %p8203_p9 = scmp.eq.s32.totalorder %s7246_s6, 0 }
  0x24   : > { %8235 = sst [smem:[#allocation27_spill]] %s8234_s25  ;;  %p7274_p10 = pnand %p6226_p7, %p586_p8 }
  0x25   : > { %s7083_s4 = smov [#allocation5]   ;;  %s7084_s0 = smov [#allocation8]  }
  0x26   : > { %s8236_s8 = scalar_select %p7274_p10, 1, 0 }
  0x27   : > { %s616_s1 = sshll.u32 %s7083_s4, 4  ;;  %p6646_p11 = pneg %p7274_p10  ;;  %s617_s1 = int_to_ptr.vmem [resolvable:$true] %s616_s1 }
  0x28   : > { %s663_s7 = sshll.u32 %s7084_s0, 4  ;;  %s7085_s30 = smov [#allocation11]   ;;  %s7286_s7 = int_to_ptr.vmem [resolvable:$true] %s663_s7 }
  0x29   : > { %p7282_p12 = pnand %p8203_p9, %p6646_p11  ;;  %s7288_s27 = sshll.u32 %s7085_s30, 4  ;;  %s702_s27 = int_to_ptr.vmem [resolvable:$true] %s7288_s27 }
  0x2a   : > { %s8238_s5 = sld [smem:[#allocation33_spill]] }
  0x2b   : > { %p7298_p0 = pneg %p7282_p12 }
  0x30   : > { %s8239_s24 = smov %s8238_s5  ;;  %s6807_s4 = scalar_lea.hbm %s8238_s5, 16 }
  0x31   : > { %p6808_p13 = scmp.ne.s32.totalorder %s8239_s24, %s6807_s4  ;;  %p6814_p3 = scmp.lt.u32.totalorder %s6807_s4, %s8239_s24 }
  0x33   : > { %p6810_p1 = pnand %p7298_p0, %p6808_p13 }
  0x35   : > { %p6811_p2 = pneg %p6810_p1 }
  0x37   : > { %p6816_p4 = pnand %p6814_p3, %p6811_p2 }
  0x39   : > { %6819 = shalt.err (!%p6816_p4)
}
  0x3a   : > { %s6820_s5 = scalar_lea.vmem %s617_s1, 16  ;;  %s6827_s28 = scalar_lea.vmem %s617_s1, 32 }
  0x3b   : > { %p6821_p7 = scmp.ne.s32.totalorder %s617_s1, %s6820_s5  ;;  %p6828_p9 = scmp.lt.s32.totalorder %s617_s1, %s617_s1 }
  0x3c   : > { %p6829_p6 = scmp.lt.s32.totalorder %s6827_s28, %s6820_s5 }
  0x3d   : > { %p6823_p8 = pnand %p6821_p7, %p7298_p0 }
  0x3e   : > { %p6830_p5 = por %p6829_p6, %p6828_p9 }
  0x3f   : > { %p6824_p11 = pneg %p6823_p8 }
  0x41   : > { %p6831_p10 = pnand %p6830_p5, %p6824_p11 }
  0x43   : > { %6834 = shalt.err (!%p6831_p10)
}
  0x44   : > { %6652 = dma.hbm_to_vmem [thread:$0]  (!%p7282_p12), %s8239_s24, 16, %s617_s1, [#allocation6]  }
  0x45   : > { %s8241_s15 = sld [smem:[#allocation37_spill]] }
  0x4b   : > { %s6835_s0 = scalar_lea.hbm %s8241_s15, 32 }
  0x4c   : > { %p6836_p13 = scmp.ne.s32.totalorder %s8241_s15, %s6835_s0  ;;  %p6842_p5 = scmp.lt.u32.totalorder %s6835_s0, %s8241_s15 }
  0x4e   : > { %p6838_p1 = pnand %p6836_p13, %p7298_p0 }
  0x50   : > { %p6839_p6 = pneg %p6838_p1 }
  0x52   : > { %p6844_p9 = pnand %p6842_p5, %p6839_p6 }
  0x54   : > { %6847 = shalt.err (!%p6844_p9)
}
  0x55   : > { %s6848_s1 = scalar_lea.vmem %s7286_s7, 32  ;;  %p6856_p4 = scmp.lt.s32.totalorder %s7286_s7, %s7286_s7 }
  0x56   : > { %p6849_p10 = scmp.ne.s32.totalorder %s7286_s7, %s6848_s1  ;;  %p6857_p7 = scmp.lt.s32.totalorder %s6848_s1, %s6848_s1 }
  0x58   : > { %p6851_p2 = pnand %p6849_p10, %p7298_p0  ;;  %p6858_p8 = por %p6857_p7, %p6856_p4 }
  0x5a   : > { %p6852_p3 = pneg %p6851_p2 }
  0x5c   : > { %p6859_p11 = pnand %p6858_p8, %p6852_p3 }
  0x5e   : > { %6862 = shalt.err (!%p6859_p11)
}
  0x5f   : > { %s7086_s22 = smov 16   ;;  %s7087_s29 = smov 1  }
  0x60   : > { %6658 = dma.hbm_to_vmem [thread:$0]  (!%p7282_p12), %s8241_s15, 32, %s7286_s7, [#allocation9], %s7086_s22, %s7086_s22, %s7087_s29  }
  0x61   : > { %s6863_s30 = scalar_lea.hbm %s8183_s21, 32 }
  0x62   : > { %p6864_p13 = scmp.ne.s32.totalorder %s8183_s21, %s6863_s30  ;;  %p6870_p5 = scmp.lt.u32.totalorder %s6863_s30, %s8183_s21 }
  0x64   : > { %p6866_p1 = pnand %p6864_p13, %p7298_p0 }
  0x66   : > { %p6867_p6 = pneg %p6866_p1 }
  0x68   : > { %p6872_p9 = pnand %p6870_p5, %p6867_p6 }
  0x6a   : > { %6875 = shalt.err (!%p6872_p9)
}
  0x6b   : > { %s6876_s3 = scalar_lea.vmem %s702_s27, 32  ;;  %p6884_p4 = scmp.lt.s32.totalorder %s702_s27, %s702_s27 }
  0x6c   : > { %p6877_p10 = scmp.ne.s32.totalorder %s702_s27, %s6876_s3  ;;  %p6885_p7 = scmp.lt.s32.totalorder %s6876_s3, %s6876_s3 }
  0x6e   : > { %p6879_p2 = pnand %p6877_p10, %p7298_p0  ;;  %p6886_p8 = por %p6885_p7, %p6884_p4 }
  0x70   : > { %p6880_p3 = pneg %p6879_p2 }
  0x72   : > { %p6887_p11 = pnand %p6886_p8, %p6880_p3 }
  0x74   : > { %6890 = shalt.err (!%p6887_p11)
}
  0x75   : > { %6664 = dma.hbm_to_vmem [thread:$0]  (!%p7282_p12), %s8183_s21, 32, %s702_s27, [#allocation12], %s7086_s22, %s7086_s22, %s7087_s29  }
  0x76   : > { %s7088_s25 = smov [#allocation2]   ;;  %s7089_s0 = smov [#allocation7]  }
  0x77   : > { %s602_s4 = sshll.u32 %s7088_s25, 4  ;;  %s650_s30 = sshll.u32 %s7089_s0, 4  ;;  %s603_s4 = int_to_ptr.vmem [resolvable:$true] %s602_s4  ;;  %s651_s30 = int_to_ptr.vmem [resolvable:$true] %s650_s30 }
  0x78   : > { %s8242_s1 = sld [smem:[#allocation31_spill]] }
  0x7e   : > { %s6891_s3 = scalar_lea.hbm %s8242_s1, 128 }
  0x7f   : > { %p6892_p13 = scmp.ne.s32.totalorder %s8242_s1, %s6891_s3  ;;  %p6898_p5 = scmp.lt.u32.totalorder %s6891_s3, %s8242_s1 }
  0x81   : > { %p6894_p1 = pnand %p6892_p13, %p7298_p0 }
  0x83   : > { %p6895_p6 = pneg %p6894_p1 }
  0x85   : > { %p6900_p9 = pnand %p6898_p5, %p6895_p6 }
  0x87   : > { %6903 = shalt.err (!%p6900_p9)
}
  0x88   : > { %s6904_s27 = scalar_lea.vmem %s603_s4, 128  ;;  %p6912_p4 = scmp.lt.s32.totalorder %s603_s4, %s603_s4 }
  0x89   : > { %p6905_p10 = scmp.ne.s32.totalorder %s603_s4, %s6904_s27  ;;  %p6913_p7 = scmp.lt.s32.totalorder %s6904_s27, %s6904_s27 }
  0x8b   : > { %p6907_p2 = pnand %p6905_p10, %p7298_p0  ;;  %p6914_p8 = por %p6913_p7, %p6912_p4 }
  0x8d   : > { %p6908_p3 = pneg %p6907_p2 }
  0x8f   : > { %p6915_p11 = pnand %p6914_p8, %p6908_p3 }
  0x91   : > { %6918 = shalt.err (!%p6915_p11)
}
  0x92   : > { %6649 = dma.hbm_to_vmem [thread:$0]  (!%p7282_p12), %s8242_s1, 128, %s603_s4, [#allocation3]  }
  0x93   : > { %s6919_s25 = scalar_lea.hbm %s8176_s14, 32 }
  0x94   : > { %p6920_p13 = scmp.ne.s32.totalorder %s8176_s14, %s6919_s25  ;;  %p6926_p5 = scmp.lt.u32.totalorder %s6919_s25, %s8176_s14 }
  0x96   : > { %p6922_p1 = pnand %p6920_p13, %p7298_p0 }
  0x98   : > { %p6923_p6 = pneg %p6922_p1 }
  0x9a   : > { %p6928_p9 = pnand %p6926_p5, %p6923_p6 }
  0x9c   : > { %6931 = shalt.err (!%p6928_p9)
}
  0x9d   : > { %s6932_s24 = scalar_lea.vmem %s651_s30, 32  ;;  %p6940_p4 = scmp.lt.s32.totalorder %s651_s30, %s651_s30 }
  0x9e   : > { %p6933_p10 = scmp.ne.s32.totalorder %s651_s30, %s6932_s24  ;;  %p6941_p7 = scmp.lt.s32.totalorder %s6932_s24, %s6932_s24 }
  0xa0   : > { %p6935_p2 = pnand %p6933_p10, %p7298_p0  ;;  %p6942_p8 = por %p6941_p7, %p6940_p4 }
  0xa2   : > { %p6936_p3 = pneg %p6935_p2 }
  0xa4   : > { %p6943_p11 = pnand %p6942_p8, %p6936_p3 }
  0xa6   : > { %6946 = shalt.err (!%p6943_p11)
}
  0xa7   : > { %6655 = dma.hbm_to_vmem [thread:$0]  (!%p7282_p12), %s8176_s14, 32, %s651_s30, [#allocation6], %s7086_s22, %s7086_s22, %s7087_s29  }
  0xa8   : > { %s7090_s15 = smov [#allocation10]   ;;  %s7091_s17 = smov [#allocation13]  }
  0xa9   : > { %s688_s19 = sshll.u32 %s7090_s15, 4  ;;  %s718_s7 = sshll.u32 %s7091_s17, 4  ;;  %s689_s19 = int_to_ptr.vmem [resolvable:$true] %s688_s19  ;;  %s719_s7 = int_to_ptr.vmem [resolvable:$true] %s718_s7 }
  0xaa   : > { %s6947_s5 = scalar_lea.hbm %s8182_s20, 32 }
  0xab   : > { %p6948_p13 = scmp.ne.s32.totalorder %s8182_s20, %s6947_s5  ;;  %p6954_p5 = scmp.lt.u32.totalorder %s6947_s5, %s8182_s20 }
  0xad   : > { %p6950_p1 = pnand %p6948_p13, %p7298_p0 }
  0xaf   : > { %p6951_p6 = pneg %p6950_p1 }
  0xb1   : > { %p6956_p9 = pnand %p6954_p5, %p6951_p6 }
  0xb3   : > { %6959 = shalt.err (!%p6956_p9)
}
  0xb4   : > { %s6960_s30 = scalar_lea.vmem %s689_s19, 32  ;;  %p6968_p4 = scmp.lt.s32.totalorder %s689_s19, %s689_s19 }
  0xb5   : > { %p6961_p10 = scmp.ne.s32.totalorder %s689_s19, %s6960_s30  ;;  %p6969_p7 = scmp.lt.s32.totalorder %s6960_s30, %s6960_s30 }
  0xb7   : > { %p6963_p2 = pnand %p6961_p10, %p7298_p0  ;;  %p6970_p8 = por %p6969_p7, %p6968_p4 }
  0xb9   : > { %p6964_p3 = pneg %p6963_p2 }
  0xbb   : > { %p6971_p11 = pnand %p6970_p8, %p6964_p3 }
  0xbd   : > { %6974 = shalt.err (!%p6971_p11)
}
  0xbe   : > { %6661 = dma.hbm_to_vmem [thread:$0]  (!%p7282_p12), %s8182_s20, 32, %s689_s19, [#allocation9], %s7086_s22, %s7086_s22, %s7087_s29  }
  0xbf   : > { %s6975_s0 = scalar_lea.hbm %s8185_s23, 16 }
  0xc0   : > { %p6976_p13 = scmp.ne.s32.totalorder %s8185_s23, %s6975_s0  ;;  %p6982_p5 = scmp.lt.u32.totalorder %s6975_s0, %s8185_s23 }
  0xc2   : > { %p6978_p1 = pnand %p6976_p13, %p7298_p0 }
  0xc4   : > { %p6979_p6 = pneg %p6978_p1 }
  0xc6   : > { %p6984_p9 = pnand %p6982_p5, %p6979_p6 }
  0xc8   : > { %6987 = shalt.err (!%p6984_p9)
}
  0xc9   : > { %s6988_s4 = scalar_lea.vmem %s719_s7, 16  ;;  %s6995_s22 = scalar_lea.vmem %s719_s7, 32 }
  0xca   : > { %p6989_p10 = scmp.ne.s32.totalorder %s719_s7, %s6988_s4  ;;  %p6996_p4 = scmp.lt.s32.totalorder %s719_s7, %s719_s7 }
  0xcb   : > { %p6997_p7 = scmp.lt.s32.totalorder %s6995_s22, %s6988_s4 }
  0xcc   : > { %p6991_p2 = pnand %p6989_p10, %p7298_p0 }
  0xcd   : > { %p6998_p8 = por %p6997_p7, %p6996_p4 }
  0xce   : > { %p6992_p3 = pneg %p6991_p2 }
  0xd0   : > { %p6999_p11 = pnand %p6998_p8, %p6992_p3 }
  0xd2   : > { %7002 = shalt.err (!%p6999_p11)
}
  0xd3   : > { %6667 = dma.hbm_to_vmem [thread:$0]  (!%p7282_p12), %s8185_s23, 16, %s719_s7, [#allocation12]  }
  0xd4   : > { %p8243_p13 = scmp.ne.s32.totalorder %s8236_s8, 0 }
  0xd5   : > { %p8244_p1 = scmp.eq.s32.totalorder (!%p8243_p13), %s7246_s6, 0 }
  0xd6   : > { %744 = sbr.rel (%p8243_p13) target bundleno = 7517 (0x1d5d), region = 116 }
  0xdd   : > { %7048 = dma.done.wait (%p8244_p1), [#allocation3], 128   ;;  %p8245_p0 = pmov %p8244_p1 }
  0xdf   : > { %7050 = vsyncadd (%p8245_p0), [#allocation3], 4294967168  ;;  %p8246_p6 = pmov %p8245_p0 }
  0xe0   : > { %p8247_p5 = pmov %p8245_p0 }
  0xe1   : > { %7052 = dma.done.wait (%p8246_p6), [#allocation6], 48  }
  0xe2   : > { %7054 = vsyncadd (%p8247_p5), [#allocation6], 4294967248  ;;  %p8248_p9 = pmov %p8245_p0 }
  0xe3   : > { %p8249_p12 = pmov %p8245_p0 }
  0xe4   : > { %7056 = dma.done.wait (%p8248_p9), [#allocation9], 64  }
  0xe5   : > { %7058 = vsyncadd (%p8249_p12), [#allocation9], 4294967232  ;;  %p8250_p10 = pmov %p8245_p0 }
  0xe6   : > { %p8251_p2 = pmov %p8245_p0 }
  0xe7   : > { %7060 = dma.done.wait (%p8250_p10), [#allocation12], 48  }
  0xe8   : > { %7062 = vsyncadd (%p8251_p2), [#allocation12], 4294967248  ;;  %p835_p3 = scmp.lt.s32.totalorder %s7246_s6, 1  ;;  %v7092_v0 = vmov 0   ;;  %v7093_v1 = vmov 0.0   ;;  %s8252_s30 = sld [smem:[#allocation28_spill]]  ;;  %v845_v8 = vlaneseq }
  0xe9   : > { %6735 = vset.pattern.permute.xlu0 %v7092_v0  ;;  %6439 = vmatprep.subr.bf16.mxu0 %v7093_v1  ;;  %s8253_s25 = sld [smem:[#allocation30_spill]]  ;;  %vm887_vm0 = vcmask 1040384   ;;  %vm7094_vm1 = vmmov 0   ;;  %vm883_vm3 = vcmask 408576   ;;  %v861_v13 = vld [vmem:[#allocation2] sm:$0xff]  ;;  %vm933_vm4 = vcmask 261120  }
  0xea   : > { %s7462_s26 = scalar_select %p835_p3, %s7246_s6, 1  ;;  %6451 = vmatprep.subr.bf16.mxu1 %v7093_v1  ;;  %6447 = vmatprep.mubr.msk.bf16.mxu0 %vm7094_vm1, %v7093_v1  ;;  %v846_v9 = vand.u32 127, %v845_v8  ;;  %v6741_v26 = vld [vmem:[%s8172_s10] sm:$0xff]   ;;  %v6743_v28 = vld [vmem:[%s8172_s10 + $0x8] sm:$0xff]   ;;  %v7096_v55 = vmov 1983009808  }
  0xeb   : > { %6455 = vmatprep.mubr.msk.bf16.mxu1 %vm7094_vm1, %v7093_v1  ;;  %s8254_s19 = sld [smem:[#allocation34_spill]]  ;;  %s8255_s5 = sld [smem:[#allocation32_spill]]  ;;  %v6251_v35 = vld [vmem:[#allocation5] ss:$0 sm:$0xff]  ;;  %v6256_v49 = vld [vmem:[%s8171_s9] ss:$0 sm:$0xff]  ;;  %v1163_v56 = vunpack.c.l.s4 %v7096_v55 }
  0xec   : > { %s6243_s8 = sshll.u32 %s7462_s26, 3  ;;  %s8256_s24 = sld [smem:[#allocation36_spill]]  ;;  %v7097_v57 = vmov 1934713408   ;;  %v7543_v60 = vshrl.u32 %v845_v8, 7  ;;  %vm2109_vm5 = vcmask 130048  }
  0xed   : > { %s7095_s2 = smov 112   ;;  %v1194_v58 = vunpack.c.l.s4 %v7097_v57  ;;  %v1164_v59 = vunpack.c.0.s8 %v1163_v56  ;;  %s8259_s3 = sld [smem:[#allocation29_spill]]  ;;  %vm2196_vm6 = vcmask 64512   ;;  %vm3369_vm7 = vcmask 523264  }
  0xee   : > { %s838_s27 = scalar_lea.vmem %s8252_s30, %s6243_s8  ;;  %s7098_s7 = smov 16   ;;  %vm6002_vm8 = vcmask 57344  }
  0xef   : > { %v843_v2 = vld [vmem:[%s838_s27] sm:$0xff]  ;;  %v6737_v4 = vld [vmem:[%s8253_s25 + $0x8] sm:$0xff]   ;;  %v6739_v5 = vld [vmem:[%s8253_s25 + $0x18] ss:$0 sps:$4 sm:$0x11]   ;;  %v1195_v61 = vunpack.c.0.s8 %v1194_v58  ;;  %v7546_v62 = vsub.s32 %v1164_v59, %v7543_v60  ;;  %s8257_s27 = sld [smem:[#allocation35_spill]] }
  0xf0   : > { %848 = vperm.xlu0 %6735, %v843_v2   ;;  %v6736_v3 = vld [vmem:[%s8253_s25] sm:$0xff]   ;;  %v6738_v6 = vld [vmem:[%s8253_s25 + $0x10] sm:$0xff]   ;;  %v889_v7 = vsel %vm887_vm0, %v6739_v5, 0  ;;  %s8260_s28 = sld [smem:[#allocation38_spill]]  ;;  %s8262_s29 = sld [smem:[#allocation39_spill]] }
  0xf1   : > { %6440 = vmatpush3.bf16.msra.mxu0 %v6736_v3  ;;  %v6740_v25 = vld [vmem:[%s8254_s19] sm:$0xff]   ;;  %v6742_v27 = vld [vmem:[%s8254_s19 + $0x8] sm:$0xff]   ;;  %v7549_v2 = vsub.s32 %v1195_v61, %v7543_v60  ;;  %s8263_s30 = sld [smem:[#allocation40_spill]]  ;;  %s8264_s17 = sld [smem:[#allocation21_spill]] }
  0xf2   : > { %6441 = vmatprep.subr.bf16.mxu0 %v7093_v1  ;;  %6452 = vmatpush3.bf16.msra.mxu1 %v6740_v25  ;;  %v6250_v33 = vld [vmem:[%s8255_s5] ss:$0 sm:$0xff]  ;;  %v6745_v40 = vld [vmem:[%s8256_s24 + $0x8] sm:$0xff]   ;;  %s8265_s0 = sld [smem:[#allocation26_spill]]  ;;  %s6370_s5 = sshll.u32 %s7246_s6, 4 }
  0xf3   : > { %6453 = vmatprep.subr.bf16.mxu1 %v7093_v1  ;;  %v6744_v38 = vld [vmem:[%s8256_s24] sm:$0xff]   ;;  %s7664_s4 = scalar_lea.vmem %s8259_s3, %s7462_s26  ;;  %s8266_s8 = sld [smem:[#allocation41_spill]] }
  0xf4   : > { %s7099_s6 = smov [#allocation14]  }
  0xf5   : > { %6442 = vmatpush3.bf16.msra.mxu0 %v6737_v4  ;;  %s8258_s15 = smov %s8257_s27 }
  0xf6   : > { %6443 = vmatprep.subr.bf16.mxu0 %v7093_v1  ;;  %6454 = vmatpush3.bf16.msra.mxu1 %v6742_v27  ;;  %s8261_s3 = smov %s8260_s28 }
  0xf7   : > { %6459 = vmatprep.subr.bf16.mxu1 %v7093_v1 }
  0xf8   : > { %p8267_p7 = scmp.ne.s32.totalorder %s8265_s0, 0 }
  0xf9   : > { %6444 = vmatpush3.bf16.msra.mxu0 %v6738_v6 }
  0xfa   : > { %6445 = vmatprep.subr.bf16.mxu0 %v7093_v1 }
  0xfd   : > { %6446 = vmatpush3.bf16.msra.mxu0 %v889_v7 }
  0xfe   : > { %6467 = vmatprep.subr.bf16.mxu0 %v7093_v1 }
 0x16f   : > { %v849_v10 = vpop.permute.xlu0 %848 }
 0x170   : > { %vm850_vm2 = vcmp.eq.s32.totalorder %v846_v9, %v849_v10 }
 0x171   : > { %v6244_v11 = vsel %vm850_vm2, 1.0, %v7093_v1 }
 0x172   : > { %v853_v12 = vpack.c.bf16 %v6244_v11, %v6244_v11 }
 0x174   : > { %6448 = vmatmul.mubr.msk.bf16.vlgmr.msra.gmra.mrb[0].mxu0 %vm883_vm3, %v853_v12 }
 0x175   : > { %6471 = vmatprep.mubr.msk.bf16.mxu0 %vm7094_vm1, %v7093_v1  ;;  %6468 = vmatpush3.bf16.msra.mxu0 %v6741_v26 }
 0x176   : > { %6469 = vmatprep.subr.bf16.mxu0 %v7093_v1 }
 0x179   : > { %6470 = vmatpush3.bf16.msra.mxu0 %v6743_v28 }
 0x17a   : > { %6481 = vmatprep.subr.bf16.mxu0 %v7093_v1 }
 0x247   : > { %v925_v14 = vpop.f32.mrb[0].mxu0 }
 0x248   : > { %v926_v15 = vadd.f32 %v925_v14, %v861_v13  ;;  %v6449_v16 = vpop.f32.mrb[1].mxu0 }
 0x249   : > { %v928_v17 = vpop.f32.mrb[2].mxu0 }
 0x24a   : > { %v6450_v18 = vpop.f32.mrb[3].mxu0  ;;  %v934_v19 = vsel %vm933_vm4, %v926_v15, 0.0 }
 0x24b   : > { %935 = vadd.xlane.f32.xlu0 %v934_v19  ;;  %v6252_v19 = vld [vmem:[%s8257_s27] ss:$0 sm:$0xff] }
 0x2d8   : > { %v936_v20 = vpop.xlane.xlu0 %935 }
 0x2d9   : > { %v938_v21 = vmul.f32 0.03125, %v936_v20 }
 0x2db   : > { %v939_v22 = vsub.f32 %v926_v15, %v938_v21 }
 0x2dd   : > { %v940_v23 = vmul.f32 %v939_v22, %v939_v22 }
 0x2df   : > { %v941_v24 = vsel %vm933_vm4, %v940_v23, 0.0 }
 0x2e0   : > { %942 = vadd.xlane.f32.xlu1 %v941_v24 }
 0x36d   : > { %v943_v29 = vpop.xlane.xlu1 %942 }
 0x36e   : > { %v944_v30 = vmul.f32 0.03125, %v943_v29 }
 0x370   : > { %v945_v31 = vadd.f32 1e-05, %v944_v30 }
 0x372   : > { %6770 = vrsqrt.f32 %v945_v31 }
 0x37c   : > { %v6771_v32 = vpop.eup %6770 }
 0x37d   : > { %v947_v34 = vmul.f32 %v6771_v32, %v939_v22 }
 0x37f   : > { %v954_v36 = vmul.f32 %v6250_v33, %v947_v34 }
 0x381   : > { %v7515_v37 = vadd.f32 %v6251_v35, %v954_v36 }
 0x383   : > { %v964_v39 = vpack.c.bf16 %v7515_v37, %v7515_v37 }
 0x385   : > { %6456 = vmatmul.mubr.msk.bf16.vlgmr.msra.gmra.mrb[0].mxu1 %vm933_vm4, %v964_v39  ;;  %6472 = vmatmul.mubr.msk.bf16.vlgmr.msra.gmra.mrb[4].mxu0 %vm933_vm4, %v964_v39 }
 0x386   : > { %6460 = vmatpush3.bf16.msra.mxu1 %v6744_v38  ;;  %6463 = vmatprep.mubr.msk.bf16.mxu1 %vm7094_vm1, %v7093_v1 }
 0x387   : > { %6461 = vmatprep.subr.bf16.mxu1 %v7093_v1  ;;  %6483 = vmatprep.mubr.msk.bf16.mxu0 %vm7094_vm1, %v7093_v1 }
 0x38a   : > { %6462 = vmatpush3.bf16.msra.mxu1 %v6745_v40 }
 0x38b   : > { %6475 = vmatprep.subr.bf16.mxu1 %v7093_v1 }
 0x38d   : > { %6464 = vmatmul.mubr.msk.bf16.vlgmr.msra.gmra.mrb[4].mxu1 %vm933_vm4, %v964_v39 }
 0x38e   : > { %6477 = vmatprep.mubr.msk.bf16.mxu1 %vm7094_vm1, %v7093_v1 }
 0x458   : > { %v1025_v41 = vpop.f32.mrb[0].mxu1  ;;  %v7536_v42 = vpop.f32.mrb[4].mxu0 }
 0x459   : > { %v6457_v43 = vpop.f32.mrb[1].mxu1  ;;  %v6473_v44 = vpop.f32.mrb[5].mxu0  ;;  %v7565_v23 = vadd.f32 %v6252_v19, %v1025_v41 }
 0x45a   : > { %v1028_v45 = vpop.f32.mrb[2].mxu1  ;;  %v1154_v46 = vpop.f32.mrb[6].mxu0 }
 0x45b   : > { %v6458_v47 = vpop.f32.mrb[3].mxu1  ;;  %v6474_v48 = vpop.f32.mrb[7].mxu0 }
 0x460   : > { %v1088_v50 = vpop.f32.mrb[4].mxu1 }
 0x461   : > { %v1089_v51 = vadd.f32 %v6256_v49, %v1088_v50  ;;  %v6465_v52 = vpop.f32.mrb[5].mxu1 }
 0x462   : > { %v1091_v53 = vpop.f32.mrb[6].mxu1 }
 0x463   : > { %1236 = vrot.lane.b32.xlu1 %v1089_v51, %s7095_s2  ;;  %v6466_v54 = vpop.f32.mrb[7].mxu1  ;;  %v1246_v3 = vrot.slane %v1089_v51, %v7546_v62  ;;  %v1239_v9 = vcombine.high %v1089_v51, %v7093_v1 }
 0x465   : > { %v1253_v14 = vrot.slane %v1239_v9, %v7546_v62 }
 0x4d5   : > { %v1237_v63 = vpop.permute.xlu1 %1236 }
 0x4d6   : > { %v1261_v4 = vrot.slane %v1237_v63, %v7546_v62  ;;  %v1254_v5 = vcombine.high %v1237_v63, %v7093_v1 }
 0x4d8   : > { %v1269_v6 = vcombine.low %v1246_v3, %v1261_v4  ;;  %v1270_v7 = vcombine.high %v1246_v3, %v1261_v4  ;;  %v1268_v10 = vrot.slane %v1254_v5, %v7546_v62 }
 0x4da   : > { %v1277_v8 = vrot.slane %v1269_v6, %v7549_v2  ;;  %v1284_v13 = vrot.slane %v1270_v7, %v7549_v2  ;;  %v1285_v18 = vcombine.low %v1253_v14, %v1268_v10  ;;  %v1286_v22 = vcombine.high %v1253_v14, %v1268_v10 }
 0x4dc   : > { %v1305_v11 = vpack.c.bf16 %v1277_v8, %v1277_v8  ;;  %v1301_v12 = vcombine.high %v1277_v8, %v7093_v1  ;;  %v1307_v16 = vpack.c.bf16 %v1284_v13, %v1284_v13  ;;  %v1302_v17 = vcombine.high %v1284_v13, %v7093_v1 }
 0x4dd   : > { %v1293_v21 = vrot.slane %v1285_v18, %v7549_v2  ;;  %v1300_v25 = vrot.slane %v1286_v22, %v7549_v2 }
 0x4de   : > { %1451 = vxpose.xlu1.c.b16.start.end [1/1] (short) (narrow) %v1305_v11, 16  ;;  %v1306_v15 = vpack.c.bf16 %v1301_v12, %v1301_v12  ;;  %v1308_v20 = vpack.c.bf16 %v1302_v17, %v1302_v17 }
 0x4df   : > { %v1309_v24 = vpack.c.bf16 %v1293_v21, %v1293_v21  ;;  %v1311_v26 = vpack.c.bf16 %v1300_v25, %v1300_v25  ;;  %v1303_v27 = vcombine.high %v1293_v21, %v7093_v1  ;;  %v1304_v29 = vcombine.high %v1300_v25, %v7093_v1 }
 0x4e0   : > { %1467 = vxpose.xlu0.c.b16.start.end [1/1] (short) (narrow) %v1306_v15, 16 }
 0x4e1   : > { %v1310_v28 = vpack.c.bf16 %v1303_v27, %v1303_v27  ;;  %v1312_v30 = vpack.c.bf16 %v1304_v29, %v1304_v29 }
 0x4e2   : > { %1483 = vxpose.xlu1.c.b16.start.end [1/1] (short) (narrow) %v1307_v16, 16 }
 0x4e6   : > { %1499 = vxpose.xlu1.c.b16.start.end [1/1] (short) (narrow) %v1308_v20, 16 }
 0x4e9   : > { %1158 = vrot.lane.b32.xlu0 %v7565_v23, %s7095_s2 }
 0x4ea   : > { %1515 = vxpose.xlu1.c.b16.start.end [1/1] (short) (narrow) %v1309_v24, 16 }
 0x4ee   : > { %1547 = vxpose.xlu1.c.b16.start.end [1/1] (short) (narrow) %v1311_v26, 16 }
 0x4f2   : > { %1531 = vxpose.xlu1.c.b16.start.end [1/1] (short) (narrow) %v1310_v28, 16 }
 0x4f6   : > { %1563 = vxpose.xlu1.c.b16.start.end [1/1] (short) (narrow) %v1312_v30, 16 }
 0x544   : > { %v1459_v31 = vpop.trf.xlu1 }
 0x545   : > { %v1583_v44 = vshrl.u32 %v1459_v31, 16 }
 0x546   : > { %v1475_v36 = vpop.trf.xlu0 }
 0x547   : > { %v1584_v38 = vshrl.u32 %v1475_v36, 16  ;;  %v1581_v45 = vpack.i.b16 %v1475_v36, %v1459_v31 }
 0x548   : > { %v1491_v32 = vpop.trf.xlu1 }
 0x549   : > { %v1585_v48 = vpack.i.b16 %v1584_v38, %v1583_v44  ;;  %v1591_v49 = vshrl.u32 %v1491_v32, 16 }
 0x54c   : > { %v1507_v33 = vpop.trf.xlu1 }
 0x54d   : > { %v1592_v46 = vshrl.u32 %v1507_v33, 16  ;;  %v1589_v50 = vpack.i.b16 %v1507_v33, %v1491_v32 }
 0x54f   : > { %v1593_v58 = vpack.i.b16 %v1592_v46, %v1591_v49 }
 0x550   : > { %v1523_v34 = vpop.trf.xlu1 }
 0x551   : > { %v1599_v40 = vshrl.u32 %v1523_v34, 16 }
 0x554   : > { %v1555_v35 = vpop.trf.xlu1 }
 0x555   : > { %v1607_v52 = vshrl.u32 %v1555_v35, 16 }
 0x558   : > { %v1539_v39 = vpop.trf.xlu1 }
 0x559   : > { %v1597_v41 = vpack.i.b16 %v1539_v39, %v1523_v34  ;;  %v1600_v43 = vshrl.u32 %v1539_v39, 16 }
 0x55b   : > { %v1601_v47 = vpack.i.b16 %v1600_v43, %v1599_v40  ;;  %v1611_v53 = vcombine.low %v1581_v45, %v1597_v41  ;;  %v1612_v6 = vcombine.high %v1581_v45, %v1597_v41  ;;  %v6260_v40 = vld [vmem:[%s8173_s11] ss:$0 sm:$0xff]  ;;  %v1159_v46 = vpop.permute.xlu0 %1158 }
 0x55c   : > { %v1571_v51 = vpop.trf.xlu1  ;;  %v7600_v41 = vadd.f32 %v6260_v40, %v7536_v42 }
 0x55d   : > { %v1605_v54 = vpack.i.b16 %v1571_v51, %v1555_v35  ;;  %v1608_v55 = vshrl.u32 %v1571_v51, 16  ;;  %v1679_v56 = vcombine.low %v1585_v48, %v1601_v47  ;;  %v1680_v57 = vcombine.high %v1585_v48, %v1601_v47 }
 0x55e   : > { %v1619_v4 = vrot.slane %v1611_v53, %v7546_v62  ;;  %v1626_v19 = vrot.slane %v1612_v6, %v7546_v62 }
 0x55f   : > { %v1609_v59 = vpack.i.b16 %v1608_v55, %v1607_v52  ;;  %v1627_v61 = vcombine.low %v1589_v50, %v1605_v54  ;;  %v1687_v7 = vrot.slane %v1679_v56, %v7546_v62  ;;  %v1694_v9 = vrot.slane %v1680_v57, %v7546_v62 }
 0x560   : > { %v1628_v8 = vcombine.high %v1589_v50, %v1605_v54  ;;  %v1176_v50 = vcombine.high %v1159_v46, %v7093_v1  ;;  %v1161_v52 = vcombine.high %v7565_v23, %v7093_v1  ;;  %v1183_v56 = vrot.slane %v1159_v46, %v7546_v62 }
 0x561   : > { %v1695_v63 = vcombine.low %v1593_v58, %v1609_v59  ;;  %v1696_v3 = vcombine.high %v1593_v58, %v1609_v59  ;;  %v1635_v5 = vrot.slane %v1627_v61, %v7546_v62  ;;  %v1168_v57 = vrot.slane %v7565_v23, %v7546_v62 }
 0x562   : > { %v1642_v20 = vrot.slane %v1628_v8, %v7546_v62  ;;  %v1190_v42 = vrot.slane %v1176_v50, %v7546_v62  ;;  %v1175_v55 = vrot.slane %v1161_v52, %v7546_v62 }
 0x563   : > { %v1703_v10 = vrot.slane %v1695_v63, %v7546_v62  ;;  %v1710_v11 = vrot.slane %v1696_v3, %v7546_v62  ;;  %v1643_v12 = vcombine.low %v1619_v4, %v1635_v5  ;;  %v1644_v15 = vcombine.high %v1619_v4, %v1635_v5 }
 0x564   : > { %v1659_v24 = vcombine.low %v1626_v19, %v1642_v20  ;;  %v1660_v28 = vcombine.high %v1626_v19, %v1642_v20  ;;  %v1207_v58 = vcombine.low %v1175_v55, %v1190_v42  ;;  %v1208_v59 = vcombine.high %v1175_v55, %v1190_v42 }
 0x565   : > { %v1651_v13 = vrot.slane %v1643_v12, %v7549_v2  ;;  %v1728_v14 = vcombine.high %v1694_v9, %v1710_v11  ;;  %v1711_v16 = vcombine.low %v1687_v7, %v1703_v10  ;;  %v1727_v21 = vcombine.low %v1694_v9, %v1710_v11 }
 0x566   : > { %v1658_v22 = vrot.slane %v1644_v15, %v7549_v2  ;;  %v1667_v27 = vrot.slane %v1659_v24, %v7549_v2  ;;  %v1674_v30 = vrot.slane %v1660_v28, %v7549_v2  ;;  %v1712_v33 = vcombine.high %v1687_v7, %v1703_v10 }
 0x567   : > { %1747 = vxpose.xlu1.c.b16.start.end [1/1] (short) (narrow) %v1651_v13, 16  ;;  %v1742_v17 = vrot.slane %v1728_v14, %v7549_v2  ;;  %v1719_v18 = vrot.slane %v1711_v16, %v7549_v2  ;;  %v1735_v26 = vrot.slane %v1727_v21, %v7549_v2  ;;  %v1675_v32 = vcombine.high %v1651_v13, %v7092_v0 }
 0x568   : > { %v1726_v34 = vrot.slane %v1712_v33, %v7549_v2  ;;  %v1676_v35 = vcombine.high %v1658_v22, %v7092_v0  ;;  %v1677_v36 = vcombine.high %v1667_v27, %v7092_v0  ;;  %v1678_v39 = vcombine.high %v1674_v30, %v7092_v0 }
 0x569   : > { %1955 = vxpose.xlu0.c.b16.start.end [1/1] (short) (narrow) %v1742_v17, 16  ;;  %v1743_v25 = vcombine.high %v1719_v18, %v7092_v0  ;;  %v1745_v29 = vcombine.high %v1735_v26, %v7092_v0  ;;  %v1746_v31 = vcombine.high %v1742_v17, %v7092_v0  ;;  %v1191_v3 = vcombine.low %v1168_v57, %v1183_v56 }
 0x56a   : > { %v1744_v38 = vcombine.high %v1726_v34, %v7092_v0  ;;  %v1192_v4 = vcombine.high %v1168_v57, %v1183_v56  ;;  %v1215_v5 = vrot.slane %v1207_v58, %v7549_v2  ;;  %v1222_v6 = vrot.slane %v1208_v59, %v7549_v2 }
 0x56b   : > { %1811 = vxpose.xlu1.c.b16.start.end [1/1] (short) (narrow) %v1658_v22, 16  ;;  %v1199_v9 = vrot.slane %v1191_v3, %v7549_v2 }
 0x56c   : > { %v1206_v8 = vrot.slane %v1192_v4, %v7549_v2  ;;  %v1225_v11 = vcombine.high %v1215_v5, %v7093_v1  ;;  %v1226_v23 = vcombine.high %v1222_v6, %v7093_v1 }
 0x56d   : > { %1795 = vxpose.xlu0.c.b16.start.end [1/1] (short) (narrow) %v1743_v25, 16  ;;  %v1223_v15 = vcombine.high %v1199_v9, %v7093_v1 }
 0x56e   : > { %v1224_v16 = vcombine.high %v1206_v8, %v7093_v1  ;;  %v6265_v28 = vpack.c.bf16 %v1222_v6, %v1206_v8  ;;  %v1317_v6 = vcombine.high %v7600_v41, %v7093_v1  ;;  %v1324_v8 = vrot.slane %v7600_v41, %v7546_v62 }
 0x56f   : > { %1875 = vxpose.xlu1.c.b16.start.end [1/1] (short) (narrow) %v1667_v27, 16  ;;  %v6266_v19 = vpack.c.bf16 %v1225_v11, %v1223_v15  ;;  %v6264_v27 = vpack.c.bf16 %v1215_v5, %v1199_v9 }
 0x570   : > { %v6267_v20 = vpack.c.bf16 %v1226_v23, %v1224_v16  ;;  %v1331_v23 = vrot.slane %v1317_v6, %v7546_v62 }
 0x571   : > { %1923 = vxpose.xlu0.c.b16.start.end [1/1] (short) (narrow) %v1745_v29, 16  ;;  %v1428_v33 = vrot.slane %v6266_v19, %v7546_v62 }
 0x573   : > { %1939 = vxpose.xlu1.c.b16.start.end [1/1] (short) (narrow) %v1674_v30, 16 }
 0x575   : > { %1987 = vxpose.xlu0.c.b16.start.end [1/1] (short) (narrow) %v1746_v31, 16 }
 0x577   : > { %1763 = vxpose.xlu1.c.b16.start.end [1/1] (short) (narrow) %v1719_v18, 16 }
 0x57b   : > { %1779 = vxpose.xlu1.c.b16.start.end [1/1] (short) (narrow) %v1675_v32, 16 }
 0x57f   : > { %1827 = vxpose.xlu1.c.b16.start.end [1/1] (short) (narrow) %v1726_v34, 16  ;;  %v1436_v34 = vrot.slane %v6267_v20, %v7546_v62 }
 0x583   : > { %1843 = vxpose.xlu1.c.b16.start.end [1/1] (short) (narrow) %v1676_v35, 16 }
 0x587   : > { %1891 = vxpose.xlu1.c.b16.start.end [1/1] (short) (narrow) %v1735_v26, 16 }
 0x58b   : > { %1907 = vxpose.xlu1.c.b16.start.end [1/1] (short) (narrow) %v1677_v36, 16 }
 0x58f   : > { %1859 = vxpose.xlu1.c.b16.start.end [1/1] (short) (narrow) %v1744_v38, 16 }
 0x593   : > { %1971 = vxpose.xlu1.c.b16.start.end [1/1] (short) (narrow) %v1678_v39, 16 }
 0x597   : > { %1314 = vrot.lane.b32.xlu1 %v7600_v41, %s7095_s2 }
 0x5cd   : > { %v1755_v43 = vpop.trf.xlu1 }
 0x5cf   : > { %v1963_v49 = vpop.trf.xlu0 }
 0x5d1   : > { %v1819_v44 = vpop.trf.xlu1 }
 0x5d2   : > { %v2003_v22 = vcombine.low %v1755_v43, %v1819_v44  ;;  %v1404_v43 = vrot.slane %v6264_v27, %v7546_v62  ;;  %v1412_v44 = vrot.slane %v6265_v28, %v7546_v62 }
 0x5d3   : > { %v1803_v53 = vpop.trf.xlu0 }
 0x5d4   : > { %v2010_v36 = vrot.slane %v2003_v22, %v7546_v62  ;;  %v1413_v52 = vcombine.low %v1404_v43, %v1412_v44 }
 0x5d5   : > { %v1883_v45 = vpop.trf.xlu1 }
 0x5d6   : > { %v1420_v57 = vrot.slane %v1413_v52, %v7549_v2 }
 0x5d7   : > { %v1931_v61 = vpop.trf.xlu0 }
 0x5d8   : > { %v1448_v5 = vshrl.u32 %v1420_v57, 16 }
 0x5d9   : > { %v1947_v47 = vpop.trf.xlu1 }
 0x5da   : > { %v2019_v29 = vcombine.low %v1883_v45, %v1947_v47 }
 0x5db   : > { %v1995_v10 = vpop.trf.xlu0 }
 0x5dc   : > { %v2076_v13 = vcombine.low %v1931_v61, %v1995_v10  ;;  %v2026_v45 = vrot.slane %v2019_v29, %v7546_v62  ;;  %v844_v29 = vld [vmem:[%s7664_s4] sm:$0x1] }
 0x5dd   : > { %v1771_v48 = vpop.trf.xlu1 }
 0x5de   : > { %v2083_v24 = vrot.slane %v2076_v13, %v7546_v62 }
 0x5e1   : > { %v1787_v51 = vpop.trf.xlu1 }
 0x5e5   : > { %v1835_v54 = vpop.trf.xlu1 }
 0x5e6   : > { %v2052_v17 = vcombine.low %v1771_v48, %v1835_v54 }
 0x5e8   : > { %v2059_v30 = vrot.slane %v2052_v17, %v7546_v62 }
 0x5e9   : > { %v1851_v63 = vpop.trf.xlu1 }
 0x5ea   : > { %v2011_v18 = vcombine.low %v1787_v51, %v1851_v63 }
 0x5ec   : > { %v2018_v31 = vrot.slane %v2011_v18, %v7546_v62 }
 0x5ed   : > { %v1899_v7 = vpop.trf.xlu1 }
 0x5ee   : > { %v2068_v14 = vcombine.low %v1899_v7, %v1963_v49  ;;  %v2035_v46 = vcombine.low %v2010_v36, %v2018_v31  ;;  %v1437_v49 = vcombine.low %v1428_v33, %v1436_v34 }
 0x5f0   : > { %v2075_v25 = vrot.slane %v2068_v14, %v7546_v62  ;;  %v1444_v55 = vrot.slane %v1437_v49, %v7549_v2 }
 0x5f1   : > { %v1915_v12 = vpop.trf.xlu1 }
 0x5f2   : > { %v2092_v38 = vcombine.low %v2075_v25, %v2083_v24  ;;  %v1449_v63 = vshrl.u32 %v1444_v55, 16  ;;  %v1447_v4 = vpack.i.b16 %v1444_v55, %v1420_v57 }
 0x5f4   : > { %v2099_v50 = vrot.slane %v2092_v38, %v7549_v2  ;;  %v1450_v9 = vpack.i.b16 %v1449_v63, %v1448_v5 }
 0x5f5   : > { %v1867_v21 = vpop.trf.xlu1 }
 0x5f6   : > { %v2060_v26 = vcombine.low %v1803_v53, %v1867_v21  ;;  %v2042_v53 = vrot.slane %v2035_v46, %v7549_v2 }
 0x5f8   : > { %v2067_v32 = vrot.slane %v2060_v26, %v7546_v62 }
 0x5f9   : > { %v1979_v35 = vpop.trf.xlu1 }
 0x5fa   : > { %v2084_v39 = vcombine.low %v2059_v30, %v2067_v32  ;;  %v2027_v40 = vcombine.low %v1915_v12, %v1979_v35  ;;  %v962_v30 = vsub.f32 1.0, %v844_v29  ;;  %v1394_v32 = vsub.s32 0, %v7543_v60 }
 0x5fc   : > { %v2091_v47 = vrot.slane %v2084_v39, %v7549_v2  ;;  %v2034_v48 = vrot.slane %v2027_v40, %v7546_v62  ;;  %v963_v31 = vmul.f32 -1e+09, %v962_v30 }
 0x5fe   : > { %v2043_v51 = vcombine.low %v2026_v45, %v2034_v48  ;;  %v2100_v54 = vcombine.low %v2091_v47, %v2099_v50  ;;  %v7668_v33 = vrot.slane %v963_v31, %v1394_v32 }
 0x600   : > { %v2050_v42 = vrot.slane %v2043_v51, %v7549_v2  ;;  %v2106_v61 = vshrl.u32 %v2100_v54, 16 }
 0x602   : > { %v2051_v56 = vcombine.low %v2042_v53, %v2050_v42 }
 0x604   : > { %v2103_v58 = vpack.i.b16 %v2100_v54, %v2051_v56  ;;  %v2105_v59 = vshrl.u32 %v2051_v56, 16 }
 0x606   : > { %6476 = vmatpush3.bf16.msra.mxu1 %v2103_v58  ;;  %v2107_v3 = vpack.i.b16 %v2106_v61, %v2105_v59 }
 0x607   : > { %6487 = vmatprep.subr.bf16.mxu1 %v7093_v1 }
 0x608   : > { %6482 = vmatpush3.bf16.msra.mxu0 %v2107_v3 }
 0x609   : > { %6478 = vmatmul.mubr.msk.bf16.vlgmr.msra.gmra.mrb[8].mxu1 %vm2109_vm5, %v1447_v4  ;;  %v1315_v7 = vpop.permute.xlu1 %1314  ;;  %6493 = vmatprep.subr.bf16.mxu0 %v7093_v1 }
 0x60a   : > { %v1332_v10 = vcombine.high %v1315_v7, %v7093_v1  ;;  %v1339_v11 = vrot.slane %v1315_v7, %v7546_v62  ;;  %6489 = vmatprep.mubr.msk.bf16.mxu1 %vm7094_vm1, %v7093_v1 }
 0x60b   : > { %6484 = vmatmul.mubr.msk.bf16.vlgmr.msra.gmra.mrb[8].mxu0 %vm2109_vm5, %v1450_v9 }
 0x60c   : > { %v1346_v12 = vrot.slane %v1332_v10, %v7546_v62  ;;  %v1347_v13 = vcombine.low %v1324_v8, %v1339_v11  ;;  %v1348_v14 = vcombine.high %v1324_v8, %v1339_v11  ;;  %6495 = vmatprep.mubr.msk.bf16.mxu0 %vm7094_vm1, %v7093_v1 }
 0x60e   : > { %v1364_v15 = vcombine.high %v1331_v23, %v1346_v12  ;;  %v1355_v41 = vrot.slane %v1347_v13, %v7549_v2  ;;  %v1363_v16 = vcombine.low %v1331_v23, %v1346_v12  ;;  %v1362_v19 = vrot.slane %v1348_v14, %v7549_v2 }
 0x610   : > { %v1383_v17 = vpack.c.bf16 %v1355_v41, %v1355_v41  ;;  %v1379_v18 = vcombine.high %v1355_v41, %v7093_v1  ;;  %v1371_v21 = vrot.slane %v1363_v16, %v7549_v2  ;;  %v1385_v22 = vpack.c.bf16 %v1362_v19, %v1362_v19 }
 0x611   : > { %v1380_v24 = vcombine.high %v1362_v19, %v7093_v1  ;;  %v1378_v48 = vrot.slane %v1364_v15, %v7549_v2 }
 0x612   : > { %2221 = vxpose.xlu0.c.b16.start.end [1/1] (short) (narrow) %v1383_v17, 16  ;;  %v1384_v20 = vpack.c.bf16 %v1379_v18, %v1379_v18  ;;  %v1387_v25 = vpack.c.bf16 %v1371_v21, %v1371_v21  ;;  %v1381_v27 = vcombine.high %v1371_v21, %v7093_v1 }
 0x613   : > { %v1386_v26 = vpack.c.bf16 %v1380_v24, %v1380_v24  ;;  %v1382_v49 = vcombine.high %v1378_v48, %v7093_v1  ;;  %v1389_v50 = vpack.c.bf16 %v1378_v48, %v1378_v48 }
 0x614   : > { %2237 = vxpose.xlu1.c.b16.start.end [1/1] (short) (narrow) %v1384_v20, 16  ;;  %v1388_v28 = vpack.c.bf16 %v1381_v27, %v1381_v27 }
 0x615   : > { %v1390_v51 = vpack.c.bf16 %v1382_v49, %v1382_v49 }
 0x616   : > { %2253 = vxpose.xlu0.c.b16.start.end [1/1] (short) (narrow) %v1385_v22, 16 }
 0x618   : > { %2285 = vxpose.xlu1.c.b16.start.end [1/1] (short) (narrow) %v1387_v25, 16 }
 0x61a   : > { %2269 = vxpose.xlu0.c.b16.start.end [1/1] (short) (narrow) %v1386_v26, 16 }
 0x61e   : > { %2301 = vxpose.xlu0.c.b16.start.end [1/1] (short) (narrow) %v1388_v28, 16 }
 0x678   : > { %v2229_v52 = vpop.trf.xlu0 }
 0x679   : > { %v2353_v57 = vshrl.u32 %v2229_v52, 16 }
 0x67a   : > { %v2245_v42 = vpop.trf.xlu1 }
 0x67b   : > { %v2354_v58 = vshrl.u32 %v2245_v42, 16  ;;  %v2351_v4 = vpack.i.b16 %v2245_v42, %v2229_v52 }
 0x67c   : > { %v2261_v53 = vpop.trf.xlu0 }
 0x67d   : > { %v2355_v6 = vpack.i.b16 %v2354_v58, %v2353_v57  ;;  %v2361_v9 = vshrl.u32 %v2261_v53, 16 }
 0x67e   : > { %v2293_v55 = vpop.trf.xlu1 }
 0x67f   : > { %v2369_v61 = vshrl.u32 %v2293_v55, 16 }
 0x680   : > { %v2277_v54 = vpop.trf.xlu0 }
 0x681   : > { %v2362_v8 = vshrl.u32 %v2277_v54, 16  ;;  %v2359_v12 = vpack.i.b16 %v2277_v54, %v2261_v53 }
 0x683   : > { %v2363_v41 = vpack.i.b16 %v2362_v8, %v2361_v9 }
 0x684   : > { %v2309_v56 = vpop.trf.xlu0 }
 0x685   : > { %v2370_v63 = vshrl.u32 %v2309_v56, 16  ;;  %v2367_v5 = vpack.i.b16 %v2309_v56, %v2293_v55 }
 0x687   : > { %v2371_v10 = vpack.i.b16 %v2370_v63, %v2369_v61  ;;  %v2381_v13 = vcombine.low %v2351_v4, %v2367_v5  ;;  %v2382_v32 = vcombine.high %v2351_v4, %v2367_v5 }
 0x689   : > { %v2449_v16 = vcombine.low %v2355_v6, %v2371_v10  ;;  %v2389_v20 = vrot.slane %v2381_v13, %v7546_v62 }
 0x68b   : > { %v2457_v22 = vrot.slane %v2449_v16, %v7546_v62 }
 0x6dc   : > { %v2147_v34 = vpop.f32.mrb[8].mxu1 }
 0x6dd   : > { %v7671_v35 = vadd.f32 %v2147_v34, %v7668_v33  ;;  %v6479_v36 = vpop.f32.mrb[9].mxu1 }
 0x6de   : > { %v2150_v38 = vpop.f32.mrb[10].mxu1  ;;  %v2190_v39 = vpop.f32.mrb[8].mxu0 }
 0x6df   : > { %v7674_v40 = vadd.f32 %v2190_v39, %v7668_v33  ;;  %v6480_v43 = vpop.f32.mrb[11].mxu1  ;;  %v6485_v44 = vpop.f32.mrb[9].mxu0  ;;  %v2197_v45 = vsel %vm2196_vm6, %v7671_v35, -inf  ;;  %v2450_v39 = vcombine.high %v2355_v6, %v2371_v10 }
 0x6e0   : > { %2198 = vmax.xlane.f32.xlu1 %v2197_v45  ;;  %v2193_v60 = vpop.f32.mrb[10].mxu0 }
 0x6e1   : > { %v6486_v46 = vpop.f32.mrb[11].mxu0  ;;  %v2200_v47 = vsel %vm2196_vm6, %v7674_v40, -inf }
 0x6e2   : > { %2201 = vmax.xlane.f32.xlu0 %v2200_v47  ;;  %v2396_v46 = vrot.slane %v2382_v32, %v7546_v62  ;;  %v2464_v47 = vrot.slane %v2450_v39, %v7546_v62 }
 0x70d   : > { %2317 = vxpose.xlu1.c.b16.start.end [1/1] (short) (narrow) %v1389_v50, 16 }
 0x70f   : > { %2333 = vxpose.xlu0.c.b16.start.end [1/1] (short) (narrow) %v1390_v51, 16 }
 0x76d   : > { %v7682_v59 = vpop.xlane.xlu1 %2198 }
 0x76e   : > { %v2203_v53 = vsub.f32 %v7671_v35, %v7682_v59 }
 0x76f   : > { %v7684_v3 = vpop.xlane.xlu0 %2201 }
 0x770   : > { %v2204_v54 = vsub.f32 %v7674_v40, %v7684_v3  ;;  %v2205_v57 = vmul.f32 1.442695, %v2203_v53 }
 0x772   : > { %v2207_v63 = vmul.f32 1.442695, %v2204_v54  ;;  %6772 = vpow2.f32 %v2205_v57 }
 0x773   : > { %v2325_v7 = vpop.trf.xlu1 }
 0x774   : > { %v2377_v11 = vshrl.u32 %v2325_v7, 16  ;;  %6774 = vpow2.f32 %v2207_v63 }
 0x775   : > { %v2341_v23 = vpop.trf.xlu0 }
 0x776   : > { %v2375_v14 = vpack.i.b16 %v2341_v23, %v2325_v7  ;;  %v2378_v15 = vshrl.u32 %v2341_v23, 16 }
 0x778   : > { %v2379_v17 = vpack.i.b16 %v2378_v15, %v2377_v11  ;;  %v2397_v18 = vcombine.low %v2359_v12, %v2375_v14  ;;  %v2398_v29 = vcombine.high %v2359_v12, %v2375_v14 }
 0x77a   : > { %v2465_v19 = vcombine.low %v2363_v41, %v2379_v17  ;;  %v2405_v21 = vrot.slane %v2397_v18, %v7546_v62  ;;  %v2466_v34 = vcombine.high %v2363_v41, %v2379_v17  ;;  %v2412_v44 = vrot.slane %v2398_v29, %v7546_v62 }
 0x77c   : > { %v2473_v24 = vrot.slane %v2465_v19, %v7546_v62  ;;  %v2413_v25 = vcombine.low %v2389_v20, %v2405_v21  ;;  %v2414_v31 = vcombine.high %v2389_v20, %v2405_v21  ;;  %v2480_v45 = vrot.slane %v2466_v34, %v7546_v62  ;;  %v6773_v40 = vpop.eup %6772 }
 0x77d   : > { %v2429_v49 = vcombine.low %v2396_v46, %v2412_v44  ;;  %v2430_v56 = vcombine.high %v2396_v46, %v2412_v44  ;;  %v2209_v3 = vsel %vm2196_vm6, %v6773_v40, 0.0 }
 0x77e   : > { %v2421_v26 = vrot.slane %v2413_v25, %v7549_v2  ;;  %v2481_v27 = vcombine.low %v2457_v22, %v2473_v24  ;;  %v2482_v38 = vcombine.high %v2457_v22, %v2473_v24  ;;  %v2428_v43 = vrot.slane %v2414_v31, %v7549_v2  ;;  %v6775_v59 = vpop.eup %6774 }
 0x77f   : > { %v2497_v51 = vcombine.low %v2464_v47, %v2480_v45  ;;  %v2437_v52 = vrot.slane %v2429_v49, %v7549_v2  ;;  %v2498_v61 = vcombine.high %v2464_v47, %v2480_v45  ;;  %v2444_v4 = vrot.slane %v2430_v56, %v7549_v2 }
 0x780   : > { %2517 = vxpose.xlu1.c.b16.start.end [1/1] (short) (narrow) %v2421_v26, 16  ;;  %v2489_v28 = vrot.slane %v2481_v27, %v7549_v2  ;;  %v2445_v30 = vcombine.high %v2421_v26, %v7092_v0  ;;  %v2496_v60 = vrot.slane %v2482_v38, %v7549_v2  ;;  %v2446_v48 = vcombine.high %v2428_v43, %v7092_v0 }
 0x781   : > { %v2505_v42 = vrot.slane %v2497_v51, %v7549_v2  ;;  %v2447_v55 = vcombine.high %v2437_v52, %v7092_v0  ;;  %v2512_v35 = vrot.slane %v2498_v61, %v7549_v2  ;;  %v2212_v5 = vsel %vm2196_vm6, %v6775_v59, 0.0 }
 0x782   : > { %2533 = vxpose.xlu0.c.b16.start.end [1/1] (short) (narrow) %v2489_v28, 16  ;;  %v2513_v36 = vcombine.high %v2489_v28, %v7092_v0  ;;  %v2514_v50 = vcombine.high %v2496_v60, %v7092_v0  ;;  %v2448_v6 = vcombine.high %v2444_v4, %v7092_v0 }
 0x783   : > { %v2515_v58 = vcombine.high %v2505_v42, %v7092_v0  ;;  %v2516_v7 = vcombine.high %v2512_v35, %v7092_v0 }
 0x784   : > { %2549 = vxpose.xlu1.c.b16.start.end [1/1] (short) (narrow) %v2445_v30, 16 }
 0x786   : > { %2565 = vxpose.xlu0.c.b16.start.end [1/1] (short) (narrow) %v2513_v36, 16 }
 0x788   : > { %2581 = vxpose.xlu1.c.b16.start.end [1/1] (short) (narrow) %v2428_v43, 16 }
 0x78a   : > { %2597 = vxpose.xlu0.c.b16.start.end [1/1] (short) (narrow) %v2496_v60, 16 }
 0x78c   : > { %2613 = vxpose.xlu1.c.b16.start.end [1/1] (short) (narrow) %v2446_v48, 16 }
 0x78e   : > { %2629 = vxpose.xlu0.c.b16.start.end [1/1] (short) (narrow) %v2514_v50, 16 }
 0x790   : > { %2645 = vxpose.xlu1.c.b16.start.end [1/1] (short) (narrow) %v2437_v52, 16 }
 0x792   : > { %2661 = vxpose.xlu0.c.b16.start.end [1/1] (short) (narrow) %v2505_v42, 16 }
 0x794   : > { %2677 = vxpose.xlu1.c.b16.start.end [1/1] (short) (narrow) %v2447_v55, 16 }
 0x796   : > { %2693 = vxpose.xlu0.c.b16.start.end [1/1] (short) (narrow) %v2515_v58, 16 }
 0x798   : > { %2709 = vxpose.xlu1.c.b16.start.end [1/1] (short) (narrow) %v2444_v4, 16 }
 0x79a   : > { %2725 = vxpose.xlu0.c.b16.start.end [1/1] (short) (narrow) %v2512_v35, 16 }
 0x7a5   : > { %2210 = vadd.xlane.f32.xlu1 %v2209_v3 }
 0x7a7   : > { %2213 = vadd.xlane.f32.xlu0 %v2212_v5 }
 0x7d2   : > { %2741 = vxpose.xlu1.c.b16.start.end [1/1] (short) (narrow) %v2448_v6, 16 }
 0x7d4   : > { %2757 = vxpose.xlu0.c.b16.start.end [1/1] (short) (narrow) %v2516_v7, 16 }
 0x7e6   : > { %v2525_v9 = vpop.trf.xlu1 }
 0x7e8   : > { %v2541_v8 = vpop.trf.xlu0 }
 0x7ea   : > { %v2557_v10 = vpop.trf.xlu1 }
 0x7ec   : > { %v2573_v11 = vpop.trf.xlu0 }
 0x7ee   : > { %v2589_v23 = vpop.trf.xlu1 }
 0x7ef   : > { %v2773_v25 = vcombine.low %v2525_v9, %v2589_v23 }
 0x7f0   : > { %v2605_v12 = vpop.trf.xlu0 }
 0x7f1   : > { %v2822_v22 = vcombine.low %v2541_v8, %v2605_v12  ;;  %v2780_v34 = vrot.slane %v2773_v25, %v7546_v62 }
 0x7f2   : > { %v2621_v13 = vpop.trf.xlu1 }
 0x7f3   : > { %v2781_v26 = vcombine.low %v2557_v10, %v2621_v13  ;;  %v2829_v29 = vrot.slane %v2822_v22, %v7546_v62  ;;  %v6746_v13 = vld [vmem:[%s8174_s12] sm:$0xff]  }
 0x7f4   : > { %v2637_v14 = vpop.trf.xlu0 }
 0x7f5   : > { %v2830_v24 = vcombine.low %v2573_v11, %v2637_v14  ;;  %v2788_v36 = vrot.slane %v2781_v26, %v7546_v62 }
 0x7f6   : > { %v2653_v15 = vpop.trf.xlu1 }
 0x7f7   : > { %v2837_v30 = vrot.slane %v2830_v24, %v7546_v62  ;;  %v2805_v49 = vcombine.low %v2780_v34, %v2788_v36 }
 0x7f8   : > { %v2669_v41 = vpop.trf.xlu0 }
 0x7f9   : > { %v2854_v60 = vcombine.low %v2829_v29, %v2837_v30  ;;  %v2812_v57 = vrot.slane %v2805_v49, %v7549_v2 }
 0x7fa   : > { %v2685_v16 = vpop.trf.xlu1 }
 0x7fb   : > { %v2861_v55 = vrot.slane %v2854_v60, %v7549_v2 }
 0x7fc   : > { %v2701_v17 = vpop.trf.xlu0 }
 0x7fe   : > { %v2717_v18 = vpop.trf.xlu1 }
 0x7ff   : > { %v2789_v27 = vcombine.low %v2653_v15, %v2717_v18 }
 0x800   : > { %v2733_v19 = vpop.trf.xlu0 }
 0x801   : > { %v2838_v31 = vcombine.low %v2669_v41, %v2733_v19  ;;  %v2796_v39 = vrot.slane %v2789_v27, %v7546_v62 }
 0x803   : > { %v2845_v46 = vrot.slane %v2838_v31, %v7546_v62 }
 0x832   : > { %v2211_v20 = vpop.xlane.xlu1 %2210 }
 0x833   : > { %6776 = vrcp.f32 %v2211_v20 }
 0x834   : > { %v2214_v21 = vpop.xlane.xlu0 %2213 }
 0x835   : > { %6778 = vrcp.f32 %v2214_v21 }
 0x838   : > { %v2749_v28 = vpop.trf.xlu1 }
 0x839   : > { %v2797_v32 = vcombine.low %v2685_v16, %v2749_v28 }
 0x83a   : > { %v2765_v38 = vpop.trf.xlu0 }
 0x83b   : > { %v2804_v43 = vrot.slane %v2797_v32, %v7546_v62  ;;  %v2846_v44 = vcombine.low %v2701_v17, %v2765_v38  ;;  %v6747_v32 = vld [vmem:[%s8174_s12 + $0x8] sm:$0xff]  }
 0x83d   : > { %v6777_v45 = vpop.eup %6776  ;;  %v2813_v47 = vcombine.low %v2796_v39, %v2804_v43  ;;  %v2853_v48 = vrot.slane %v2846_v44, %v7546_v62 }
 0x83e   : > { %v2217_v50 = vmul.f32 %v6777_v45, %v6773_v40 }
 0x83f   : > { %v6779_v51 = vpop.eup %6778  ;;  %v2862_v52 = vcombine.low %v2845_v46, %v2853_v48  ;;  %v2820_v53 = vrot.slane %v2813_v47, %v7549_v2 }
 0x840   : > { %v2219_v42 = vpack.c.bf16 %v2217_v50, %v2217_v50  ;;  %v2218_v54 = vmul.f32 %v6779_v51, %v6775_v59 }
 0x841   : > { %v2869_v56 = vrot.slane %v2862_v52, %v7549_v2  ;;  %v2821_v4 = vcombine.low %v2812_v57, %v2820_v53  ;;  %v6274_v53 = vld [vmem:[%s8175_s13] ss:$0 sm:$0xff] }
 0x842   : > { %v2881_v58 = vsel %vm2196_vm6, %v2219_v42, 0  ;;  %v2220_v61 = vpack.c.bf16 %v2218_v54, %v2218_v54 }
 0x843   : > { %v2870_v63 = vcombine.low %v2861_v55, %v2869_v56  ;;  %6488 = vmatpush3.bf16.xpose.msra.mxu1 %v2881_v58  ;;  %v2874_v59 = vshrl.u32 %v2821_v4, 16 }
 0x844   : > { %v2928_v35 = vsel %vm2196_vm6, %v2220_v61, 0  ;;  %6499 = vmatprep.subr.bf16.mxu1 %v7093_v1 }
 0x845   : > { %6494 = vmatpush3.bf16.xpose.msra.mxu0 %v2928_v35  ;;  %v2875_v40 = vshrl.u32 %v2870_v63, 16  ;;  %v2873_v3 = vpack.i.b16 %v2870_v63, %v2821_v4 }
 0x846   : > { %6507 = vmatprep.subr.bf16.mxu0 %v7093_v1 }
 0x847   : > { %v2876_v5 = vpack.i.b16 %v2875_v40, %v2874_v59 }
 0x84a   : > { %6490 = vmatmul.mubr.msk.bf16.vlgmr.msra.gmra.mrb[12].mxu1 %vm2196_vm6, %v2873_v3  ;;  %v6748_v3 = vld [vmem:[%s8178_s16] sm:$0xff]  }
 0x84b   : > { %6503 = vmatprep.mubr.msk.bf16.mxu1 %vm7094_vm1, %v7093_v1  ;;  %6500 = vmatpush3.bf16.msra.mxu1 %v6746_v13 }
 0x84c   : > { %6496 = vmatmul.mubr.msk.bf16.vlgmr.msra.gmra.mrb[12].mxu0 %vm2196_vm6, %v2876_v5  ;;  %6501 = vmatprep.subr.bf16.mxu1 %v7093_v1  ;;  %v6749_v5 = vld [vmem:[%s8178_s16 + $0x8] sm:$0xff]  }
 0x84d   : > { %6511 = vmatprep.mubr.msk.bf16.mxu0 %vm7094_vm1, %v7093_v1  ;;  %6508 = vmatpush3.bf16.msra.mxu0 %v6748_v3 }
 0x84e   : > { %6509 = vmatprep.subr.bf16.mxu0 %v7093_v1 }
 0x84f   : > { %6502 = vmatpush3.bf16.msra.mxu1 %v6747_v32 }
 0x850   : > { %6515 = vmatprep.subr.bf16.mxu1 %v7093_v1 }
 0x851   : > { %6510 = vmatpush3.bf16.msra.mxu0 %v6749_v5  ;;  %v6759_v5 = vld [vmem:[%s8256_s24 + $0x18] sm:$0xff]  }
 0x852   : > { %6527 = vmatprep.subr.bf16.mxu0 %v7093_v1 }
 0x91d   : > { %v2917_v6 = vpop.f32.mrb[12].mxu1 }
 0x91e   : > { %2971 = vxpose.xlu1.b32.start [1/2] (short) (narrow) %v2917_v6, 8  ;;  %v6491_v7 = vpop.f32.mrb[13].mxu1 }
 0x91f   : > { %v2920_v9 = vpop.f32.mrb[14].mxu1  ;;  %v2964_v8 = vpop.f32.mrb[12].mxu0 }
 0x920   : > { %v6492_v10 = vpop.f32.mrb[15].mxu1  ;;  %3003 = vxpose.xlu0.b32.start [1/2] (short) (narrow) %v2964_v8, 8  ;;  %v6497_v11 = vpop.f32.mrb[13].mxu0  ;;  %v6278_v8 = vld [vmem:[#allocation7] ss:$0 sm:$0xff] }
 0x921   : > { %v2967_v23 = vpop.f32.mrb[14].mxu0  ;;  %v6279_v11 = vld [vmem:[#allocation8] ss:$0 sm:$0xff] }
 0x922   : > { %2972 = vxpose.xlu1.b32.end [2/2] (short) (narrow) %v2920_v9, 8  ;;  %v6498_v12 = vpop.f32.mrb[15].mxu0 }
 0x924   : > { %3004 = vxpose.xlu0.b32.end [2/2] (short) (narrow) %v2967_v23, 8 }
 0x99e   : > { %v2987_v14 = vpop.trf.xlu1 }
 0x99f   : > { %v3035_v15 = vcombine.high %v2987_v14, %v7093_v1  ;;  %v3042_v41 = vrot.slane %v2987_v14, %v7546_v62  ;;  %v6750_v14 = vld [vmem:[%s8180_s18] sm:$0xff]  }
 0x9a0   : > { %v3019_v16 = vpop.trf.xlu0 }
 0x9a1   : > { %v3049_v17 = vrot.slane %v3035_v15, %v7546_v62  ;;  %v3050_v18 = vcombine.high %v3019_v16, %v7093_v1  ;;  %v3057_v19 = vrot.slane %v3019_v16, %v7546_v62  ;;  %v6751_v15 = vld [vmem:[%s8180_s18 + $0x8] sm:$0xff]   ;;  %v6753_v16 = vld [vmem:[%s8180_s18 + $0x18] sm:$0xff]  }
 0x9a3   : > { %v3064_v20 = vrot.slane %v3050_v18, %v7546_v62  ;;  %v3065_v21 = vcombine.low %v3042_v41, %v3057_v19  ;;  %v3066_v22 = vcombine.high %v3042_v41, %v3057_v19  ;;  %v6752_v41 = vld [vmem:[%s8180_s18 + $0x10] sm:$0xff]  }
 0x9a5   : > { %v3073_v24 = vrot.slane %v3065_v21, %v7549_v2  ;;  %v3080_v25 = vrot.slane %v3066_v22, %v7549_v2  ;;  %v3081_v26 = vcombine.low %v3049_v17, %v3064_v20  ;;  %v3082_v27 = vcombine.high %v3049_v17, %v3064_v20  ;;  %v6280_v17 = vld [vmem:[%s8260_s28] ss:$0 sm:$0xff] }
 0x9a7   : > { %v3089_v28 = vrot.slane %v3081_v26, %v7549_v2  ;;  %v3096_v29 = vrot.slane %v3082_v27, %v7549_v2  ;;  %v3101_v30 = vcombine.low %v3073_v24, %v3080_v25  ;;  %v6272_v31 = vcombine.high %v3073_v24, %v3080_v25 }
 0x9a9   : > { %v3108_v34 = vrot.slane %v3101_v30, %v7546_v62  ;;  %v3116_v36 = vrot.slane %v6272_v31, %v7546_v62  ;;  %v3117_v38 = vcombine.low %v3089_v28, %v3096_v29  ;;  %v6273_v39 = vcombine.high %v3089_v28, %v3096_v29 }
 0x9ab   : > { %v3124_v43 = vrot.slane %v3117_v38, %v7546_v62  ;;  %v3132_v44 = vrot.slane %v6273_v39, %v7546_v62  ;;  %v3133_v45 = vcombine.low %v3108_v34, %v3116_v36  ;;  %v6284_v36 = vld [vmem:[%s8262_s29] ss:$0 sm:$0xff] }
 0x9ad   : > { %v3141_v60 = vcombine.low %v3124_v43, %v3132_v44  ;;  %v3140_v46 = vrot.slane %v3133_v45, %v7549_v2 }
 0x9af   : > { %v3148_v47 = vrot.slane %v3141_v60, %v7549_v2 }
 0x9b1   : > { %v3150_v48 = vcombine.high %v3140_v46, %v3148_v47  ;;  %v3149_v49 = vcombine.low %v3140_v46, %v3148_v47 }
 0x9b3   : > { %3152 = vrot.lane.b32.xlu0 %v3150_v48, %s7098_s7 }
 0xa25   : > { %v3153_v50 = vpop.permute.xlu0 %3152 }
 0xa26   : > { %v3155_v51 = vsel %vm2109_vm5, %v3149_v49, %v3153_v50 }
 0xa27   : > { %v3156_v52 = vpack.c.bf16 %v3155_v51, %v3155_v51 }
 0xa29   : > { %6504 = vmatmul.mubr.msk.bf16.vlgmr.msra.gmra.mrb[16].mxu1 %vm933_vm4, %v3156_v52  ;;  %v6754_v52 = vld [vmem:[%s8254_s19 + $0x10] sm:$0xff]  }
 0xa2a   : > { %6523 = vmatprep.mubr.msk.bf16.mxu1 %vm7094_vm1, %v7093_v1  ;;  %6516 = vmatpush3.bf16.msra.mxu1 %v6750_v14 }
 0xa2b   : > { %6517 = vmatprep.subr.bf16.mxu1 %v7093_v1 }
 0xa2e   : > { %6518 = vmatpush3.bf16.msra.mxu1 %v6751_v15 }
 0xa2f   : > { %6519 = vmatprep.subr.bf16.mxu1 %v7093_v1 }
 0xa32   : > { %6520 = vmatpush3.bf16.msra.mxu1 %v6752_v41 }
 0xa33   : > { %6521 = vmatprep.subr.bf16.mxu1 %v7093_v1 }
 0xa36   : > { %6522 = vmatpush3.bf16.msra.mxu1 %v6753_v16 }
 0xa37   : > { %6543 = vmatprep.subr.bf16.mxu1 %v7093_v1 }
 0xafc   : > { %v3217_v42 = vpop.f32.mrb[16].mxu1 }
 0xafd   : > { %v3218_v54 = vadd.f32 %v6274_v53, %v3217_v42  ;;  %v6505_v55 = vpop.f32.mrb[17].mxu1  ;;  %v6755_v53 = vld [vmem:[%s8172_s10 + $0x10] sm:$0xff]   ;;  %v6756_v42 = vld [vmem:[%s8254_s19 + $0x18] sm:$0xff]  }
 0xafe   : > { %v3220_v56 = vpop.f32.mrb[18].mxu1 }
 0xaff   : > { %v6506_v57 = vpop.f32.mrb[19].mxu1  ;;  %v3223_v58 = vadd.f32 %v3218_v54, %v7515_v37  ;;  %v6757_v54 = vld [vmem:[%s8172_s10 + $0x18] sm:$0xff]  }
 0xb01   : > { %v3226_v61 = vsel %vm933_vm4, %v3223_v58, 0.0 }
 0xb02   : > { %3227 = vadd.xlane.f32.xlu1 %v3226_v61  ;;  %v6290_v61 = vld [vmem:[#allocation10] ss:$0 sm:$0xff] }
 0xb8f   : > { %v3228_v63 = vpop.xlane.xlu1 %3227 }
 0xb90   : > { %v3229_v4 = vmul.f32 0.03125, %v3228_v63 }
 0xb92   : > { %v3230_v35 = vsub.f32 %v3223_v58, %v3229_v4  ;;  %v6291_v4 = vld [vmem:[#allocation11] ss:$0 sm:$0xff] }
 0xb94   : > { %v3231_v40 = vmul.f32 %v3230_v35, %v3230_v35 }
 0xb96   : > { %v3232_v59 = vsel %vm933_vm4, %v3231_v40, 0.0 }
 0xb97   : > { %3233 = vadd.xlane.f32.xlu0 %v3232_v59  ;;  %v6758_v59 = vld [vmem:[%s8256_s24 + $0x10] sm:$0xff]  }
 0xc24   : > { %v3234_v37 = vpop.xlane.xlu0 %3233 }
 0xc25   : > { %v3235_v6 = vmul.f32 0.03125, %v3234_v37 }
 0xc27   : > { %v3236_v7 = vadd.f32 1e-05, %v3235_v6 }
 0xc29   : > { %6780 = vrsqrt.f32 %v3236_v7 }
 0xc33   : > { %v6781_v9 = vpop.eup %6780 }
 0xc34   : > { %v3238_v10 = vmul.f32 %v6781_v9, %v3230_v35 }
 0xc36   : > { %v3245_v23 = vmul.f32 %v6278_v8, %v3238_v10 }
 0xc38   : > { %v3252_v12 = vadd.f32 %v6279_v11, %v3245_v23 }
 0xc3a   : > { %v3253_v13 = vpack.c.bf16 %v3252_v12, %v3252_v12 }
 0xc3c   : > { %6512 = vmatmul.mubr.msk.bf16.vlgmr.msra.gmra.mrb[16].mxu0 %vm933_vm4, %v3253_v13 }
 0xc3d   : > { %6531 = vmatprep.mubr.msk.bf16.mxu0 %vm7094_vm1, %v7093_v1  ;;  %6528 = vmatpush3.bf16.msra.mxu0 %v6754_v52 }
 0xc3e   : > { %6529 = vmatprep.subr.bf16.mxu0 %v7093_v1 }
 0xc41   : > { %6530 = vmatpush3.bf16.msra.mxu0 %v6756_v42 }
 0xc42   : > { %6535 = vmatprep.subr.bf16.mxu0 %v7093_v1 }
 0xd0f   : > { %v3314_v18 = vpop.f32.mrb[16].mxu0 }
 0xd10   : > { %v3315_v19 = vadd.f32 %v6280_v17, %v3314_v18  ;;  %v6513_v20 = vpop.f32.mrb[17].mxu0 }
 0xd11   : > { %v3317_v21 = vpop.f32.mrb[18].mxu0 }
 0xd12   : > { %v3321_v22 = vmul.f32 0.044715, %v3315_v19  ;;  %v6514_v24 = vpop.f32.mrb[19].mxu0  ;;  %v3320_v30 = vmul.f32 0.5, %v3315_v19 }
 0xd14   : > { %v3322_v25 = vmul.f32 %v3321_v22, %v3315_v19 }
 0xd16   : > { %v3323_v26 = vmul.f32 %v3322_v25, %v3315_v19 }
 0xd18   : > { %v3324_v27 = vadd.f32 %v3323_v26, %v3315_v19 }
 0xd1a   : > { %v3325_v28 = vmul.f32 0.7978846, %v3324_v27 }
 0xd1c   : > { %6782 = vtanh.f32 %v3325_v28 }
 0xd26   : > { %v6783_v29 = vpop.eup %6782 }
 0xd27   : > { %v3327_v31 = vadd.f32 1.0, %v6783_v29 }
 0xd29   : > { %v3328_v32 = vmul.f32 %v3327_v31, %v3320_v30 }
 0xd2b   : > { %v3329_v34 = vpack.c.bf16 %v3328_v32, %v3328_v32 }
 0xd2d   : > { %6524 = vmatmul.mubr.msk.bf16.vlgmr.msra.gmra.mrb[20].mxu1 %vm3369_vm7, %v3329_v34 }
 0xd2e   : > { %6547 = vmatprep.mubr.msk.bf16.mxu1 %vm7094_vm1, %v7093_v1  ;;  %6544 = vmatpush3.bf16.msra.mxu1 %v6755_v53 }
 0xd2f   : > { %6545 = vmatprep.subr.bf16.mxu1 %v7093_v1 }
 0xd32   : > { %6546 = vmatpush3.bf16.msra.mxu1 %v6757_v54 }
 0xd33   : > { %6557 = vmatprep.subr.bf16.mxu1 %v7093_v1 }
 0xe00   : > { %v3407_v38 = vpop.f32.mrb[20].mxu1 }
 0xe01   : > { %v3408_v39 = vadd.f32 %v6284_v36, %v3407_v38  ;;  %v6525_v43 = vpop.f32.mrb[21].mxu1 }
 0xe02   : > { %v3410_v44 = vpop.f32.mrb[22].mxu1 }
 0xe03   : > { %v6526_v45 = vpop.f32.mrb[23].mxu1  ;;  %v3413_v60 = vadd.f32 %v3408_v39, %v3252_v12  ;;  %v6306_v12 = vld [vmem:[%s8171_s9 + $0x1] ss:$0 sm:$0xff] }
 0xe05   : > { %v3416_v46 = vsel %vm933_vm4, %v3413_v60, 0.0 }
 0xe06   : > { %3417 = vadd.xlane.f32.xlu1 %v3416_v46 }
 0xe93   : > { %v3418_v47 = vpop.xlane.xlu1 %3417 }
 0xe94   : > { %v3419_v48 = vmul.f32 0.03125, %v3418_v47 }
 0xe96   : > { %v3420_v49 = vsub.f32 %v3413_v60, %v3419_v48  ;;  %v6297_v60 = vld [vmem:[%s8258_s15 + $0x1] ss:$0 sm:$0xff] }
 0xe98   : > { %v3421_v50 = vmul.f32 %v3420_v49, %v3420_v49 }
 0xe9a   : > { %v3422_v51 = vsel %vm933_vm4, %v3421_v50, 0.0 }
 0xe9b   : > { %3423 = vadd.xlane.f32.xlu1 %v3422_v51 }
 0xf28   : > { %v3424_v55 = vpop.xlane.xlu1 %3423 }
 0xf29   : > { %v3425_v56 = vmul.f32 0.03125, %v3424_v55 }
 0xf2b   : > { %v3426_v57 = vadd.f32 1e-05, %v3425_v56 }
 0xf2d   : > { %6784 = vrsqrt.f32 %v3426_v57 }
 0xf37   : > { %v6785_v58 = vpop.eup %6784 }
 0xf38   : > { %v3428_v63 = vmul.f32 %v6785_v58, %v3420_v49 }
 0xf3a   : > { %v3435_v35 = vmul.f32 %v6290_v61, %v3428_v63 }
 0xf3c   : > { %v7827_v40 = vadd.f32 %v6291_v4, %v3435_v35 }
 0xf3e   : > { %v3443_v3 = vpack.c.bf16 %v7827_v40, %v7827_v40 }
 0xf40   : > { %6532 = vmatmul.mubr.msk.bf16.vlgmr.msra.gmra.mrb[20].mxu0 %vm933_vm4, %v3443_v3  ;;  %6548 = vmatmul.mubr.msk.bf16.vlgmr.msra.gmra.mrb[24].mxu1 %vm933_vm4, %v3443_v3 }
 0xf41   : > { %6536 = vmatpush3.bf16.msra.mxu0 %v6758_v59  ;;  %6539 = vmatprep.mubr.msk.bf16.mxu0 %vm7094_vm1, %v7093_v1 }
 0xf42   : > { %6537 = vmatprep.subr.bf16.mxu0 %v7093_v1  ;;  %6559 = vmatprep.mubr.msk.bf16.mxu1 %vm7094_vm1, %v7093_v1 }
 0xf45   : > { %6538 = vmatpush3.bf16.msra.mxu0 %v6759_v5 }
 0xf46   : > { %6551 = vmatprep.subr.bf16.mxu0 %v7093_v1 }
 0xf48   : > { %6540 = vmatmul.mubr.msk.bf16.vlgmr.msra.gmra.mrb[24].mxu0 %vm933_vm4, %v3443_v3 }
 0xf49   : > { %6553 = vmatprep.mubr.msk.bf16.mxu0 %vm7094_vm1, %v7093_v1 }
0x1013   : > { %v3506_v37 = vpop.f32.mrb[20].mxu0  ;;  %v7848_v6 = vpop.f32.mrb[24].mxu1 }
0x1014   : > { %v6533_v7 = vpop.f32.mrb[21].mxu0  ;;  %v6549_v9 = vpop.f32.mrb[25].mxu1  ;;  %v7870_v48 = vadd.f32 %v6297_v60, %v3506_v37 }
0x1015   : > { %v3509_v8 = vpop.f32.mrb[22].mxu0  ;;  %v3639_v10 = vpop.f32.mrb[26].mxu1 }
0x1016   : > { %v6534_v11 = vpop.f32.mrb[23].mxu0  ;;  %v6550_v23 = vpop.f32.mrb[27].mxu1 }
0x101b   : > { %v3571_v13 = vpop.f32.mrb[24].mxu0 }
0x101c   : > { %v3572_v14 = vadd.f32 %v6306_v12, %v3571_v13  ;;  %v6541_v15 = vpop.f32.mrb[25].mxu0 }
0x101d   : > { %v3574_v41 = vpop.f32.mrb[26].mxu0 }
0x101e   : > { %3721 = vrot.lane.b32.xlu1 %v3572_v14, %s7095_s2  ;;  %v6542_v16 = vpop.f32.mrb[27].mxu0  ;;  %v3724_v17 = vcombine.high %v3572_v14, %v7093_v1  ;;  %v3731_v19 = vrot.slane %v3572_v14, %v7546_v62 }
0x1020   : > { %v3738_v22 = vrot.slane %v3724_v17, %v7546_v62 }
0x1090   : > { %v3722_v18 = vpop.permute.xlu1 %3721 }
0x1091   : > { %v3739_v20 = vcombine.high %v3722_v18, %v7093_v1  ;;  %v3746_v21 = vrot.slane %v3722_v18, %v7546_v62 }
0x1093   : > { %v3753_v24 = vrot.slane %v3739_v20, %v7546_v62  ;;  %v3754_v25 = vcombine.low %v3731_v19, %v3746_v21  ;;  %v3755_v26 = vcombine.high %v3731_v19, %v3746_v21 }
0x1095   : > { %v3762_v27 = vrot.slane %v3754_v25, %v7549_v2  ;;  %v3771_v28 = vcombine.high %v3738_v22, %v3753_v24  ;;  %v3769_v31 = vrot.slane %v3755_v26, %v7549_v2  ;;  %v3770_v39 = vcombine.low %v3738_v22, %v3753_v24 }
0x1097   : > { %v3786_v29 = vcombine.high %v3762_v27, %v7093_v1  ;;  %v3790_v30 = vpack.c.bf16 %v3762_v27, %v3762_v27  ;;  %v3785_v34 = vrot.slane %v3771_v28, %v7549_v2  ;;  %v3792_v36 = vpack.c.bf16 %v3769_v31, %v3769_v31 }
0x1098   : > { %v3787_v38 = vcombine.high %v3769_v31, %v7093_v1  ;;  %v3778_v45 = vrot.slane %v3770_v39, %v7549_v2 }
0x1099   : > { %3930 = vxpose.xlu1.c.b16.start.end [1/1] (short) (narrow) %v3790_v30, 16  ;;  %v3791_v32 = vpack.c.bf16 %v3786_v29, %v3786_v29  ;;  %v3796_v43 = vpack.c.bf16 %v3785_v34, %v3785_v34  ;;  %v3789_v50 = vcombine.high %v3785_v34, %v7093_v1 }
0x109a   : > { %v3793_v44 = vpack.c.bf16 %v3787_v38, %v3787_v38  ;;  %v3794_v46 = vpack.c.bf16 %v3778_v45, %v3778_v45  ;;  %v3788_v47 = vcombine.high %v3778_v45, %v7093_v1 }
0x109b   : > { %3946 = vxpose.xlu0.c.b16.start.end [1/1] (short) (narrow) %v3791_v32, 16  ;;  %v3797_v51 = vpack.c.bf16 %v3789_v50, %v3789_v50 }
0x109c   : > { %v3795_v49 = vpack.c.bf16 %v3788_v47, %v3788_v47 }
0x109d   : > { %3962 = vxpose.xlu1.c.b16.start.end [1/1] (short) (narrow) %v3792_v36, 16 }
0x109f   : > { %4026 = vxpose.xlu0.c.b16.start.end [1/1] (short) (narrow) %v3796_v43, 16 }
0x10a1   : > { %3978 = vxpose.xlu1.c.b16.start.end [1/1] (short) (narrow) %v3793_v44, 16 }
0x10a5   : > { %3994 = vxpose.xlu1.c.b16.start.end [1/1] (short) (narrow) %v3794_v46, 16 }
0x10a8   : > { %3643 = vrot.lane.b32.xlu0 %v7870_v48, %s7095_s2 }
0x10a9   : > { %4010 = vxpose.xlu1.c.b16.start.end [1/1] (short) (narrow) %v3795_v49, 16 }
0x10ad   : > { %4042 = vxpose.xlu1.c.b16.start.end [1/1] (short) (narrow) %v3797_v51, 16 }
0x10ff   : > { %v3938_v52 = vpop.trf.xlu1 }
0x1100   : > { %v4062_v35 = vshrl.u32 %v3938_v52, 16 }
0x1101   : > { %v3954_v54 = vpop.trf.xlu0 }
0x1102   : > { %v4063_v56 = vshrl.u32 %v3954_v54, 16  ;;  %v4060_v59 = vpack.i.b16 %v3954_v54, %v3938_v52 }
0x1103   : > { %v3970_v53 = vpop.trf.xlu1 }
0x1104   : > { %v4064_v7 = vpack.i.b16 %v4063_v56, %v4062_v35  ;;  %v4070_v9 = vshrl.u32 %v3970_v53, 16 }
0x1105   : > { %v4034_v58 = vpop.trf.xlu0 }
0x1106   : > { %v4086_v37 = vshrl.u32 %v4034_v58, 16 }
0x1107   : > { %v3986_v42 = vpop.trf.xlu1 }
0x1108   : > { %v4071_v3 = vshrl.u32 %v3986_v42, 16  ;;  %v4068_v10 = vpack.i.b16 %v3986_v42, %v3970_v53 }
0x110a   : > { %v4072_v14 = vpack.i.b16 %v4071_v3, %v4070_v9 }
0x110b   : > { %v4002_v55 = vpop.trf.xlu1 }
0x110c   : > { %v4078_v61 = vshrl.u32 %v4002_v55, 16 }
0x110f   : > { %v4018_v57 = vpop.trf.xlu1 }
0x1110   : > { %v4076_v63 = vpack.i.b16 %v4018_v57, %v4002_v55  ;;  %v4079_v4 = vshrl.u32 %v4018_v57, 16 }
0x1112   : > { %v4080_v5 = vpack.i.b16 %v4079_v4, %v4078_v61  ;;  %v4090_v11 = vcombine.low %v4060_v59, %v4076_v63  ;;  %v4091_v22 = vcombine.high %v4060_v59, %v4076_v63  ;;  %v6315_v61 = vld [vmem:[%s8173_s11 + $0x1] ss:$0 sm:$0xff] }
0x1113   : > { %v4050_v8 = vpop.trf.xlu1  ;;  %v7903_v63 = vadd.f32 %v6315_v61, %v7848_v6 }
0x1114   : > { %v4084_v23 = vpack.i.b16 %v4050_v8, %v4034_v58  ;;  %v4087_v12 = vshrl.u32 %v4050_v8, 16  ;;  %v4158_v13 = vcombine.low %v4064_v7, %v4080_v5  ;;  %v4159_v15 = vcombine.high %v4064_v7, %v4080_v5 }
0x1115   : > { %v4098_v20 = vrot.slane %v4090_v11, %v7546_v62  ;;  %v4105_v39 = vrot.slane %v4091_v22, %v7546_v62 }
0x1116   : > { %v4088_v41 = vpack.i.b16 %v4087_v12, %v4086_v37  ;;  %v4106_v16 = vcombine.low %v4068_v10, %v4084_v23  ;;  %v4107_v17 = vcombine.high %v4068_v10, %v4084_v23  ;;  %v4166_v24 = vrot.slane %v4158_v13, %v7546_v62 }
0x1117   : > { %v4173_v25 = vrot.slane %v4159_v15, %v7546_v62  ;;  %v3646_v10 = vcombine.high %v7870_v48, %v7093_v1 }
0x1118   : > { %v4174_v18 = vcombine.low %v4072_v14, %v4088_v41  ;;  %v4175_v19 = vcombine.high %v4072_v14, %v4088_v41  ;;  %v4114_v21 = vrot.slane %v4106_v16, %v7546_v62  ;;  %v4121_v29 = vrot.slane %v4107_v17, %v7546_v62 }
0x1119   : > { %v3660_v12 = vrot.slane %v3646_v10, %v7546_v62  ;;  %v3653_v14 = vrot.slane %v7870_v48, %v7546_v62 }
0x111a   : > { %v4182_v26 = vrot.slane %v4174_v18, %v7546_v62  ;;  %v4189_v27 = vrot.slane %v4175_v19, %v7546_v62  ;;  %v4122_v28 = vcombine.low %v4098_v20, %v4114_v21  ;;  %v4123_v32 = vcombine.high %v4098_v20, %v4114_v21  ;;  %v3644_v3 = vpop.permute.xlu0 %3643 }
0x111b   : > { %v4138_v44 = vcombine.low %v4105_v39, %v4121_v29  ;;  %v4139_v49 = vcombine.high %v4105_v39, %v4121_v29  ;;  %v3661_v9 = vcombine.high %v3644_v3, %v7093_v1  ;;  %v3668_v13 = vrot.slane %v3644_v3, %v7546_v62 }
0x111c   : > { %v4130_v30 = vrot.slane %v4122_v28, %v7549_v2  ;;  %v4207_v31 = vcombine.high %v4173_v25, %v4189_v27  ;;  %v4190_v34 = vcombine.low %v4166_v24, %v4182_v26  ;;  %v4137_v43 = vrot.slane %v4123_v32, %v7549_v2 }
0x111d   : > { %v4206_v45 = vcombine.low %v4173_v25, %v4189_v27  ;;  %v4146_v47 = vrot.slane %v4138_v44, %v7549_v2  ;;  %v4153_v51 = vrot.slane %v4139_v49, %v7549_v2  ;;  %v4191_v42 = vcombine.high %v4166_v24, %v4182_v26 }
0x111e   : > { %4226 = vxpose.xlu1.c.b16.start.end [1/1] (short) (narrow) %v4130_v30, 16  ;;  %v4221_v36 = vrot.slane %v4207_v31, %v7549_v2  ;;  %v4198_v38 = vrot.slane %v4190_v34, %v7549_v2  ;;  %v4154_v53 = vcombine.high %v4130_v30, %v7092_v0  ;;  %v4155_v55 = vcombine.high %v4137_v43, %v7092_v0 }
0x111f   : > { %v4214_v46 = vrot.slane %v4206_v45, %v7549_v2  ;;  %v4205_v54 = vrot.slane %v4191_v42, %v7549_v2  ;;  %v4156_v56 = vcombine.high %v4146_v47, %v7092_v0  ;;  %v4157_v58 = vcombine.high %v4153_v51, %v7092_v0 }
0x1120   : > { %4434 = vxpose.xlu0.c.b16.start.end [1/1] (short) (narrow) %v4221_v36, 16  ;;  %v4222_v60 = vcombine.high %v4198_v38, %v7092_v0  ;;  %v4225_v52 = vcombine.high %v4221_v36, %v7092_v0  ;;  %v3675_v6 = vrot.slane %v3661_v9, %v7546_v62  ;;  %v3676_v18 = vcombine.low %v3653_v14, %v3668_v13 }
0x1121   : > { %v4224_v50 = vcombine.high %v4214_v46, %v7092_v0  ;;  %v4223_v57 = vcombine.high %v4205_v54, %v7092_v0  ;;  %v3677_v19 = vcombine.high %v3653_v14, %v3668_v13 }
0x1122   : > { %4290 = vxpose.xlu1.c.b16.start.end [1/1] (short) (narrow) %v4137_v43, 16  ;;  %v3692_v15 = vcombine.low %v3660_v12, %v3675_v6  ;;  %v3693_v41 = vcombine.high %v3660_v12, %v3675_v6  ;;  %v3684_v24 = vrot.slane %v3676_v18, %v7549_v2 }
0x1123   : > { %v3691_v25 = vrot.slane %v3677_v19, %v7549_v2 }
0x1124   : > { %4274 = vxpose.xlu0.c.b16.start.end [1/1] (short) (narrow) %v4222_v60, 16  ;;  %v3700_v20 = vrot.slane %v3692_v15, %v7549_v2  ;;  %v3707_v21 = vrot.slane %v3693_v41, %v7549_v2  ;;  %v3708_v31 = vcombine.high %v3684_v24, %v7093_v1 }
0x1125   : > { %v3709_v32 = vcombine.high %v3691_v25, %v7093_v1 }
0x1126   : > { %4354 = vxpose.xlu1.c.b16.start.end [1/1] (short) (narrow) %v4146_v47, 16  ;;  %v3710_v27 = vcombine.high %v3700_v20, %v7093_v1  ;;  %v3711_v48 = vcombine.high %v3707_v21, %v7093_v1  ;;  %v6319_v47 = vpack.c.bf16 %v3700_v20, %v3684_v24  ;;  %v6320_v49 = vpack.c.bf16 %v3707_v21, %v3691_v25 }
0x1127   : > { %v3802_v21 = vcombine.high %v7903_v63, %v7093_v1  ;;  %v3809_v25 = vrot.slane %v7903_v63, %v7546_v62 }
0x1128   : > { %4402 = vxpose.xlu0.c.b16.start.end [1/1] (short) (narrow) %v4224_v50, 16  ;;  %v6322_v39 = vpack.c.bf16 %v3711_v48, %v3709_v32 }
0x1129   : > { %v3816_v48 = vrot.slane %v3802_v21, %v7546_v62 }
0x112a   : > { %4418 = vxpose.xlu1.c.b16.start.end [1/1] (short) (narrow) %v4153_v51, 16 }
0x112c   : > { %4466 = vxpose.xlu0.c.b16.start.end [1/1] (short) (narrow) %v4225_v52, 16 }
0x112e   : > { %4242 = vxpose.xlu1.c.b16.start.end [1/1] (short) (narrow) %v4198_v38, 16  ;;  %v6321_v38 = vpack.c.bf16 %v3710_v27, %v3708_v31 }
0x1130   : > { %v3907_v42 = vrot.slane %v6321_v38, %v7546_v62 }
0x1132   : > { %4258 = vxpose.xlu1.c.b16.start.end [1/1] (short) (narrow) %v4154_v53, 16 }
0x1136   : > { %4306 = vxpose.xlu1.c.b16.start.end [1/1] (short) (narrow) %v4205_v54, 16  ;;  %v3915_v54 = vrot.slane %v6322_v39, %v7546_v62 }
0x113a   : > { %4322 = vxpose.xlu1.c.b16.start.end [1/1] (short) (narrow) %v4155_v55, 16 }
0x113e   : > { %4370 = vxpose.xlu1.c.b16.start.end [1/1] (short) (narrow) %v4214_v46, 16 }
0x1142   : > { %4386 = vxpose.xlu1.c.b16.start.end [1/1] (short) (narrow) %v4156_v56, 16 }
0x1146   : > { %4338 = vxpose.xlu1.c.b16.start.end [1/1] (short) (narrow) %v4223_v57, 16 }
0x114a   : > { %4450 = vxpose.xlu1.c.b16.start.end [1/1] (short) (narrow) %v4157_v58, 16 }
0x114e   : > { %3799 = vrot.lane.b32.xlu1 %v7903_v63, %s7095_s2 }
0x1184   : > { %v4234_v4 = vpop.trf.xlu1 }
0x1186   : > { %v4442_v7 = vpop.trf.xlu0 }
0x1188   : > { %v4298_v35 = vpop.trf.xlu1 }
0x1189   : > { %v4482_v44 = vcombine.low %v4234_v4, %v4298_v35  ;;  %v3883_v4 = vrot.slane %v6319_v47, %v7546_v62  ;;  %v3891_v35 = vrot.slane %v6320_v49, %v7546_v62 }
0x118a   : > { %v4282_v11 = vpop.trf.xlu0 }
0x118b   : > { %v4489_v56 = vrot.slane %v4482_v44, %v7546_v62  ;;  %v3892_v10 = vcombine.low %v3883_v4, %v3891_v35 }
0x118c   : > { %v4362_v59 = vpop.trf.xlu1 }
0x118d   : > { %v3899_v14 = vrot.slane %v3892_v10, %v7549_v2 }
0x118e   : > { %v4410_v16 = vpop.trf.xlu0 }
0x118f   : > { %v3927_v20 = vshrl.u32 %v3899_v14, 16 }
0x1190   : > { %v4426_v5 = vpop.trf.xlu1 }
0x1191   : > { %v4498_v50 = vcombine.low %v4362_v59, %v4426_v5 }
0x1192   : > { %v4474_v26 = vpop.trf.xlu0 }
0x1193   : > { %v4555_v29 = vcombine.low %v4410_v16, %v4474_v26  ;;  %v4505_v59 = vrot.slane %v4498_v50, %v7546_v62 }
0x1194   : > { %v4250_v37 = vpop.trf.xlu1 }
0x1195   : > { %v4562_v45 = vrot.slane %v4555_v29, %v7546_v62 }
0x1198   : > { %v4266_v8 = vpop.trf.xlu1 }
0x119c   : > { %v4314_v23 = vpop.trf.xlu1 }
0x119d   : > { %v4531_v34 = vcombine.low %v4250_v37, %v4314_v23 }
0x119f   : > { %v4538_v51 = vrot.slane %v4531_v34, %v7546_v62 }
0x11a0   : > { %v4330_v17 = vpop.trf.xlu1 }
0x11a1   : > { %v4490_v36 = vcombine.low %v4266_v8, %v4330_v17 }
0x11a3   : > { %v4497_v52 = vrot.slane %v4490_v36, %v7546_v62 }
0x11a4   : > { %v4378_v22 = vpop.trf.xlu1 }
0x11a5   : > { %v4547_v30 = vcombine.low %v4378_v22, %v4442_v7  ;;  %v4514_v3 = vcombine.low %v4489_v56, %v4497_v52  ;;  %v3916_v7 = vcombine.low %v3907_v42, %v3915_v54 }
0x11a7   : > { %v4554_v60 = vrot.slane %v4547_v30, %v7546_v62  ;;  %v3923_v12 = vrot.slane %v3916_v7, %v7549_v2 }
0x11a8   : > { %v4394_v28 = vpop.trf.xlu1 }
0x11a9   : > { %v4571_v57 = vcombine.low %v4554_v60, %v4562_v45  ;;  %v3928_v17 = vshrl.u32 %v3923_v12, 16  ;;  %v3926_v19 = vpack.i.b16 %v3923_v12, %v3899_v14 }
0x11ab   : > { %v4578_v9 = vrot.slane %v4571_v57, %v7549_v2  ;;  %v3929_v24 = vpack.i.b16 %v3928_v17, %v3927_v20 }
0x11ac   : > { %v4346_v43 = vpop.trf.xlu1 }
0x11ad   : > { %v4539_v46 = vcombine.low %v4282_v11, %v4346_v43  ;;  %v4521_v11 = vrot.slane %v4514_v3, %v7549_v2 }
0x11af   : > { %v4546_v53 = vrot.slane %v4539_v46, %v7546_v62 }
0x11b0   : > { %v4458_v55 = vpop.trf.xlu1 }
0x11b1   : > { %v4563_v58 = vcombine.low %v4538_v51, %v4546_v53  ;;  %v4506_v61 = vcombine.low %v4394_v28, %v4458_v55 }
0x11b3   : > { %v4570_v5 = vrot.slane %v4563_v58, %v7549_v2  ;;  %v4513_v37 = vrot.slane %v4506_v61, %v7546_v62 }
0x11b5   : > { %v4522_v8 = vcombine.low %v4505_v59, %v4513_v37  ;;  %v4579_v6 = vcombine.low %v4570_v5, %v4578_v9 }
0x11b7   : > { %v4529_v23 = vrot.slane %v4522_v8, %v7549_v2  ;;  %v4585_v16 = vshrl.u32 %v4579_v6, 16 }
0x11b9   : > { %v4530_v13 = vcombine.low %v4521_v11, %v4529_v23 }
0x11bb   : > { %v4582_v15 = vpack.i.b16 %v4579_v6, %v4530_v13  ;;  %v4584_v41 = vshrl.u32 %v4530_v13, 16 }
0x11bd   : > { %6552 = vmatpush3.bf16.msra.mxu0 %v4582_v15  ;;  %v4586_v18 = vpack.i.b16 %v4585_v16, %v4584_v41 }
0x11be   : > { %6563 = vmatprep.subr.bf16.mxu0 %v7093_v1 }
0x11bf   : > { %6558 = vmatpush3.bf16.msra.mxu1 %v4586_v18 }
0x11c0   : > { %6554 = vmatmul.mubr.msk.bf16.vlgmr.msra.gmra.mrb[28].mxu0 %vm2109_vm5, %v3926_v19  ;;  %v3800_v22 = vpop.permute.xlu1 %3799  ;;  %6569 = vmatprep.subr.bf16.mxu1 %v7093_v1 }
0x11c1   : > { %v3817_v26 = vcombine.high %v3800_v22, %v7093_v1  ;;  %v3824_v27 = vrot.slane %v3800_v22, %v7546_v62  ;;  %6565 = vmatprep.mubr.msk.bf16.mxu0 %vm7094_vm1, %v7093_v1 }
0x11c2   : > { %6560 = vmatmul.mubr.msk.bf16.vlgmr.msra.gmra.mrb[28].mxu1 %vm2109_vm5, %v3929_v24 }
0x11c3   : > { %v3831_v28 = vrot.slane %v3817_v26, %v7546_v62  ;;  %v3832_v29 = vcombine.low %v3809_v25, %v3824_v27  ;;  %v3833_v30 = vcombine.high %v3809_v25, %v3824_v27  ;;  %6571 = vmatprep.mubr.msk.bf16.mxu1 %vm7094_vm1, %v7093_v1 }
0x11c5   : > { %v3840_v63 = vrot.slane %v3832_v29, %v7549_v2  ;;  %v3848_v31 = vcombine.low %v3816_v48, %v3831_v28  ;;  %v3849_v32 = vcombine.high %v3816_v48, %v3831_v28  ;;  %v3847_v34 = vrot.slane %v3833_v30, %v7549_v2 }
0x11c7   : > { %v3864_v36 = vcombine.high %v3840_v63, %v7093_v1  ;;  %v3868_v38 = vpack.c.bf16 %v3840_v63, %v3840_v63  ;;  %v3856_v43 = vrot.slane %v3848_v31, %v7549_v2  ;;  %v3870_v44 = vpack.c.bf16 %v3847_v34, %v3847_v34 }
0x11c8   : > { %v3865_v45 = vcombine.high %v3847_v34, %v7093_v1  ;;  %v3863_v35 = vrot.slane %v3849_v32, %v7549_v2 }
0x11c9   : > { %4698 = vxpose.xlu0.c.b16.start.end [1/1] (short) (narrow) %v3868_v38, 16  ;;  %v3869_v39 = vpack.c.bf16 %v3864_v36, %v3864_v36  ;;  %v3872_v60 = vpack.c.bf16 %v3856_v43, %v3856_v43  ;;  %v3866_v47 = vcombine.high %v3856_v43, %v7093_v1 }
0x11ca   : > { %v3871_v46 = vpack.c.bf16 %v3865_v45, %v3865_v45  ;;  %v3867_v59 = vcombine.high %v3863_v35, %v7093_v1  ;;  %v3874_v3 = vpack.c.bf16 %v3863_v35, %v3863_v35 }
0x11cb   : > { %4714 = vxpose.xlu1.c.b16.start.end [1/1] (short) (narrow) %v3869_v39, 16  ;;  %v3873_v49 = vpack.c.bf16 %v3866_v47, %v3866_v47 }
0x11cd   : > { %4730 = vxpose.xlu0.c.b16.start.end [1/1] (short) (narrow) %v3870_v44, 16 }
0x11cf   : > { %4762 = vxpose.xlu1.c.b16.start.end [1/1] (short) (narrow) %v3872_v60, 16 }
0x11d1   : > { %4746 = vxpose.xlu0.c.b16.start.end [1/1] (short) (narrow) %v3871_v46, 16 }
0x11d5   : > { %4778 = vxpose.xlu0.c.b16.start.end [1/1] (short) (narrow) %v3873_v49, 16 }
0x122f   : > { %v4706_v5 = vpop.trf.xlu0 }
0x1230   : > { %v4830_v11 = vshrl.u32 %v4706_v5, 16 }
0x1231   : > { %v4722_v7 = vpop.trf.xlu1 }
0x1232   : > { %v4831_v6 = vshrl.u32 %v4722_v7, 16  ;;  %v4828_v15 = vpack.i.b16 %v4722_v7, %v4706_v5 }
0x1233   : > { %v4738_v37 = vpop.trf.xlu0 }
0x1234   : > { %v4832_v16 = vpack.i.b16 %v4831_v6, %v4830_v11  ;;  %v4838_v18 = vshrl.u32 %v4738_v37, 16 }
0x1235   : > { %v4770_v8 = vpop.trf.xlu1 }
0x1236   : > { %v4846_v12 = vshrl.u32 %v4770_v8, 16 }
0x1237   : > { %v4754_v9 = vpop.trf.xlu0 }
0x1238   : > { %v4839_v19 = vshrl.u32 %v4754_v9, 16  ;;  %v4836_v24 = vpack.i.b16 %v4754_v9, %v4738_v37 }
0x123a   : > { %v4840_v48 = vpack.i.b16 %v4839_v19, %v4838_v18 }
0x123b   : > { %v4786_v10 = vpop.trf.xlu0 }
0x123c   : > { %v4847_v13 = vshrl.u32 %v4786_v10, 16  ;;  %v4844_v41 = vpack.i.b16 %v4786_v10, %v4770_v8 }
0x123e   : > { %v4848_v20 = vpack.i.b16 %v4847_v13, %v4846_v12  ;;  %v4858_v25 = vcombine.low %v4828_v15, %v4844_v41  ;;  %v4859_v47 = vcombine.high %v4828_v15, %v4844_v41 }
0x1240   : > { %v4926_v28 = vcombine.low %v4832_v16, %v4848_v20  ;;  %v4866_v63 = vrot.slane %v4858_v25, %v7546_v62 }
0x1242   : > { %v4934_v34 = vrot.slane %v4926_v28, %v7546_v62 }
0x1293   : > { %v4625_v50 = vpop.f32.mrb[28].mxu0 }
0x1294   : > { %v7964_v51 = vadd.f32 %v4625_v50, %v7668_v33  ;;  %v6555_v52 = vpop.f32.mrb[29].mxu0 }
0x1295   : > { %v4628_v53 = vpop.f32.mrb[30].mxu0  ;;  %v4668_v42 = vpop.f32.mrb[28].mxu1 }
0x1296   : > { %v7967_v54 = vadd.f32 %v4668_v42, %v7668_v33  ;;  %v6556_v55 = vpop.f32.mrb[31].mxu0  ;;  %v6561_v56 = vpop.f32.mrb[29].mxu1  ;;  %v4674_v57 = vsel %vm2196_vm6, %v7964_v51, -inf  ;;  %v3875_v33 = vpack.c.bf16 %v3867_v59, %v3867_v59  ;;  %v4927_v53 = vcombine.high %v4832_v16, %v4848_v20 }
0x1297   : > { %v4671_v58 = vpop.f32.mrb[30].mxu1  ;;  %4675 = vmax.xlane.f32.xlu1 %v4674_v57  ;;  %v4873_v56 = vrot.slane %v4859_v47, %v7546_v62 }
0x1298   : > { %v6562_v61 = vpop.f32.mrb[31].mxu1  ;;  %v4677_v4 = vsel %vm2196_vm6, %v7967_v54, -inf }
0x1299   : > { %4678 = vmax.xlane.f32.xlu0 %v4677_v4  ;;  %v4941_v61 = vrot.slane %v4927_v53, %v7546_v62 }
0x12c4   : > { %4794 = vxpose.xlu1.c.b16.start.end [1/1] (short) (narrow) %v3874_v3, 16 }
0x12c6   : > { %4810 = vxpose.xlu0.c.b16.start.end [1/1] (short) (narrow) %v3875_v33, 16 }
0x1324   : > { %v7975_v23 = vpop.xlane.xlu1 %4675 }
0x1325   : > { %v4680_v5 = vsub.f32 %v7964_v51, %v7975_v23 }
0x1326   : > { %v7977_v14 = vpop.xlane.xlu0 %4678 }
0x1327   : > { %v4681_v7 = vsub.f32 %v7967_v54, %v7977_v14  ;;  %v4682_v10 = vmul.f32 1.442695, %v4680_v5 }
0x1329   : > { %v4684_v12 = vmul.f32 1.442695, %v4681_v7  ;;  %6786 = vpow2.f32 %v4682_v10 }
0x132a   : > { %v4802_v17 = vpop.trf.xlu1 }
0x132b   : > { %v4854_v21 = vshrl.u32 %v4802_v17, 16  ;;  %6788 = vpow2.f32 %v4684_v12 }
0x132c   : > { %v4818_v22 = vpop.trf.xlu0 }
0x132d   : > { %v4855_v26 = vshrl.u32 %v4818_v22, 16  ;;  %v4852_v27 = vpack.i.b16 %v4818_v22, %v4802_v17 }
0x132f   : > { %v4856_v29 = vpack.i.b16 %v4855_v26, %v4854_v21  ;;  %v4874_v30 = vcombine.low %v4836_v24, %v4852_v27  ;;  %v4875_v45 = vcombine.high %v4836_v24, %v4852_v27 }
0x1331   : > { %v4882_v31 = vrot.slane %v4874_v30, %v7546_v62  ;;  %v4942_v32 = vcombine.low %v4840_v48, %v4856_v29  ;;  %v4943_v49 = vcombine.high %v4840_v48, %v4856_v29  ;;  %v4889_v42 = vrot.slane %v4875_v45, %v7546_v62 }
0x1333   : > { %v4950_v36 = vrot.slane %v4942_v32, %v7546_v62  ;;  %v4890_v38 = vcombine.low %v4866_v63, %v4882_v31  ;;  %v4891_v46 = vcombine.high %v4866_v63, %v4882_v31  ;;  %v4957_v57 = vrot.slane %v4943_v49, %v7546_v62  ;;  %v6787_v54 = vpop.eup %6786 }
0x1334   : > { %v4906_v35 = vcombine.low %v4873_v56, %v4889_v42  ;;  %v4907_v8 = vcombine.high %v4873_v56, %v4889_v42  ;;  %v4686_v14 = vsel %vm2196_vm6, %v6787_v54, 0.0 }
0x1335   : > { %v4898_v39 = vrot.slane %v4890_v38, %v7549_v2  ;;  %v4958_v43 = vcombine.low %v4934_v34, %v4950_v36  ;;  %v4959_v52 = vcombine.high %v4934_v34, %v4950_v36  ;;  %v4905_v55 = vrot.slane %v4891_v46, %v7549_v2  ;;  %v6789_v23 = vpop.eup %6788 }
0x1336   : > { %v4974_v3 = vcombine.low %v4941_v61, %v4957_v57  ;;  %v4914_v33 = vrot.slane %v4906_v35, %v7549_v2  ;;  %v4975_v6 = vcombine.high %v4941_v61, %v4957_v57  ;;  %v4921_v13 = vrot.slane %v4907_v8, %v7549_v2 }
0x1337   : > { %4994 = vxpose.xlu1.c.b16.start.end [1/1] (short) (narrow) %v4898_v39, 16  ;;  %v4966_v44 = vrot.slane %v4958_v43, %v7549_v2  ;;  %v4922_v60 = vcombine.high %v4898_v39, %v7092_v0  ;;  %v4973_v58 = vrot.slane %v4959_v52, %v7549_v2  ;;  %v4923_v4 = vcombine.high %v4905_v55, %v7092_v0 }
0x1338   : > { %v4982_v37 = vrot.slane %v4974_v3, %v7549_v2  ;;  %v4924_v9 = vcombine.high %v4914_v33, %v7092_v0  ;;  %v4989_v51 = vrot.slane %v4975_v6, %v7549_v2  ;;  %v4689_v15 = vsel %vm2196_vm6, %v6789_v23, 0.0 }
0x1339   : > { %5010 = vxpose.xlu0.c.b16.start.end [1/1] (short) (narrow) %v4966_v44, 16  ;;  %v4990_v50 = vcombine.high %v4966_v44, %v7092_v0  ;;  %v4991_v59 = vcombine.high %v4973_v58, %v7092_v0  ;;  %v4925_v41 = vcombine.high %v4921_v13, %v7092_v0 }
0x133a   : > { %v4992_v11 = vcombine.high %v4982_v37, %v7092_v0  ;;  %v4993_v16 = vcombine.high %v4989_v51, %v7092_v0 }
0x133b   : > { %5026 = vxpose.xlu1.c.b16.start.end [1/1] (short) (narrow) %v4922_v60, 16 }
0x133d   : > { %5042 = vxpose.xlu0.c.b16.start.end [1/1] (short) (narrow) %v4990_v50, 16 }
0x133f   : > { %5058 = vxpose.xlu1.c.b16.start.end [1/1] (short) (narrow) %v4905_v55, 16 }
0x1341   : > { %5074 = vxpose.xlu0.c.b16.start.end [1/1] (short) (narrow) %v4973_v58, 16 }
0x1343   : > { %5090 = vxpose.xlu1.c.b16.start.end [1/1] (short) (narrow) %v4923_v4, 16 }
0x1345   : > { %5106 = vxpose.xlu0.c.b16.start.end [1/1] (short) (narrow) %v4991_v59, 16 }
0x1347   : > { %5122 = vxpose.xlu1.c.b16.start.end [1/1] (short) (narrow) %v4914_v33, 16 }
0x1349   : > { %5138 = vxpose.xlu0.c.b16.start.end [1/1] (short) (narrow) %v4982_v37, 16 }
0x134b   : > { %5154 = vxpose.xlu1.c.b16.start.end [1/1] (short) (narrow) %v4924_v9, 16 }
0x134d   : > { %5170 = vxpose.xlu0.c.b16.start.end [1/1] (short) (narrow) %v4992_v11, 16 }
0x134f   : > { %5186 = vxpose.xlu1.c.b16.start.end [1/1] (short) (narrow) %v4921_v13, 16 }
0x1351   : > { %5202 = vxpose.xlu0.c.b16.start.end [1/1] (short) (narrow) %v4989_v51, 16 }
0x135c   : > { %4687 = vadd.xlane.f32.xlu1 %v4686_v14 }
0x135e   : > { %4690 = vadd.xlane.f32.xlu0 %v4689_v15 }
0x1389   : > { %5218 = vxpose.xlu1.c.b16.start.end [1/1] (short) (narrow) %v4925_v41, 16 }
0x138b   : > { %5234 = vxpose.xlu0.c.b16.start.end [1/1] (short) (narrow) %v4993_v16, 16 }
0x139d   : > { %v5002_v17 = vpop.trf.xlu1 }
0x139f   : > { %v5018_v18 = vpop.trf.xlu0 }
0x13a1   : > { %v5034_v19 = vpop.trf.xlu1 }
0x13a3   : > { %v5050_v20 = vpop.trf.xlu0 }
0x13a5   : > { %v5066_v21 = vpop.trf.xlu1 }
0x13a6   : > { %v5250_v34 = vcombine.low %v5002_v17, %v5066_v21  ;;  %v6760_v21 = vld [vmem:[%s8174_s12 + $0x10] sm:$0xff]  }
0x13a7   : > { %v5082_v22 = vpop.trf.xlu0 }
0x13a8   : > { %v5299_v0 = vcombine.low %v5018_v18, %v5082_v22  ;;  %v5257_v46 = vrot.slane %v5250_v34, %v7546_v62 }
0x13a9   : > { %v5098_v24 = vpop.trf.xlu1 }
0x13aa   : > { %v5258_v36 = vcombine.low %v5034_v19, %v5098_v24  ;;  %v5306_v43 = vrot.slane %v5299_v0, %v7546_v62 }
0x13ab   : > { %v5114_v25 = vpop.trf.xlu0 }
0x13ac   : > { %v5307_v32 = vcombine.low %v5050_v20, %v5114_v25  ;;  %v5265_v47 = vrot.slane %v5258_v36, %v7546_v62 }
0x13ad   : > { %v5130_v26 = vpop.trf.xlu1 }
0x13ae   : > { %v5314_v44 = vrot.slane %v5307_v32, %v7546_v62  ;;  %v5282_v61 = vcombine.low %v5257_v46, %v5265_v47 }
0x13af   : > { %v5146_v27 = vpop.trf.xlu0 }
0x13b0   : > { %v5331_v55 = vcombine.low %v5306_v43, %v5314_v44  ;;  %v5289_v9 = vrot.slane %v5282_v61, %v7549_v2  ;;  %v6761_v44 = vld [vmem:[%s8174_s12 + $0x18] sm:$0xff]  }
0x13b1   : > { %v5162_v48 = vpop.trf.xlu1 }
0x13b2   : > { %v5338_v37 = vrot.slane %v5331_v55, %v7549_v2 }
0x13b3   : > { %v5178_v28 = vpop.trf.xlu0 }
0x13b5   : > { %v5194_v29 = vpop.trf.xlu1 }
0x13b6   : > { %v5266_v38 = vcombine.low %v5130_v26, %v5194_v29 }
0x13b7   : > { %v5210_v30 = vpop.trf.xlu0 }
0x13b8   : > { %v5315_v45 = vcombine.low %v5146_v27, %v5210_v30  ;;  %v5273_v50 = vrot.slane %v5266_v38, %v7546_v62 }
0x13ba   : > { %v5322_v56 = vrot.slane %v5315_v45, %v7546_v62 }
0x13e9   : > { %v4688_v63 = vpop.xlane.xlu1 %4687 }
0x13ea   : > { %6790 = vrcp.f32 %v4688_v63 }
0x13eb   : > { %v4691_v31 = vpop.xlane.xlu0 %4690 }
0x13ec   : > { %6792 = vrcp.f32 %v4691_v31 }
0x13ef   : > { %v5226_v39 = vpop.trf.xlu1 }
0x13f0   : > { %v5274_v60 = vcombine.low %v5162_v48, %v5226_v39 }
0x13f1   : > { %v5242_v49 = vpop.trf.xlu0 }
0x13f2   : > { %v5281_v52 = vrot.slane %v5274_v60, %v7546_v62  ;;  %v5323_v53 = vcombine.low %v5178_v28, %v5242_v49 }
0x13f4   : > { %v6791_v42 = vpop.eup %6790  ;;  %v5290_v57 = vcombine.low %v5273_v50, %v5281_v52  ;;  %v5330_v58 = vrot.slane %v5323_v53, %v7546_v62 }
0x13f5   : > { %v4694_v4 = vmul.f32 %v6791_v42, %v6787_v54 }
0x13f6   : > { %v6793_v35 = vpop.eup %6792  ;;  %v5339_v59 = vcombine.low %v5322_v56, %v5330_v58  ;;  %v5297_v3 = vrot.slane %v5290_v57, %v7549_v2 }
0x13f7   : > { %v4696_v33 = vpack.c.bf16 %v4694_v4, %v4694_v4  ;;  %v4695_v5 = vmul.f32 %v6793_v35, %v6789_v23 }
0x13f8   : > { %v5346_v7 = vrot.slane %v5339_v59, %v7549_v2  ;;  %v5298_v6 = vcombine.low %v5289_v9, %v5297_v3 }
0x13f9   : > { %v5358_v8 = vsel %vm2196_vm6, %v4696_v33, 0  ;;  %v4697_v10 = vpack.c.bf16 %v4695_v5, %v4695_v5 }
0x13fa   : > { %v5347_v11 = vcombine.low %v5338_v37, %v5346_v7  ;;  %6564 = vmatpush3.bf16.xpose.msra.mxu0 %v5358_v8  ;;  %v5351_v51 = vshrl.u32 %v5298_v6, 16 }
0x13fb   : > { %v5405_v12 = vsel %vm2196_vm6, %v4697_v10, 0  ;;  %6575 = vmatprep.subr.bf16.mxu0 %v7093_v1 }
0x13fc   : > { %6570 = vmatpush3.bf16.xpose.msra.mxu1 %v5405_v12  ;;  %v5352_v13 = vshrl.u32 %v5347_v11, 16  ;;  %v5350_v54 = vpack.i.b16 %v5347_v11, %v5298_v6  ;;  %v6762_v6 = vld [vmem:[%s8178_s16 + $0x10] sm:$0xff]  }
0x13fd   : > { %6583 = vmatprep.subr.bf16.mxu1 %v7093_v1 }
0x13fe   : > { %v5353_v23 = vpack.i.b16 %v5352_v13, %v5351_v51 }
0x1401   : > { %6566 = vmatmul.mubr.msk.bf16.vlgmr.msra.gmra.mrb[32].mxu0 %vm2196_vm6, %v5350_v54 }
0x1402   : > { %6579 = vmatprep.mubr.msk.bf16.mxu0 %vm7094_vm1, %v7093_v1  ;;  %6576 = vmatpush3.bf16.msra.mxu0 %v6760_v21  ;;  %v6767_v21 = vld [vmem:[%s8180_s18 + $0x38] sm:$0xff]  }
0x1403   : > { %6572 = vmatmul.mubr.msk.bf16.vlgmr.msra.gmra.mrb[32].mxu1 %vm2196_vm6, %v5353_v23  ;;  %6577 = vmatprep.subr.bf16.mxu0 %v7093_v1  ;;  %v6338_v23 = vld [vmem:[#allocation7 + $0x1] ss:$0 sm:$0xff] }
0x1404   : > { %6587 = vmatprep.mubr.msk.bf16.mxu1 %vm7094_vm1, %v7093_v1  ;;  %6584 = vmatpush3.bf16.msra.mxu1 %v6762_v6 }
0x1405   : > { %6585 = vmatprep.subr.bf16.mxu1 %v7093_v1 }
0x1406   : > { %6578 = vmatpush3.bf16.msra.mxu0 %v6761_v44 }
0x1407   : > { %6591 = vmatprep.subr.bf16.mxu0 %v7093_v1 }
0x14d4   : > { %v5394_v14 = vpop.f32.mrb[32].mxu0 }
0x14d5   : > { %5448 = vxpose.xlu1.b32.start [1/2] (short) (narrow) %v5394_v14, 8  ;;  %v6567_v15 = vpop.f32.mrb[33].mxu0 }
0x14d6   : > { %v5397_v41 = vpop.f32.mrb[34].mxu0  ;;  %v5441_v16 = vpop.f32.mrb[32].mxu1  ;;  %v6339_v15 = vld [vmem:[#allocation8 + $0x1] ss:$0 sm:$0xff] }
0x14d7   : > { %5480 = vxpose.xlu0.b32.start [1/2] (short) (narrow) %v5441_v16, 8  ;;  %v6568_v17 = vpop.f32.mrb[35].mxu0  ;;  %v6573_v18 = vpop.f32.mrb[33].mxu1 }
0x14d8   : > { %v5444_v19 = vpop.f32.mrb[34].mxu1  ;;  %v6764_v18 = vld [vmem:[%s8180_s18 + $0x20] sm:$0xff]  }
0x14d9   : > { %v6574_v20 = vpop.f32.mrb[35].mxu1  ;;  %5449 = vxpose.xlu1.b32.end [2/2] (short) (narrow) %v5397_v41, 8 }
0x14da   : > { %v6766_v20 = vld [vmem:[%s8180_s18 + $0x30] sm:$0xff]  }
0x14db   : > { %5481 = vxpose.xlu0.b32.end [2/2] (short) (narrow) %v5444_v19, 8  ;;  %v6765_v19 = vld [vmem:[%s8180_s18 + $0x28] sm:$0xff]  }
0x1555   : > { %v5464_v22 = vpop.trf.xlu1 }
0x1556   : > { %v5512_v24 = vcombine.high %v5464_v22, %v7093_v1  ;;  %v5519_v25 = vrot.slane %v5464_v22, %v7546_v62  ;;  %v6345_v22 = vld [vmem:[%s8261_s3 + $0x1] ss:$0 sm:$0xff] }
0x1557   : > { %v5496_v26 = vpop.trf.xlu0 }
0x1558   : > { %v5527_v27 = vcombine.high %v5496_v26, %v7093_v1  ;;  %v5534_v48 = vrot.slane %v5496_v26, %v7546_v62  ;;  %v5526_v28 = vrot.slane %v5512_v24, %v7546_v62 }
0x155a   : > { %v5541_v29 = vrot.slane %v5527_v27, %v7546_v62  ;;  %v5542_v30 = vcombine.low %v5519_v25, %v5534_v48  ;;  %v5543_v63 = vcombine.high %v5519_v25, %v5534_v48 }
0x155c   : > { %v5550_v31 = vrot.slane %v5542_v30, %v7549_v2  ;;  %v5557_v0 = vrot.slane %v5543_v63, %v7549_v2  ;;  %v5558_v32 = vcombine.low %v5526_v28, %v5541_v29  ;;  %v5559_v34 = vcombine.high %v5526_v28, %v5541_v29 }
0x155e   : > { %v5566_v36 = vrot.slane %v5558_v32, %v7549_v2  ;;  %v5573_v38 = vrot.slane %v5559_v34, %v7549_v2  ;;  %v5578_v39 = vcombine.low %v5550_v31, %v5557_v0  ;;  %v6327_v43 = vcombine.high %v5550_v31, %v5557_v0 }
0x1560   : > { %v5585_v45 = vrot.slane %v5578_v39, %v7546_v62  ;;  %v5593_v60 = vrot.slane %v6327_v43, %v7546_v62  ;;  %v5594_v46 = vcombine.low %v5566_v36, %v5573_v38  ;;  %v6328_v47 = vcombine.high %v5566_v36, %v5573_v38  ;;  %v6358_v39 = vld [vmem:[%s8262_s29 + $0x1] ss:$0 sm:$0xff] }
0x1562   : > { %v5601_v49 = vrot.slane %v5594_v46, %v7546_v62  ;;  %v5609_v50 = vrot.slane %v6328_v47, %v7546_v62  ;;  %v5610_v52 = vcombine.low %v5585_v45, %v5593_v60  ;;  %v6334_v62 = vld [vmem:[%s8175_s13 + $0x1] ss:$0 sm:$0xff] }
0x1564   : > { %v5618_v53 = vcombine.low %v5601_v49, %v5609_v50  ;;  %v5617_v42 = vrot.slane %v5610_v52, %v7549_v2 }
0x1566   : > { %v5625_v55 = vrot.slane %v5618_v53, %v7549_v2 }
0x1568   : > { %v5627_v56 = vcombine.high %v5617_v42, %v5625_v55  ;;  %v5626_v57 = vcombine.low %v5617_v42, %v5625_v55 }
0x156a   : > { %5629 = vrot.lane.b32.xlu0 %v5627_v56, %s7098_s7  ;;  %v6806_v56 = vld [vmem:[%s7664_s4] sm:$0x1]  ;;  %s833_s7 = sand.u32 1, %s8264_s17   ;;  %s8120_s4 = scalar_lea.hbm %s8266_s8, %s6370_s5 }
0x156b   : > { %s834_s28 = scalar_lea.vmem [#allocation14], %s833_s7  ;;  %s6080_s27 = scalar_lea.sflag [#allocation4], %s833_s7 }
0x156c   : > { %s6092_s26 = sshll.u32 %s834_s28, 4  ;;  %s7007_s17 = sshll.u32 %s7099_s6, 4  ;;  %s8122_s26 = int_to_ptr.vmem [resolvable:$true] %s6092_s26  ;;  %s7008_s17 = int_to_ptr.vmem [resolvable:$false] %s7007_s17 }
0x156d   : > { %s7003_s1 = scalar_lea.vmem %s8122_s26, 16  ;;  %s7009_s3 = scalar_lea.vmem %s7008_s17, 32 }
0x156e   : > { %p7004_p4 = scmp.ne.s32.totalorder %s8122_s26, %s7003_s1  ;;  %p7010_p13 = scmp.lt.s32.totalorder %s8122_s26, %s7008_s17 }
0x156f   : > { %p7011_p1 = scmp.lt.s32.totalorder %s7009_s3, %s7003_s1 }
0x1570   : > { %p7005_p8 = pnand %p7004_p4, %p8267_p7 }
0x1571   : > { %p7012_p0 = por %p7011_p1, %p7010_p13 }
0x1572   : > { %p7006_p11 = pneg %p7005_p8 }
0x1574   : > { %p7013_p6 = pnand %p7012_p0, %p7006_p11 }
0x15dc   : > { %v5630_v58 = vpop.permute.xlu0 %5629 }
0x15dd   : > { %v5632_v61 = vsel %vm2109_vm5, %v5626_v57, %v5630_v58  ;;  %v6003_v57 = vsel %vm6002_vm8, %v6806_v56, 0.0 }
0x15de   : > { %v5633_v4 = vpack.c.bf16 %v5632_v61, %v5632_v61 }
0x15e0   : > { %6580 = vmatmul.mubr.msk.bf16.vlgmr.msra.gmra.mrb[36].mxu0 %vm933_vm4, %v5633_v4 }
0x15e1   : > { %6599 = vmatprep.mubr.msk.bf16.mxu0 %vm7094_vm1, %v7093_v1  ;;  %6592 = vmatpush3.bf16.msra.mxu0 %v6764_v18 }
0x15e2   : > { %6593 = vmatprep.subr.bf16.mxu0 %v7093_v1 }
0x15e5   : > { %6594 = vmatpush3.bf16.msra.mxu0 %v6765_v19 }
0x15e6   : > { %6595 = vmatprep.subr.bf16.mxu0 %v7093_v1 }
0x15e9   : > { %6596 = vmatpush3.bf16.msra.mxu0 %v6766_v20 }
0x15ea   : > { %6597 = vmatprep.subr.bf16.mxu0 %v7093_v1 }
0x15ed   : > { %6598 = vmatpush3.bf16.msra.mxu0 %v6767_v21 }
0x16b3   : > { %v5696_v35 = vpop.f32.mrb[36].mxu0 }
0x16b4   : > { %v5697_v59 = vadd.f32 %v6334_v62, %v5696_v35  ;;  %v6581_v2 = vpop.f32.mrb[37].mxu0  ;;  %v6364_v35 = vld [vmem:[#allocation10 + $0x1] ss:$0 sm:$0xff] }
0x16b5   : > { %v5699_v3 = vpop.f32.mrb[38].mxu0  ;;  %v6365_v2 = vld [vmem:[#allocation11 + $0x1] ss:$0 sm:$0xff] }
0x16b6   : > { %v5702_v33 = vadd.f32 %v5697_v59, %v7827_v40  ;;  %v6582_v5 = vpop.f32.mrb[39].mxu0  ;;  %v6763_v40 = vld [vmem:[%s8178_s16 + $0x18] sm:$0xff]  }
0x16b7   : > { %6586 = vmatpush3.bf16.msra.mxu1 %v6763_v40  ;;  %v6768_v5 = vld [vmem:[%s8263_s30] sm:$0xff]  }
0x16b8   : > { %v5707_v37 = vsel %vm933_vm4, %v5702_v33, 0.0  ;;  %6603 = vmatprep.subr.mxu1 %v7093_v1 }
0x16b9   : > { %5708 = vadd.xlane.f32.xlu1 %v5707_v37  ;;  %v6769_v37 = vld [vmem:[%s8263_s30 + $0x8] sm:$0xff]  }
0x1746   : > { %v5709_v7 = vpop.xlane.xlu1 %5708 }
0x1747   : > { %v5710_v9 = vmul.f32 0.03125, %v5709_v7 }
0x1749   : > { %v5711_v8 = vsub.f32 %v5702_v33, %v5710_v9 }
0x174b   : > { %v5712_v10 = vmul.f32 %v5711_v8, %v5711_v8 }
0x174d   : > { %v5713_v11 = vsel %vm933_vm4, %v5712_v10, 0.0 }
0x174e   : > { %5714 = vadd.xlane.f32.xlu0 %v5713_v11 }
0x17db   : > { %v5715_v12 = vpop.xlane.xlu0 %5714 }
0x17dc   : > { %v5716_v13 = vmul.f32 0.03125, %v5715_v12  ;;  %v6014_v12 = vld [vmem:[#allocation13] sm:$0x1] }
0x17de   : > { %v5717_v51 = vadd.f32 1e-05, %v5716_v13 }
0x17e0   : > { %6794 = vrsqrt.f32 %v5717_v51 }
0x17ea   : > { %v6795_v54 = vpop.eup %6794 }
0x17eb   : > { %v5719_v14 = vmul.f32 %v6795_v54, %v5711_v8 }
0x17ed   : > { %v5726_v41 = vmul.f32 %v6338_v23, %v5719_v14 }
0x17ef   : > { %v5733_v16 = vadd.f32 %v6339_v15, %v5726_v41 }
0x17f1   : > { %v5734_v17 = vpack.c.bf16 %v5733_v16, %v5733_v16 }
0x17f3   : > { %6588 = vmatmul.mubr.msk.bf16.vlgmr.msra.gmra.mrb[36].mxu1 %vm933_vm4, %v5734_v17 }
0x17f4   : > { %6605 = vmatprep.mubr.msk.f32.mxu1 %vm7094_vm1, %v7093_v1 }
0x18c6   : > { %v5797_v24 = vpop.f32.mrb[36].mxu1 }
0x18c7   : > { %v5798_v25 = vadd.f32 %v6345_v22, %v5797_v24  ;;  %v6589_v26 = vpop.f32.mrb[37].mxu1 }
0x18c8   : > { %v5800_v27 = vpop.f32.mrb[38].mxu1 }
0x18c9   : > { %v5804_v48 = vmul.f32 0.044715, %v5798_v25  ;;  %v6590_v28 = vpop.f32.mrb[39].mxu1  ;;  %v5803_v32 = vmul.f32 0.5, %v5798_v25 }
0x18cb   : > { %v5805_v29 = vmul.f32 %v5804_v48, %v5798_v25 }
0x18cd   : > { %v5806_v30 = vmul.f32 %v5805_v29, %v5798_v25 }
0x18cf   : > { %v5807_v63 = vadd.f32 %v5806_v30, %v5798_v25 }
0x18d1   : > { %v5808_v31 = vmul.f32 0.7978846, %v5807_v63 }
0x18d3   : > { %6796 = vtanh.f32 %v5808_v31 }
0x18dd   : > { %v6797_v0 = vpop.eup %6796 }
0x18de   : > { %v5810_v34 = vadd.f32 1.0, %v6797_v0 }
0x18e0   : > { %v5811_v36 = vmul.f32 %v5810_v34, %v5803_v32 }
0x18e2   : > { %v5812_v38 = vpack.c.bf16 %v5811_v36, %v5811_v36 }
0x18e4   : > { %6600 = vmatmul.mubr.msk.bf16.vlgmr.msra.gmra.mrb[40].mxu0 %vm3369_vm7, %v5812_v38 }
0x19b7   : > { %v5891_v43 = vpop.f32.mrb[40].mxu0 }
0x19b8   : > { %v5892_v44 = vadd.f32 %v6358_v39, %v5891_v43  ;;  %v6601_v45 = vpop.f32.mrb[41].mxu0 }
0x19b9   : > { %v5894_v60 = vpop.f32.mrb[42].mxu0 }
0x19ba   : > { %v5897_v46 = vadd.f32 %v5892_v44, %v5733_v16  ;;  %v6602_v47 = vpop.f32.mrb[43].mxu0 }
0x19bc   : > { %v5902_v49 = vsel %vm933_vm4, %v5897_v46, 0.0 }
0x19bd   : > { %5903 = vadd.xlane.f32.xlu1 %v5902_v49 }
0x1a4a   : > { %v5904_v50 = vpop.xlane.xlu1 %5903 }
0x1a4b   : > { %v5905_v52 = vmul.f32 0.03125, %v5904_v50 }
0x1a4d   : > { %v5906_v53 = vsub.f32 %v5897_v46, %v5905_v52 }
0x1a4f   : > { %v5907_v42 = vmul.f32 %v5906_v53, %v5906_v53 }
0x1a51   : > { %v5908_v55 = vsel %vm933_vm4, %v5907_v42, 0.0 }
0x1a52   : > { %5909 = vadd.xlane.f32.xlu1 %v5908_v55 }
0x1a56   : > { %6004 = vadd.xlane.f32.xlu1 %v6003_v57 }
0x1adf   : > { %v5910_v58 = vpop.xlane.xlu1 %5909 }
0x1ae0   : > { %v5911_v61 = vmul.f32 0.03125, %v5910_v58 }
0x1ae2   : > { %v5912_v4 = vadd.f32 1e-05, %v5911_v61 }
0x1ae3   : > { %v6005_v7 = vpop.xlane.xlu1 %6004 }
0x1ae4   : > { %6798 = vrsqrt.f32 %v5912_v4  ;;  %v6006_v9 = vmax.f32 %v6005_v7, 1e-09 }
0x1ae6   : > { %6800 = vrcp.f32 %v6006_v9 }
0x1aee   : > { %v6799_v62 = vpop.eup %6798 }
0x1aef   : > { %v5914_v59 = vmul.f32 %v6799_v62, %v5906_v53 }
0x1af0   : > { %v6801_v8 = vpop.eup %6800 }
0x1af1   : > { %v5921_v3 = vmul.f32 %v6364_v35, %v5914_v59 }
0x1af3   : > { %v5928_v33 = vadd.f32 %v6365_v2, %v5921_v3 }
0x1af5   : > { %6604 = vmatpush3.msra.mxu1 %v5928_v33 }
0x1af6   : > { %6606 = vmatmul.mubr.msk.f32.vlgmr.msra.gmra.mrb[40].mxu1 %vm2196_vm6, %v6806_v56  ;;  %6608 = vmatprep.subr.bf16.mxu1 %v7093_v1 }
0x1af7   : > { %6609 = vmatpush3.bf16.msra.mxu1 %v6768_v5  ;;  %6612 = vmatprep.mubr.msk.bf16.mxu1 %vm7094_vm1, %v7093_v1 }
0x1af8   : > { %6610 = vmatprep.subr.bf16.mxu1 %v7093_v1 }
0x1afb   : > { %6611 = vmatpush3.bf16.msra.mxu1 %v6769_v37 }
0x1bc9   : > { %v5998_v10 = vpop.f32.mrb[40].mxu1 }
0x1bca   : > { %v6008_v11 = vmul.f32 %v6801_v8, %v5998_v10  ;;  %v6607_v6 = vpop.f32.mrb[41].mxu1 }
0x1bcc   : > { %v6009_v40 = vpack.c.bf16 %v6008_v11, %v6008_v11 }
0x1bce   : > { %6613 = vmatmul.mubr.msk.bf16.vlgmr.msra.gmra.mrb[44].mxu1 %vm933_vm4, %v6009_v40 }
0x1ca1   : > { %v6064_v13 = vpop.f32.mrb[44].mxu1 }
0x1ca2   : > { %v6065_v1 = vadd.f32 %v6064_v13, %v6014_v12  ;;  %v6614_v51 = vpop.f32.mrb[45].mxu1 }
0x1ca3   : > { %v6067_v54 = vpop.f32.mrb[46].mxu1 }
0x1ca4   : > { %6802 = vtanh.f32 %v6065_v1  ;;  %v6615_v23 = vpop.f32.mrb[47].mxu1 }
0x1cae   : > { %v6803_v14 = vpop.eup %6802 }
0x1caf   : > { %v6071_v15 = vmul.f32 %v6803_v14, %v6803_v14 }
0x1cb1   : > { %v6072_v41 = vsel %vm887_vm0, %v6071_v15, 0.0 }
0x1cb2   : > { %6073 = vadd.xlane.f32.xlu1 %v6072_v41 }
0x1d3f   : > { %v6074_v16 = vpop.xlane.xlu1 %6073 }
0x1d40   : > { %v6075_v17 = vmax.f32 %v6074_v16, 1e-24 }
0x1d42   : > { %6804 = vrsqrt.f32 %v6075_v17 }
0x1d4c   : > { %v6805_v18 = vpop.eup %6804 }
0x1d4d   : > { %v6077_v19 = vmul.f32 %v6805_v18, %v6803_v14 }
0x1d4f   : > { %6078 = vst [vmem:[%s834_s28] sm:$0x1] %v6077_v19 }
0x1d50   : > { %7016 = shalt.err (!%p7013_p6)
}
0x1d51   : > { %s7017_s7 = scalar_lea.hbm %s8120_s4, 16  ;;  %s7021_s22 = scalar_lea.hbm %s8266_s8, 32 }
0x1d52   : > { %p7018_p5 = scmp.ne.s32.totalorder %s8120_s4, %s7017_s7  ;;  %p7022_p10 = scmp.lt.u32.totalorder %s8120_s4, %s8266_s8 }
0x1d53   : > { %p7023_p2 = scmp.lt.u32.totalorder %s7021_s22, %s7017_s7  ;;  %p7025_p4 = scmp.lt.u32.totalorder %s7017_s7, %s8120_s4 }
0x1d54   : > { %p7019_p9 = pnand %p7018_p5, %p8267_p7 }
0x1d55   : > { %p7024_p3 = por %p7023_p2, %p7022_p10 }
0x1d56   : > { %p7020_p12 = pneg %p7019_p9 }
0x1d57   : > { %p7026_p8 = por %p7025_p4, %p7024_p3 }
0x1d59   : > { %p7027_p11 = pnand %p7026_p8, %p7020_p12 }
0x1d5b   : > { %7030 = shalt.err (!%p7027_p11)
}
0x1d5c   : > { %6644 = dma.vmem_to_hbm [thread:$0]  (%p8267_p7), %s8122_s26, 16, %s8120_s4, %s6080_s27  }
0x1d5d PF: > { %s8268_s1 = sld [smem:[#allocation23_spill]]  ;;  %s8269_s3 = sld [smem:[#allocation20_spill]] }
0x1d5e   : > { %s8270_s17 = sld [smem:[#allocation27_spill]] }
0x1d63   : > { %p6686_p13 = scmp.ge.s32.totalorder %s8268_s1, 2  ;;  %s6104_s5 = sand.u32 1, %s8269_s3  }
0x1d64   : > { %p8271_p1 = scmp.ne.s32.totalorder %s8270_s17, 0  ;;  %s6105_s28 = scalar_lea.sflag [#allocation4], %s6104_s5 }
0x1d66   : > { %p6669_p0 = pnand %p6686_p13, %p8271_p1 }
0x1d68   : > { %7064 = dma.done.wait (!%p6669_p0), %s6105_s28, 16  }
0x1d69   : > { %7066 = vsyncadd (!%p6669_p0), %s6105_s28, 4294967280  ;;  %s8272_s28 = sld [smem:[#allocation24_spill]]  ;;  %s8273_s5 = sld [smem:[#allocation21_spill]] }
0x1d6a   : > { %s8274_s26 = sld [smem:[#allocation22_spill]]  ;;  %s8275_s27 = sld [smem:[#allocation25_spill]] }
0x1d6f   : > { %p38_p6 = scmp.ge.s32.totalorder %s8272_s28, 4  }
0x1d71   :  { %40 = sbr.rel (!%p38_p6) target bundleno = 22 (0x16), region = 199 }
0x1d78   :  { %6109 = vsyncpa [#allocation3], 1 }
0x1d79   :  { %6111 = vsyncpa [#allocation3 + $0x1], 1 }
0x1d7a   :  { %6112 = vsyncpa [#allocation6], 1 }
0x1d7b   :  { %6113 = vsyncpa [#allocation9], 1 }
0x1d7c   :  { %6114 = vsyncpa [#allocation12], 1 }
0x1d7d   :  { %6115 = vsyncpa [#allocation4], 1 }
0x1d7e   :  { %6117 = vsyncpa [#allocation4 + $0x1], 1 }

</bundles_post_ra>
